<compile_context>
chip_gen: v6e
topology: v6e:2x2x1
jax: 0.10.0
libtpu: 0.0.40
codegen_flags: <defaults>
</compile_context>

<pallas_src>
import jax
import jax.numpy as jnp
import numpy as np
from jax.experimental import pallas as pl
from jax.experimental.pallas import tpu as pltpu

# ----------------- small, self-consistent hyper-parameters -------------------
BATCH = 2
INPUT_DIM = 16
HIDDEN = 32            # hidden_size
SEQ = HIDDEN           # LayerNorm(hidden_size) in NCL layout normalizes the last
                       # (length) axis, so the module only works when L == hidden_size.
NUM_RES_BLOCKS = 2
NUM_CONV_PER_BLOCK = 2
NUM_LAYERS = 1 + NUM_RES_BLOCKS * NUM_CONV_PER_BLOCK   # initial conv + block convs
POOL_HIDDEN = 64       # pooling_hidden_size (divisible by NUM_HEADS)
NUM_HEADS = 4
HEAD_DIM = POOL_HIDDEN // NUM_HEADS
OUTPUT_DIM = 8
OUT_PAD = 128          # lane-dense output slab; real OUTPUT_DIM sliced outside
KSIZE = 5
PAD = (KSIZE - 1) // 2
LN_EPS = 1e-5


# --------------------------- fused Pallas kernel ------------------------------
def _conv_relu_ln(pad_ref, w_ref, b_ref, g_ref, be_ref, layer):
    """Conv1d(k=5, pad=2) + ReLU + LayerNorm-over-length for one layer.

    Reads the already-stored padded activation from `pad_ref`
    ((B, SEQ+2*PAD, HIDDEN), halo rows are zero) and returns (B, SEQ, HIDDEN).
    """
    # 5 sublane-shifted taps -> 5 INDEPENDENT MXU dots, tree-summed so the
    # vmatmul pushes pipeline instead of serializing through accumulator adds.
    taps = [
        jnp.dot(pad_ref[:, k:k + SEQ, :].reshape(BATCH * SEQ, HIDDEN),
                w_ref[layer, k],
                preferred_element_type=jnp.float32)
        for k in range(KSIZE)
    ]
    acc = ((taps[0] + taps[1]) + (taps[2] + taps[3])) + taps[4]
    acc = acc.reshape(BATCH, SEQ, HIDDEN) + b_ref[layer]           # conv bias
    acc = jnp.maximum(acc, 0.0)                                    # ReLU
    # LayerNorm(hidden_size) applied in NCL layout == normalize over length.
    # One-pass statistics: reduce [x | x*x] together (C=32, lanes were idle),
    # var = E[x^2] - mean^2 (mild cancellation is fine at post-ReLU magnitudes).
    stats = jnp.sum(jnp.concatenate([acc, acc * acc], axis=-1),
                    axis=1, keepdims=True) * (1.0 / SEQ)           # (B, 1, 2C)
    mean = stats[:, :, :HIDDEN]
    var = stats[:, :, HIDDEN:] - mean * mean
    normed = (acc - mean) * jax.lax.rsqrt(var + LN_EPS)
    return normed * g_ref[layer][None, :, :] + be_ref[layer][None, :, :]


def fused_prosody_kernel(x_ref, wc_ref, bc_ref, gc_ref, bec_ref,
                         wqkv_ref, bqkv_ref, wof_ref, bof_ref, mask_ref,
                         o_ref, pad_ref):
    # Zero the padded-activation scratch ONCE; halo rows [0:PAD] / [PAD+SEQ:]
    # stay zero for every conv layer (replaces the per-layer pad-concat).
    pad_ref[...] = jnp.zeros((BATCH, SEQ + 2 * PAD, HIDDEN), jnp.float32)
    # The input occupies the first INPUT_DIM channels; wc[0] has zero weight
    # rows for the remaining (zeroed) channels so all conv layers share a shape.
    pad_ref[:, PAD:PAD + SEQ, :INPUT_DIM] = x_ref[...]

    # ---- initial conv + residual blocks, activations stay in VMEM ----------
    h = _conv_relu_ln(pad_ref, wc_ref, bc_ref, gc_ref, bec_ref, 0)
    layer = 1
    for _ in range(NUM_RES_BLOCKS):
        res = h
        for _ in range(NUM_CONV_PER_BLOCK):
            pad_ref[:, PAD:PAD + SEQ, :] = h
            h = _conv_relu_ln(pad_ref, wc_ref, bc_ref, gc_ref, bec_ref, layer)
            layer += 1
        h = h + res                                                # residual add

    # ---- attentive pooling (folded linears) + final linear -----------------
    xf = h.reshape(BATCH * SEQ, HIDDEN)                            # batch-stacked rows
    qkv = jnp.dot(xf, wqkv_ref[...],
                  preferred_element_type=jnp.float32) + bqkv_ref[...]   # (B*T, 3E)
    mask = mask_ref[...]                                           # additive 0 / -1e30

    ctxs = []
    for hh in range(NUM_HEADS):                                    # unrolled heads
        lo = hh * HEAD_DIM
        hi = lo + HEAD_DIM
        qh = qkv[:, lo:hi]                                         # 1/sqrt(d) pre-folded into W_q
        kh = qkv[:, POOL_HIDDEN + lo:POOL_HIDDEN + hi]
        vh = qkv[:, 2 * POOL_HIDDEN + lo:2 * POOL_HIDDEN + hi]
        s = jax.lax.dot_general(qh, kh, (((1,), (1,)), ((), ())),
                                preferred_element_type=jnp.float32) + mask
        s = s - jnp.max(s, axis=-1, keepdims=True)
        p = jnp.exp(s)
        rowsum = jnp.sum(p, axis=-1, keepdims=True)                # (B*T, 1)
        ctx = jnp.dot(p, vh, preferred_element_type=jnp.float32)   # unnormalized ctx
        # Deferred softmax normalization: EUP reciprocal + one Newton step
        # (full f32 accuracy, ~1 vreg of extra work) applied to the small ctx.
        inv = pl.reciprocal(rowsum, approx=True)
        inv = inv * (2.0 - rowsum * inv)
        ctxs.append(ctx * inv)
    ctx = jnp.concatenate(ctxs, axis=-1)                           # (B*T, E)

    # Single K=E matmul against the folded out_proj @ final_linear weight.
    out = jnp.dot(ctx, wof_ref[...],
                  preferred_element_type=jnp.float32) + bof_ref[...]
    o_ref[...] = out.reshape(BATCH, SEQ, OUT_PAD)                  # lane-dense store


# --------------------------- wrapper -------------------------------------------
_NUM_KERNEL_INPUTS = 10
_vmem = pl.BlockSpec(memory_space=pltpu.MemorySpace.VMEM)          # whole array in VMEM


@jax.jit
def prosody_encoder_forward(x, kernel_args):
    out_pad = pl.pallas_call(
        fused_prosody_kernel,
        out_shape=jax.ShapeDtypeStruct((BATCH, SEQ, OUT_PAD), jnp.float32),
        in_specs=[_vmem] * _NUM_KERNEL_INPUTS,
        out_specs=_vmem,
        scratch_shapes=[pltpu.VMEM((BATCH, SEQ + 2 * PAD, HIDDEN), jnp.float32)],
    )(x, *kernel_args)
    return out_pad[..., :OUTPUT_DIM]


# --------------------------- parameters ---------------------------------------
def make_params(key):
    keys = iter(jax.random.split(key, 64))

    def nrm(shape, scale=0.1):
        return scale * jax.random.normal(next(keys), shape, jnp.float32)

    def conv_params(cin, cout):
        # weight layout (K, Cin, Cout): out[l, o] = sum_{k,c} x_pad[l+k, c] * w[k, c, o]
        return dict(w=nrm((KSIZE, cin, cout), 0.1),
                    b=nrm((cout,), 0.05),
                    g=1.0 + nrm((SEQ,), 0.1),
                    beta=nrm((SEQ,), 0.05))

    return dict(
        init=conv_params(INPUT_DIM, HIDDEN),
        blocks=[[conv_params(HIDDEN, HIDDEN) for _ in range(NUM_CONV_PER_BLOCK)]
                for _ in range(NUM_RES_BLOCKS)],
        attn=dict(
            wq=nrm((HIDDEN, POOL_HIDDEN)), bq=nrm((POOL_HIDDEN,), 0.05),
            wk=nrm((HIDDEN, POOL_HIDDEN)), bk=nrm((POOL_HIDDEN,), 0.05),
            wv=nrm((HIDDEN, POOL_HIDDEN)), bv=nrm((POOL_HIDDEN,), 0.05),
            iwq=nrm((POOL_HIDDEN, POOL_HIDDEN)), ibq=nrm((POOL_HIDDEN,), 0.05),
            iwk=nrm((POOL_HIDDEN, POOL_HIDDEN)), ibk=nrm((POOL_HIDDEN,), 0.05),
            iwv=nrm((POOL_HIDDEN, POOL_HIDDEN)), ibv=nrm((POOL_HIDDEN,), 0.05),
            ow=nrm((POOL_HIDDEN, POOL_HIDDEN)), ob=nrm((POOL_HIDDEN,), 0.05),
            fw=nrm((POOL_HIDDEN, OUTPUT_DIM)), fb=nrm((OUTPUT_DIM,), 0.05),
        ),
    )


def prepare_kernel_args(params):
    """One-time (outside the hot path) reshape / stack / algebraic folding."""
    p0 = params["init"]
    # Zero-pad the initial conv's input channels to HIDDEN so every conv layer
    # is structurally identical (the scratch's extra channels are zero).
    w0 = jnp.pad(p0["w"], ((0, 0), (0, HIDDEN - INPUT_DIM), (0, 0)))
    convs = [{**p0, "w": w0}] + [p for blk in params["blocks"] for p in blk]

    wc = jnp.stack([p["w"] for p in convs])                       # (5, K, HIDDEN, HIDDEN)
    bc = jnp.stack([p["b"].reshape(1, HIDDEN) for p in convs])    # (5, 1, HIDDEN)
    gc = jnp.stack([p["g"].reshape(SEQ, 1) for p in convs])       # (5, SEQ, 1)
    bec = jnp.stack([p["beta"].reshape(SEQ, 1) for p in convs])   # (5, SEQ, 1)

    a = params["attn"]
    scale = 1.0 / (HEAD_DIM ** 0.5)
    # Fold query/key/value linear -> MHA in-projection (no nonlinearity between);
    # also fold the 1/sqrt(head_dim) attention scale into the Q columns + bias.
    wq_eff = (a["wq"] @ a["iwq"]) * scale
    bq_eff = (a["bq"] @ a["iwq"] + a["ibq"]) * scale
    wk_eff = a["wk"] @ a["iwk"]; bk_eff = a["bk"] @ a["iwk"] + a["ibk"]
    wv_eff = a["wv"] @ a["iwv"]; bv_eff = a["bv"] @ a["iwv"] + a["ibv"]
    wqkv = jnp.concatenate([wq_eff, wk_eff, wv_eff], axis=1)      # (HIDDEN, 3E)
    bqkv = jnp.concatenate([bq_eff, bk_eff, bv_eff]).reshape(1, 3 * POOL_HIDDEN)

    # Fold MHA out_proj -> final_linear, pad output lanes to 128 (lane-dense store).
    wof = a["ow"] @ a["fw"]                                       # (E, OUTPUT_DIM)
    bof = a["ob"] @ a["fw"] + a["fb"]                             # (OUTPUT_DIM,)
    wof = jnp.pad(wof, ((0, 0), (0, OUT_PAD - OUTPUT_DIM)))
    bof = jnp.pad(bof, (0, OUT_PAD - OUTPUT_DIM)).reshape(1, OUT_PAD)

    # Additive block-diagonal attention mask (batches don't attend to each other).
    n = BATCH * SEQ
    bid = jnp.arange(n) // SEQ
    mask = jnp.where(bid[:, None] == bid[None, :], 0.0, -1e30).astype(jnp.float32)

    return (wc, bc, gc, bec, wqkv, bqkv, wof, bof, mask)


# --------------------------- pure-JAX reference (unfolded) ---------------------
def ref_forward(x, params):
    def conv_ln(h, p):
        w, b, g, be = p["w"], p["b"], p["g"], p["beta"]
        hp = jnp.pad(h, ((0, 0), (PAD, PAD), (0, 0)))
        acc = jnp.zeros((h.shape[0], SEQ, w.shape[2]), jnp.float32) + b[None, None, :]
        for k in range(KSIZE):
            acc = acc + jnp.einsum("blc,co->blo", hp[:, k:k + SEQ, :], w[k])
        acc = jnp.maximum(acc, 0.0)
        mean = jnp.mean(acc, axis=1, keepdims=True)
        var = jnp.mean((acc - mean) ** 2, axis=1, keepdims=True)
        return (acc - mean) / jnp.sqrt(var + LN_EPS) * g[None, :, None] + be[None, :, None]

    h = conv_ln(x, params["init"])
    for block in params["blocks"]:
        r = h
        for p in block:
            h = conv_ln(h, p)
        h = h + r

    a = params["attn"]
    q = h @ a["wq"] + a["bq"]
    k = h @ a["wk"] + a["bk"]
    v = h @ a["wv"] + a["bv"]
    q2 = q @ a["iwq"] + a["ibq"]
    k2 = k @ a["iwk"] + a["ibk"]
    v2 = v @ a["iwv"] + a["ibv"]
    B, T, E = q2.shape
    hd = E // NUM_HEADS

    def split(z):
        return z.reshape(B, T, NUM_HEADS, hd).transpose(0, 2, 1, 3)

    qh, kh, vh = split(q2), split(k2), split(v2)
    s = jnp.einsum("bhtd,bhsd->bhts", qh, kh) / (hd ** 0.5)
    pmat = jax.nn.softmax(s, axis=-1)
    ctx = jnp.einsum("bhts,bhsd->bhtd", pmat, vh).transpose(0, 2, 1, 3).reshape(B, T, E)
    out = ctx @ a["ow"] + a["ob"]
    return out @ a["fw"] + a["fb"]


# --------------------------------- main ---------------------------------------
if __name__ == "__main__":
    key = jax.random.PRNGKey(0)
    kx, kp = jax.random.split(key)
    x = jax.random.normal(kx, (BATCH, SEQ, INPUT_DIM), jnp.float32)
    params = make_params(kp)
    kernel_args = prepare_kernel_args(params)

    y = prosody_encoder_forward(x, kernel_args)
    y = jax.block_until_ready(y)
    assert y.shape == (BATCH, SEQ, OUTPUT_DIM)

    y_ref = ref_forward(x, params)
    np.testing.assert_allclose(np.asarray(y), np.asarray(y_ref), rtol=1e-3, atol=1e-4)
    print("KERNEL_OK")
</pallas_src>

<mosaic_0001>
module attributes {stable_mosaic.version = 11 : i64} {
  func.func @fused_prosody_kernel(%arg0: memref<2x32x16xf32, #tpu.memory_space<vmem>>, %arg1: memref<5x5x32x32xf32, #tpu.memory_space<vmem>>, %arg2: memref<5x1x32xf32, #tpu.memory_space<vmem>>, %arg3: memref<5x32x1xf32, #tpu.memory_space<vmem>>, %arg4: memref<5x32x1xf32, #tpu.memory_space<vmem>>, %arg5: memref<32x192xf32, #tpu.memory_space<vmem>>, %arg6: memref<1x192xf32, #tpu.memory_space<vmem>>, %arg7: memref<64x128xf32, #tpu.memory_space<vmem>>, %arg8: memref<1x128xf32, #tpu.memory_space<vmem>>, %arg9: memref<64x64xf32, #tpu.memory_space<vmem>>, %arg10: memref<2x32x128xf32, #tpu.memory_space<vmem>>, %arg11: memref<2x36x32xf32, #tpu.memory_space<vmem>>) attributes {dimension_semantics = [], scalar_prefetch = 0 : i64, scratch_operands = 1 : i64, tpu.core_type = #tpu.core_type<tc>} {
    %cst = arith.constant 0.000000e+00 : f32
    %0 = vector.broadcast %cst : f32 to vector<2x36x32xf32>
    %c0 = arith.constant 0 : index
    %c0_0 = arith.constant 0 : index
    %c0_1 = arith.constant 0 : index
    %1 = vector.load %arg11[%c0, %c0_0, %c0_1] : memref<2x36x32xf32, #tpu.memory_space<vmem>>, vector<2x36x32xf32>
    tpu.vector_store %arg11[%c0, %c0_0, %c0_1], %0 {strides = array<i32>} : memref<2x36x32xf32, #tpu.memory_space<vmem>>, vector<2x36x32xf32>,
    %c0_2 = arith.constant 0 : index
    %c0_3 = arith.constant 0 : index
    %c0_4 = arith.constant 0 : index
    %2 = vector.load %arg0[%c0_2, %c0_3, %c0_4] : memref<2x32x16xf32, #tpu.memory_space<vmem>>, vector<2x32x16xf32>
    %c0_5 = arith.constant 0 : index
    %c2 = arith.constant 2 : index
    %c0_6 = arith.constant 0 : index
    %3 = vector.load %arg11[%c0_5, %c2, %c0_6] : memref<2x36x32xf32, #tpu.memory_space<vmem>>, vector<2x32x16xf32>
    tpu.vector_store %arg11[%c0_5, %c2, %c0_6], %2 {strides = array<i32>} : memref<2x36x32xf32, #tpu.memory_space<vmem>>, vector<2x32x16xf32>,
    %c0_7 = arith.constant 0 : index
    %c0_8 = arith.constant 0 : index
    %c0_9 = arith.constant 0 : index
    %4 = vector.load %arg11[%c0_7, %c0_8, %c0_9] : memref<2x36x32xf32, #tpu.memory_space<vmem>>, vector<2x32x32xf32>
    %5 = vector.shape_cast %4 : vector<2x32x32xf32> to vector<64x32xf32>
    %c0_10 = arith.constant 0 : index
    %c0_11 = arith.constant 0 : index
    %c0_12 = arith.constant 0 : index
    %c0_13 = arith.constant 0 : index
    %6 = vector.load %arg1[%c0_10, %c0_11, %c0_12, %c0_13] : memref<5x5x32x32xf32, #tpu.memory_space<vmem>>, vector<1x1x32x32xf32>
    %7 = vector.shape_cast %6 : vector<1x1x32x32xf32> to vector<32x32xf32>
    %cst_14 = arith.constant dense<0.000000e+00> : vector<64x32xf32>
    %8 = tpu.matmul %5, %7, %cst_14 {dimension_numbers = #tpu.dot_dimension_numbers<[1], [0], [0], [1], [0, 0, 1, 1], [], []>} : vector<64x32xf32>, vector<32x32xf32>, vector<64x32xf32> -> vector<64x32xf32>
    %c0_15 = arith.constant 0 : index
    %c1 = arith.constant 1 : index
    %c0_16 = arith.constant 0 : index
    %9 = vector.load %arg11[%c0_15, %c1, %c0_16] : memref<2x36x32xf32, #tpu.memory_space<vmem>>, vector<2x32x32xf32>
    %10 = vector.shape_cast %9 : vector<2x32x32xf32> to vector<64x32xf32>
    %c0_17 = arith.constant 0 : index
    %c1_18 = arith.constant 1 : index
    %c0_19 = arith.constant 0 : index
    %c0_20 = arith.constant 0 : index
    %11 = vector.load %arg1[%c0_17, %c1_18, %c0_19, %c0_20] : memref<5x5x32x32xf32, #tpu.memory_space<vmem>>, vector<1x1x32x32xf32>
    %12 = vector.shape_cast %11 : vector<1x1x32x32xf32> to vector<32x32xf32>
    %cst_21 = arith.constant dense<0.000000e+00> : vector<64x32xf32>
    %13 = tpu.matmul %10, %12, %cst_21 {dimension_numbers = #tpu.dot_dimension_numbers<[1], [0], [0], [1], [0, 0, 1, 1], [], []>} : vector<64x32xf32>, vector<32x32xf32>, vector<64x32xf32> -> vector<64x32xf32>
    %c0_22 = arith.constant 0 : index
    %c2_23 = arith.constant 2 : index
    %c0_24 = arith.constant 0 : index
    %14 = vector.load %arg11[%c0_22, %c2_23, %c0_24] : memref<2x36x32xf32, #tpu.memory_space<vmem>>, vector<2x32x32xf32>
    %15 = vector.shape_cast %14 : vector<2x32x32xf32> to vector<64x32xf32>
    %c0_25 = arith.constant 0 : index
    %c2_26 = arith.constant 2 : index
    %c0_27 = arith.constant 0 : index
    %c0_28 = arith.constant 0 : index
    %16 = vector.load %arg1[%c0_25, %c2_26, %c0_27, %c0_28] : memref<5x5x32x32xf32, #tpu.memory_space<vmem>>, vector<1x1x32x32xf32>
    %17 = vector.shape_cast %16 : vector<1x1x32x32xf32> to vector<32x32xf32>
    %cst_29 = arith.constant dense<0.000000e+00> : vector<64x32xf32>
    %18 = tpu.matmul %15, %17, %cst_29 {dimension_numbers = #tpu.dot_dimension_numbers<[1], [0], [0], [1], [0, 0, 1, 1], [], []>} : vector<64x32xf32>, vector<32x32xf32>, vector<64x32xf32> -> vector<64x32xf32>
    %c0_30 = arith.constant 0 : index
    %c3 = arith.constant 3 : index
    %c0_31 = arith.constant 0 : index
    %19 = vector.load %arg11[%c0_30, %c3, %c0_31] : memref<2x36x32xf32, #tpu.memory_space<vmem>>, vector<2x32x32xf32>
    %20 = vector.shape_cast %19 : vector<2x32x32xf32> to vector<64x32xf32>
    %c0_32 = arith.constant 0 : index
    %c3_33 = arith.constant 3 : index
    %c0_34 = arith.constant 0 : index
    %c0_35 = arith.constant 0 : index
    %21 = vector.load %arg1[%c0_32, %c3_33, %c0_34, %c0_35] : memref<5x5x32x32xf32, #tpu.memory_space<vmem>>, vector<1x1x32x32xf32>
    %22 = vector.shape_cast %21 : vector<1x1x32x32xf32> to vector<32x32xf32>
    %cst_36 = arith.constant dense<0.000000e+00> : vector<64x32xf32>
    %23 = tpu.matmul %20, %22, %cst_36 {dimension_numbers = #tpu.dot_dimension_numbers<[1], [0], [0], [1], [0, 0, 1, 1], [], []>} : vector<64x32xf32>, vector<32x32xf32>, vector<64x32xf32> -> vector<64x32xf32>
    %c0_37 = arith.constant 0 : index
    %c4 = arith.constant 4 : index
    %c0_38 = arith.constant 0 : index
    %24 = vector.load %arg11[%c0_37, %c4, %c0_38] : memref<2x36x32xf32, #tpu.memory_space<vmem>>, vector<2x32x32xf32>
    %25 = vector.shape_cast %24 : vector<2x32x32xf32> to vector<64x32xf32>
    %c0_39 = arith.constant 0 : index
    %c4_40 = arith.constant 4 : index
    %c0_41 = arith.constant 0 : index
    %c0_42 = arith.constant 0 : index
    %26 = vector.load %arg1[%c0_39, %c4_40, %c0_41, %c0_42] : memref<5x5x32x32xf32, #tpu.memory_space<vmem>>, vector<1x1x32x32xf32>
    %27 = vector.shape_cast %26 : vector<1x1x32x32xf32> to vector<32x32xf32>
    %cst_43 = arith.constant dense<0.000000e+00> : vector<64x32xf32>
    %28 = tpu.matmul %25, %27, %cst_43 {dimension_numbers = #tpu.dot_dimension_numbers<[1], [0], [0], [1], [0, 0, 1, 1], [], []>} : vector<64x32xf32>, vector<32x32xf32>, vector<64x32xf32> -> vector<64x32xf32>
    %29 = arith.addf %8, %13 : vector<64x32xf32>
    %30 = arith.addf %18, %23 : vector<64x32xf32>
    %31 = arith.addf %29, %30 : vector<64x32xf32>
    %32 = arith.addf %31, %28 : vector<64x32xf32>
    %33 = vector.shape_cast %32 : vector<64x32xf32> to vector<2x32x32xf32>
    %c0_44 = arith.constant 0 : index
    %c0_45 = arith.constant 0 : index
    %c0_46 = arith.constant 0 : index
    %34 = vector.load %arg2[%c0_44, %c0_45, %c0_46] : memref<5x1x32xf32, #tpu.memory_space<vmem>>, vector<1x1x32xf32>
    %35 = vector.shape_cast %34 : vector<1x1x32xf32> to vector<1x32xf32>
    %36 = vector.shape_cast %35 : vector<1x32xf32> to vector<1x1x32xf32>
    %37 = vector.broadcast %36 : vector<1x1x32xf32> to vector<2x32x32xf32>
    %38 = arith.addf %33, %37 : vector<2x32x32xf32>
    %cst_47 = arith.constant 0.000000e+00 : f32
    %39 = vector.broadcast %cst_47 : f32 to vector<2x32x32xf32>
    %40 = arith.maximumf %38, %39 : vector<2x32x32xf32>
    %41 = arith.mulf %40, %40 : vector<2x32x32xf32>
    %42 = tpu.concatenate %40, %41 in 2 : vector<2x32x32xf32>, vector<2x32x32xf32> -> vector<2x32x64xf32>
    %cst_48 = arith.constant dense<0.000000e+00> : vector<2x64xf32>
    %43 = vector.multi_reduction <add>, %42, %cst_48 [1] : vector<2x32x64xf32> to vector<2x64xf32>
    %44 = vector.shape_cast %43 : vector<2x64xf32> to vector<2x1x64xf32>
    %cst_49 = arith.constant 3.125000e-02 : f32
    %45 = vector.broadcast %cst_49 : f32 to vector<2x1x64xf32>
    %46 = arith.mulf %44, %45 : vector<2x1x64xf32>
    %47 = vector.extract_strided_slice %46 {offsets = [0, 0, 0], sizes = [2, 1, 32], strides = [1, 1, 1]} : vector<2x1x64xf32> to vector<2x1x32xf32>
    %48 = vector.extract_strided_slice %46 {offsets = [0, 0, 32], sizes = [2, 1, 32], strides = [1, 1, 1]} : vector<2x1x64xf32> to vector<2x1x32xf32>
    %49 = arith.mulf %47, %47 : vector<2x1x32xf32>
    %50 = arith.subf %48, %49 : vector<2x1x32xf32>
    %51 = vector.broadcast %47 : vector<2x1x32xf32> to vector<2x32x32xf32>
    %52 = arith.subf %40, %51 : vector<2x32x32xf32>
    %cst_50 = arith.constant 9.99999974E-6 : f32
    %53 = vector.broadcast %cst_50 : f32 to vector<2x1x32xf32>
    %54 = arith.addf %50, %53 : vector<2x1x32xf32>
    %55 = math.rsqrt %54 : vector<2x1x32xf32>
    %56 = vector.broadcast %55 : vector<2x1x32xf32> to vector<2x32x32xf32>
    %57 = arith.mulf %52, %56 : vector<2x32x32xf32>
    %c0_51 = arith.constant 0 : index
    %c0_52 = arith.constant 0 : index
    %c0_53 = arith.constant 0 : index
    %58 = vector.load %arg3[%c0_51, %c0_52, %c0_53] : memref<5x32x1xf32, #tpu.memory_space<vmem>>, vector<1x32x1xf32>
    %59 = vector.shape_cast %58 : vector<1x32x1xf32> to vector<32x1xf32>
    %60 = vector.shape_cast %59 : vector<32x1xf32> to vector<1x32x1xf32>
    %61 = vector.broadcast %60 : vector<1x32x1xf32> to vector<2x32x32xf32>
    %62 = arith.mulf %57, %61 : vector<2x32x32xf32>
    %c0_54 = arith.constant 0 : index
    %c0_55 = arith.constant 0 : index
    %c0_56 = arith.constant 0 : index
    %63 = vector.load %arg4[%c0_54, %c0_55, %c0_56] : memref<5x32x1xf32, #tpu.memory_space<vmem>>, vector<1x32x1xf32>
    %64 = vector.shape_cast %63 : vector<1x32x1xf32> to vector<32x1xf32>
    %65 = vector.shape_cast %64 : vector<32x1xf32> to vector<1x32x1xf32>
    %66 = vector.broadcast %65 : vector<1x32x1xf32> to vector<2x32x32xf32>
    %67 = arith.addf %62, %66 : vector<2x32x32xf32>
    %c0_57 = arith.constant 0 : index
    %c2_58 = arith.constant 2 : index
    %c0_59 = arith.constant 0 : index
    %68 = vector.load %arg11[%c0_57, %c2_58, %c0_59] : memref<2x36x32xf32, #tpu.memory_space<vmem>>, vector<2x32x32xf32>
    tpu.vector_store %arg11[%c0_57, %c2_58, %c0_59], %67 {strides = array<i32>} : memref<2x36x32xf32, #tpu.memory_space<vmem>>, vector<2x32x32xf32>,
    %c0_60 = arith.constant 0 : index
    %c0_61 = arith.constant 0 : index
    %c0_62 = arith.constant 0 : index
    %69 = vector.load %arg11[%c0_60, %c0_61, %c0_62] : memref<2x36x32xf32, #tpu.memory_space<vmem>>, vector<2x32x32xf32>
    %70 = vector.shape_cast %69 : vector<2x32x32xf32> to vector<64x32xf32>
    %c1_63 = arith.constant 1 : index
    %c0_64 = arith.constant 0 : index
    %c0_65 = arith.constant 0 : index
    %c0_66 = arith.constant 0 : index
    %71 = vector.load %arg1[%c1_63, %c0_64, %c0_65, %c0_66] : memref<5x5x32x32xf32, #tpu.memory_space<vmem>>, vector<1x1x32x32xf32>
    %72 = vector.shape_cast %71 : vector<1x1x32x32xf32> to vector<32x32xf32>
    %cst_67 = arith.constant dense<0.000000e+00> : vector<64x32xf32>
    %73 = tpu.matmul %70, %72, %cst_67 {dimension_numbers = #tpu.dot_dimension_numbers<[1], [0], [0], [1], [0, 0, 1, 1], [], []>} : vector<64x32xf32>, vector<32x32xf32>, vector<64x32xf32> -> vector<64x32xf32>
    %c0_68 = arith.constant 0 : index
    %c1_69 = arith.constant 1 : index
    %c0_70 = arith.constant 0 : index
    %74 = vector.load %arg11[%c0_68, %c1_69, %c0_70] : memref<2x36x32xf32, #tpu.memory_space<vmem>>, vector<2x32x32xf32>
    %75 = vector.shape_cast %74 : vector<2x32x32xf32> to vector<64x32xf32>
    %c1_71 = arith.constant 1 : index
    %c1_72 = arith.constant 1 : index
    %c0_73 = arith.constant 0 : index
    %c0_74 = arith.constant 0 : index
    %76 = vector.load %arg1[%c1_71, %c1_72, %c0_73, %c0_74] : memref<5x5x32x32xf32, #tpu.memory_space<vmem>>, vector<1x1x32x32xf32>
    %77 = vector.shape_cast %76 : vector<1x1x32x32xf32> to vector<32x32xf32>
    %cst_75 = arith.constant dense<0.000000e+00> : vector<64x32xf32>
    %78 = tpu.matmul %75, %77, %cst_75 {dimension_numbers = #tpu.dot_dimension_numbers<[1], [0], [0], [1], [0, 0, 1, 1], [], []>} : vector<64x32xf32>, vector<32x32xf32>, vector<64x32xf32> -> vector<64x32xf32>
    %c0_76 = arith.constant 0 : index
    %c2_77 = arith.constant 2 : index
    %c0_78 = arith.constant 0 : index
    %79 = vector.load %arg11[%c0_76, %c2_77, %c0_78] : memref<2x36x32xf32, #tpu.memory_space<vmem>>, vector<2x32x32xf32>
    %80 = vector.shape_cast %79 : vector<2x32x32xf32> to vector<64x32xf32>
    %c1_79 = arith.constant 1 : index
    %c2_80 = arith.constant 2 : index
    %c0_81 = arith.constant 0 : index
    %c0_82 = arith.constant 0 : index
    %81 = vector.load %arg1[%c1_79, %c2_80, %c0_81, %c0_82] : memref<5x5x32x32xf32, #tpu.memory_space<vmem>>, vector<1x1x32x32xf32>
    %82 = vector.shape_cast %81 : vector<1x1x32x32xf32> to vector<32x32xf32>
    %cst_83 = arith.constant dense<0.000000e+00> : vector<64x32xf32>
    %83 = tpu.matmul %80, %82, %cst_83 {dimension_numbers = #tpu.dot_dimension_numbers<[1], [0], [0], [1], [0, 0, 1, 1], [], []>} : vector<64x32xf32>, vector<32x32xf32>, vector<64x32xf32> -> vector<64x32xf32>
    %c0_84 = arith.constant 0 : index
    %c3_85 = arith.constant 3 : index
    %c0_86 = arith.constant 0 : index
    %84 = vector.load %arg11[%c0_84, %c3_85, %c0_86] : memref<2x36x32xf32, #tpu.memory_space<vmem>>, vector<2x32x32xf32>
    %85 = vector.shape_cast %84 : vector<2x32x32xf32> to vector<64x32xf32>
    %c1_87 = arith.constant 1 : index
    %c3_88 = arith.constant 3 : index
    %c0_89 = arith.constant 0 : index
    %c0_90 = arith.constant 0 : index
    %86 = vector.load %arg1[%c1_87, %c3_88, %c0_89, %c0_90] : memref<5x5x32x32xf32, #tpu.memory_space<vmem>>, vector<1x1x32x32xf32>
    %87 = vector.shape_cast %86 : vector<1x1x32x32xf32> to vector<32x32xf32>
    %cst_91 = arith.constant dense<0.000000e+00> : vector<64x32xf32>
    %88 = tpu.matmul %85, %87, %cst_91 {dimension_numbers = #tpu.dot_dimension_numbers<[1], [0], [0], [1], [0, 0, 1, 1], [], []>} : vector<64x32xf32>, vector<32x32xf32>, vector<64x32xf32> -> vector<64x32xf32>
    %c0_92 = arith.constant 0 : index
    %c4_93 = arith.constant 4 : index
    %c0_94 = arith.constant 0 : index
    %89 = vector.load %arg11[%c0_92, %c4_93, %c0_94] : memref<2x36x32xf32, #tpu.memory_space<vmem>>, vector<2x32x32xf32>
    %90 = vector.shape_cast %89 : vector<2x32x32xf32> to vector<64x32xf32>
    %c1_95 = arith.constant 1 : index
    %c4_96 = arith.constant 4 : index
    %c0_97 = arith.constant 0 : index
    %c0_98 = arith.constant 0 : index
    %91 = vector.load %arg1[%c1_95, %c4_96, %c0_97, %c0_98] : memref<5x5x32x32xf32, #tpu.memory_space<vmem>>, vector<1x1x32x32xf32>
    %92 = vector.shape_cast %91 : vector<1x1x32x32xf32> to vector<32x32xf32>
    %cst_99 = arith.constant dense<0.000000e+00> : vector<64x32xf32>
    %93 = tpu.matmul %90, %92, %cst_99 {dimension_numbers = #tpu.dot_dimension_numbers<[1], [0], [0], [1], [0, 0, 1, 1], [], []>} : vector<64x32xf32>, vector<32x32xf32>, vector<64x32xf32> -> vector<64x32xf32>
    %94 = arith.addf %73, %78 : vector<64x32xf32>
    %95 = arith.addf %83, %88 : vector<64x32xf32>
    %96 = arith.addf %94, %95 : vector<64x32xf32>
    %97 = arith.addf %96, %93 : vector<64x32xf32>
    %98 = vector.shape_cast %97 : vector<64x32xf32> to vector<2x32x32xf32>
    %c1_100 = arith.constant 1 : index
    %c0_101 = arith.constant 0 : index
    %c0_102 = arith.constant 0 : index
    %99 = vector.load %arg2[%c1_100, %c0_101, %c0_102] : memref<5x1x32xf32, #tpu.memory_space<vmem>>, vector<1x1x32xf32>
    %100 = vector.shape_cast %99 : vector<1x1x32xf32> to vector<1x32xf32>
    %101 = vector.shape_cast %100 : vector<1x32xf32> to vector<1x1x32xf32>
    %102 = vector.broadcast %101 : vector<1x1x32xf32> to vector<2x32x32xf32>
    %103 = arith.addf %98, %102 : vector<2x32x32xf32>
    %cst_103 = arith.constant 0.000000e+00 : f32
    %104 = vector.broadcast %cst_103 : f32 to vector<2x32x32xf32>
    %105 = arith.maximumf %103, %104 : vector<2x32x32xf32>
    %106 = arith.mulf %105, %105 : vector<2x32x32xf32>
    %107 = tpu.concatenate %105, %106 in 2 : vector<2x32x32xf32>, vector<2x32x32xf32> -> vector<2x32x64xf32>
    %cst_104 = arith.constant dense<0.000000e+00> : vector<2x64xf32>
    %108 = vector.multi_reduction <add>, %107, %cst_104 [1] : vector<2x32x64xf32> to vector<2x64xf32>
    %109 = vector.shape_cast %108 : vector<2x64xf32> to vector<2x1x64xf32>
    %cst_105 = arith.constant 3.125000e-02 : f32
    %110 = vector.broadcast %cst_105 : f32 to vector<2x1x64xf32>
    %111 = arith.mulf %109, %110 : vector<2x1x64xf32>
    %112 = vector.extract_strided_slice %111 {offsets = [0, 0, 0], sizes = [2, 1, 32], strides = [1, 1, 1]} : vector<2x1x64xf32> to vector<2x1x32xf32>
    %113 = vector.extract_strided_slice %111 {offsets = [0, 0, 32], sizes = [2, 1, 32], strides = [1, 1, 1]} : vector<2x1x64xf32> to vector<2x1x32xf32>
    %114 = arith.mulf %112, %112 : vector<2x1x32xf32>
    %115 = arith.subf %113, %114 : vector<2x1x32xf32>
    %116 = vector.broadcast %112 : vector<2x1x32xf32> to vector<2x32x32xf32>
    %117 = arith.subf %105, %116 : vector<2x32x32xf32>
    %cst_106 = arith.constant 9.99999974E-6 : f32
    %118 = vector.broadcast %cst_106 : f32 to vector<2x1x32xf32>
    %119 = arith.addf %115, %118 : vector<2x1x32xf32>
    %120 = math.rsqrt %119 : vector<2x1x32xf32>
    %121 = vector.broadcast %120 : vector<2x1x32xf32> to vector<2x32x32xf32>
    %122 = arith.mulf %117, %121 : vector<2x32x32xf32>
    %c1_107 = arith.constant 1 : index
    %c0_108 = arith.constant 0 : index
    %c0_109 = arith.constant 0 : index
    %123 = vector.load %arg3[%c1_107, %c0_108, %c0_109] : memref<5x32x1xf32, #tpu.memory_space<vmem>>, vector<1x32x1xf32>
    %124 = vector.shape_cast %123 : vector<1x32x1xf32> to vector<32x1xf32>
    %125 = vector.shape_cast %124 : vector<32x1xf32> to vector<1x32x1xf32>
    %126 = vector.broadcast %125 : vector<1x32x1xf32> to vector<2x32x32xf32>
    %127 = arith.mulf %122, %126 : vector<2x32x32xf32>
    %c1_110 = arith.constant 1 : index
    %c0_111 = arith.constant 0 : index
    %c0_112 = arith.constant 0 : index
    %128 = vector.load %arg4[%c1_110, %c0_111, %c0_112] : memref<5x32x1xf32, #tpu.memory_space<vmem>>, vector<1x32x1xf32>
    %129 = vector.shape_cast %128 : vector<1x32x1xf32> to vector<32x1xf32>
    %130 = vector.shape_cast %129 : vector<32x1xf32> to vector<1x32x1xf32>
    %131 = vector.broadcast %130 : vector<1x32x1xf32> to vector<2x32x32xf32>
    %132 = arith.addf %127, %131 : vector<2x32x32xf32>
    %c0_113 = arith.constant 0 : index
    %c2_114 = arith.constant 2 : index
    %c0_115 = arith.constant 0 : index
    %133 = vector.load %arg11[%c0_113, %c2_114, %c0_115] : memref<2x36x32xf32, #tpu.memory_space<vmem>>, vector<2x32x32xf32>
    tpu.vector_store %arg11[%c0_113, %c2_114, %c0_115], %132 {strides = array<i32>} : memref<2x36x32xf32, #tpu.memory_space<vmem>>, vector<2x32x32xf32>,
    %c0_116 = arith.constant 0 : index
    %c0_117 = arith.constant 0 : index
    %c0_118 = arith.constant 0 : index
    %134 = vector.load %arg11[%c0_116, %c0_117, %c0_118] : memref<2x36x32xf32, #tpu.memory_space<vmem>>, vector<2x32x32xf32>
    %135 = vector.shape_cast %134 : vector<2x32x32xf32> to vector<64x32xf32>
    %c2_119 = arith.constant 2 : index
    %c0_120 = arith.constant 0 : index
    %c0_121 = arith.constant 0 : index
    %c0_122 = arith.constant 0 : index
    %136 = vector.load %arg1[%c2_119, %c0_120, %c0_121, %c0_122] : memref<5x5x32x32xf32, #tpu.memory_space<vmem>>, vector<1x1x32x32xf32>
    %137 = vector.shape_cast %136 : vector<1x1x32x32xf32> to vector<32x32xf32>
    %cst_123 = arith.constant dense<0.000000e+00> : vector<64x32xf32>
    %138 = tpu.matmul %135, %137, %cst_123 {dimension_numbers = #tpu.dot_dimension_numbers<[1], [0], [0], [1], [0, 0, 1, 1], [], []>} : vector<64x32xf32>, vector<32x32xf32>, vector<64x32xf32> -> vector<64x32xf32>
    %c0_124 = arith.constant 0 : index
    %c1_125 = arith.constant 1 : index
    %c0_126 = arith.constant 0 : index
    %139 = vector.load %arg11[%c0_124, %c1_125, %c0_126] : memref<2x36x32xf32, #tpu.memory_space<vmem>>, vector<2x32x32xf32>
    %140 = vector.shape_cast %139 : vector<2x32x32xf32> to vector<64x32xf32>
    %c2_127 = arith.constant 2 : index
    %c1_128 = arith.constant 1 : index
    %c0_129 = arith.constant 0 : index
    %c0_130 = arith.constant 0 : index
    %141 = vector.load %arg1[%c2_127, %c1_128, %c0_129, %c0_130] : memref<5x5x32x32xf32, #tpu.memory_space<vmem>>, vector<1x1x32x32xf32>
    %142 = vector.shape_cast %141 : vector<1x1x32x32xf32> to vector<32x32xf32>
    %cst_131 = arith.constant dense<0.000000e+00> : vector<64x32xf32>
    %143 = tpu.matmul %140, %142, %cst_131 {dimension_numbers = #tpu.dot_dimension_numbers<[1], [0], [0], [1], [0, 0, 1, 1], [], []>} : vector<64x32xf32>, vector<32x32xf32>, vector<64x32xf32> -> vector<64x32xf32>
    %c0_132 = arith.constant 0 : index
    %c2_133 = arith.constant 2 : index
    %c0_134 = arith.constant 0 : index
    %144 = vector.load %arg11[%c0_132, %c2_133, %c0_134] : memref<2x36x32xf32, #tpu.memory_space<vmem>>, vector<2x32x32xf32>
    %145 = vector.shape_cast %144 : vector<2x32x32xf32> to vector<64x32xf32>
    %c2_135 = arith.constant 2 : index
    %c2_136 = arith.constant 2 : index
    %c0_137 = arith.constant 0 : index
    %c0_138 = arith.constant 0 : index
    %146 = vector.load %arg1[%c2_135, %c2_136, %c0_137, %c0_138] : memref<5x5x32x32xf32, #tpu.memory_space<vmem>>, vector<1x1x32x32xf32>
    %147 = vector.shape_cast %146 : vector<1x1x32x32xf32> to vector<32x32xf32>
    %cst_139 = arith.constant dense<0.000000e+00> : vector<64x32xf32>
    %148 = tpu.matmul %145, %147, %cst_139 {dimension_numbers = #tpu.dot_dimension_numbers<[1], [0], [0], [1], [0, 0, 1, 1], [], []>} : vector<64x32xf32>, vector<32x32xf32>, vector<64x32xf32> -> vector<64x32xf32>
    %c0_140 = arith.constant 0 : index
    %c3_141 = arith.constant 3 : index
    %c0_142 = arith.constant 0 : index
    %149 = vector.load %arg11[%c0_140, %c3_141, %c0_142] : memref<2x36x32xf32, #tpu.memory_space<vmem>>, vector<2x32x32xf32>
    %150 = vector.shape_cast %149 : vector<2x32x32xf32> to vector<64x32xf32>
    %c2_143 = arith.constant 2 : index
    %c3_144 = arith.constant 3 : index
    %c0_145 = arith.constant 0 : index
    %c0_146 = arith.constant 0 : index
    %151 = vector.load %arg1[%c2_143, %c3_144, %c0_145, %c0_146] : memref<5x5x32x32xf32, #tpu.memory_space<vmem>>, vector<1x1x32x32xf32>
    %152 = vector.shape_cast %151 : vector<1x1x32x32xf32> to vector<32x32xf32>
    %cst_147 = arith.constant dense<0.000000e+00> : vector<64x32xf32>
    %153 = tpu.matmul %150, %152, %cst_147 {dimension_numbers = #tpu.dot_dimension_numbers<[1], [0], [0], [1], [0, 0, 1, 1], [], []>} : vector<64x32xf32>, vector<32x32xf32>, vector<64x32xf32> -> vector<64x32xf32>
    %c0_148 = arith.constant 0 : index
    %c4_149 = arith.constant 4 : index
    %c0_150 = arith.constant 0 : index
    %154 = vector.load %arg11[%c0_148, %c4_149, %c0_150] : memref<2x36x32xf32, #tpu.memory_space<vmem>>, vector<2x32x32xf32>
    %155 = vector.shape_cast %154 : vector<2x32x32xf32> to vector<64x32xf32>
    %c2_151 = arith.constant 2 : index
    %c4_152 = arith.constant 4 : index
    %c0_153 = arith.constant 0 : index
    %c0_154 = arith.constant 0 : index
    %156 = vector.load %arg1[%c2_151, %c4_152, %c0_153, %c0_154] : memref<5x5x32x32xf32, #tpu.memory_space<vmem>>, vector<1x1x32x32xf32>
    %157 = vector.shape_cast %156 : vector<1x1x32x32xf32> to vector<32x32xf32>
    %cst_155 = arith.constant dense<0.000000e+00> : vector<64x32xf32>
    %158 = tpu.matmul %155, %157, %cst_155 {dimension_numbers = #tpu.dot_dimension_numbers<[1], [0], [0], [1], [0, 0, 1, 1], [], []>} : vector<64x32xf32>, vector<32x32xf32>, vector<64x32xf32> -> vector<64x32xf32>
    %159 = arith.addf %138, %143 : vector<64x32xf32>
    %160 = arith.addf %148, %153 : vector<64x32xf32>
    %161 = arith.addf %159, %160 : vector<64x32xf32>
    %162 = arith.addf %161, %158 : vector<64x32xf32>
    %163 = vector.shape_cast %162 : vector<64x32xf32> to vector<2x32x32xf32>
    %c2_156 = arith.constant 2 : index
    %c0_157 = arith.constant 0 : index
    %c0_158 = arith.constant 0 : index
    %164 = vector.load %arg2[%c2_156, %c0_157, %c0_158] : memref<5x1x32xf32, #tpu.memory_space<vmem>>, vector<1x1x32xf32>
    %165 = vector.shape_cast %164 : vector<1x1x32xf32> to vector<1x32xf32>
    %166 = vector.shape_cast %165 : vector<1x32xf32> to vector<1x1x32xf32>
    %167 = vector.broadcast %166 : vector<1x1x32xf32> to vector<2x32x32xf32>
    %168 = arith.addf %163, %167 : vector<2x32x32xf32>
    %cst_159 = arith.constant 0.000000e+00 : f32
    %169 = vector.broadcast %cst_159 : f32 to vector<2x32x32xf32>
    %170 = arith.maximumf %168, %169 : vector<2x32x32xf32>
    %171 = arith.mulf %170, %170 : vector<2x32x32xf32>
    %172 = tpu.concatenate %170, %171 in 2 : vector<2x32x32xf32>, vector<2x32x32xf32> -> vector<2x32x64xf32>
    %cst_160 = arith.constant dense<0.000000e+00> : vector<2x64xf32>
    %173 = vector.multi_reduction <add>, %172, %cst_160 [1] : vector<2x32x64xf32> to vector<2x64xf32>
    %174 = vector.shape_cast %173 : vector<2x64xf32> to vector<2x1x64xf32>
    %cst_161 = arith.constant 3.125000e-02 : f32
    %175 = vector.broadcast %cst_161 : f32 to vector<2x1x64xf32>
    %176 = arith.mulf %174, %175 : vector<2x1x64xf32>
    %177 = vector.extract_strided_slice %176 {offsets = [0, 0, 0], sizes = [2, 1, 32], strides = [1, 1, 1]} : vector<2x1x64xf32> to vector<2x1x32xf32>
    %178 = vector.extract_strided_slice %176 {offsets = [0, 0, 32], sizes = [2, 1, 32], strides = [1, 1, 1]} : vector<2x1x64xf32> to vector<2x1x32xf32>
    %179 = arith.mulf %177, %177 : vector<2x1x32xf32>
    %180 = arith.subf %178, %179 : vector<2x1x32xf32>
    %181 = vector.broadcast %177 : vector<2x1x32xf32> to vector<2x32x32xf32>
    %182 = arith.subf %170, %181 : vector<2x32x32xf32>
    %cst_162 = arith.constant 9.99999974E-6 : f32
    %183 = vector.broadcast %cst_162 : f32 to vector<2x1x32xf32>
    %184 = arith.addf %180, %183 : vector<2x1x32xf32>
    %185 = math.rsqrt %184 : vector<2x1x32xf32>
    %186 = vector.broadcast %185 : vector<2x1x32xf32> to vector<2x32x32xf32>
    %187 = arith.mulf %182, %186 : vector<2x32x32xf32>
    %c2_163 = arith.constant 2 : index
    %c0_164 = arith.constant 0 : index
    %c0_165 = arith.constant 0 : index
    %188 = vector.load %arg3[%c2_163, %c0_164, %c0_165] : memref<5x32x1xf32, #tpu.memory_space<vmem>>, vector<1x32x1xf32>
    %189 = vector.shape_cast %188 : vector<1x32x1xf32> to vector<32x1xf32>
    %190 = vector.shape_cast %189 : vector<32x1xf32> to vector<1x32x1xf32>
    %191 = vector.broadcast %190 : vector<1x32x1xf32> to vector<2x32x32xf32>
    %192 = arith.mulf %187, %191 : vector<2x32x32xf32>
    %c2_166 = arith.constant 2 : index
    %c0_167 = arith.constant 0 : index
    %c0_168 = arith.constant 0 : index
    %193 = vector.load %arg4[%c2_166, %c0_167, %c0_168] : memref<5x32x1xf32, #tpu.memory_space<vmem>>, vector<1x32x1xf32>
    %194 = vector.shape_cast %193 : vector<1x32x1xf32> to vector<32x1xf32>
    %195 = vector.shape_cast %194 : vector<32x1xf32> to vector<1x32x1xf32>
    %196 = vector.broadcast %195 : vector<1x32x1xf32> to vector<2x32x32xf32>
    %197 = arith.addf %192, %196 : vector<2x32x32xf32>
    %198 = arith.addf %197, %67 : vector<2x32x32xf32>
    %c0_169 = arith.constant 0 : index
    %c2_170 = arith.constant 2 : index
    %c0_171 = arith.constant 0 : index
    %199 = vector.load %arg11[%c0_169, %c2_170, %c0_171] : memref<2x36x32xf32, #tpu.memory_space<vmem>>, vector<2x32x32xf32>
    tpu.vector_store %arg11[%c0_169, %c2_170, %c0_171], %198 {strides = array<i32>} : memref<2x36x32xf32, #tpu.memory_space<vmem>>, vector<2x32x32xf32>,
    %c0_172 = arith.constant 0 : index
    %c0_173 = arith.constant 0 : index
    %c0_174 = arith.constant 0 : index
    %200 = vector.load %arg11[%c0_172, %c0_173, %c0_174] : memref<2x36x32xf32, #tpu.memory_space<vmem>>, vector<2x32x32xf32>
    %201 = vector.shape_cast %200 : vector<2x32x32xf32> to vector<64x32xf32>
    %c3_175 = arith.constant 3 : index
    %c0_176 = arith.constant 0 : index
    %c0_177 = arith.constant 0 : index
    %c0_178 = arith.constant 0 : index
    %202 = vector.load %arg1[%c3_175, %c0_176, %c0_177, %c0_178] : memref<5x5x32x32xf32, #tpu.memory_space<vmem>>, vector<1x1x32x32xf32>
    %203 = vector.shape_cast %202 : vector<1x1x32x32xf32> to vector<32x32xf32>
    %cst_179 = arith.constant dense<0.000000e+00> : vector<64x32xf32>
    %204 = tpu.matmul %201, %203, %cst_179 {dimension_numbers = #tpu.dot_dimension_numbers<[1], [0], [0], [1], [0, 0, 1, 1], [], []>} : vector<64x32xf32>, vector<32x32xf32>, vector<64x32xf32> -> vector<64x32xf32>
    %c0_180 = arith.constant 0 : index
    %c1_181 = arith.constant 1 : index
    %c0_182 = arith.constant 0 : index
    %205 = vector.load %arg11[%c0_180, %c1_181, %c0_182] : memref<2x36x32xf32, #tpu.memory_space<vmem>>, vector<2x32x32xf32>
    %206 = vector.shape_cast %205 : vector<2x32x32xf32> to vector<64x32xf32>
    %c3_183 = arith.constant 3 : index
    %c1_184 = arith.constant 1 : index
    %c0_185 = arith.constant 0 : index
    %c0_186 = arith.constant 0 : index
    %207 = vector.load %arg1[%c3_183, %c1_184, %c0_185, %c0_186] : memref<5x5x32x32xf32, #tpu.memory_space<vmem>>, vector<1x1x32x32xf32>
    %208 = vector.shape_cast %207 : vector<1x1x32x32xf32> to vector<32x32xf32>
    %cst_187 = arith.constant dense<0.000000e+00> : vector<64x32xf32>
    %209 = tpu.matmul %206, %208, %cst_187 {dimension_numbers = #tpu.dot_dimension_numbers<[1], [0], [0], [1], [0, 0, 1, 1], [], []>} : vector<64x32xf32>, vector<32x32xf32>, vector<64x32xf32> -> vector<64x32xf32>
    %c0_188 = arith.constant 0 : index
    %c2_189 = arith.constant 2 : index
    %c0_190 = arith.constant 0 : index
    %210 = vector.load %arg11[%c0_188, %c2_189, %c0_190] : memref<2x36x32xf32, #tpu.memory_space<vmem>>, vector<2x32x32xf32>
    %211 = vector.shape_cast %210 : vector<2x32x32xf32> to vector<64x32xf32>
    %c3_191 = arith.constant 3 : index
    %c2_192 = arith.constant 2 : index
    %c0_193 = arith.constant 0 : index
    %c0_194 = arith.constant 0 : index
    %212 = vector.load %arg1[%c3_191, %c2_192, %c0_193, %c0_194] : memref<5x5x32x32xf32, #tpu.memory_space<vmem>>, vector<1x1x32x32xf32>
    %213 = vector.shape_cast %212 : vector<1x1x32x32xf32> to vector<32x32xf32>
    %cst_195 = arith.constant dense<0.000000e+00> : vector<64x32xf32>
    %214 = tpu.matmul %211, %213, %cst_195 {dimension_numbers = #tpu.dot_dimension_numbers<[1], [0], [0], [1], [0, 0, 1, 1], [], []>} : vector<64x32xf32>, vector<32x32xf32>, vector<64x32xf32> -> vector<64x32xf32>
    %c0_196 = arith.constant 0 : index
    %c3_197 = arith.constant 3 : index
    %c0_198 = arith.constant 0 : index
    %215 = vector.load %arg11[%c0_196, %c3_197, %c0_198] : memref<2x36x32xf32, #tpu.memory_space<vmem>>, vector<2x32x32xf32>
    %216 = vector.shape_cast %215 : vector<2x32x32xf32> to vector<64x32xf32>
    %c3_199 = arith.constant 3 : index
    %c3_200 = arith.constant 3 : index
    %c0_201 = arith.constant 0 : index
    %c0_202 = arith.constant 0 : index
    %217 = vector.load %arg1[%c3_199, %c3_200, %c0_201, %c0_202] : memref<5x5x32x32xf32, #tpu.memory_space<vmem>>, vector<1x1x32x32xf32>
    %218 = vector.shape_cast %217 : vector<1x1x32x32xf32> to vector<32x32xf32>
    %cst_203 = arith.constant dense<0.000000e+00> : vector<64x32xf32>
    %219 = tpu.matmul %216, %218, %cst_203 {dimension_numbers = #tpu.dot_dimension_numbers<[1], [0], [0], [1], [0, 0, 1, 1], [], []>} : vector<64x32xf32>, vector<32x32xf32>, vector<64x32xf32> -> vector<64x32xf32>
    %c0_204 = arith.constant 0 : index
    %c4_205 = arith.constant 4 : index
    %c0_206 = arith.constant 0 : index
    %220 = vector.load %arg11[%c0_204, %c4_205, %c0_206] : memref<2x36x32xf32, #tpu.memory_space<vmem>>, vector<2x32x32xf32>
    %221 = vector.shape_cast %220 : vector<2x32x32xf32> to vector<64x32xf32>
    %c3_207 = arith.constant 3 : index
    %c4_208 = arith.constant 4 : index
    %c0_209 = arith.constant 0 : index
    %c0_210 = arith.constant 0 : index
    %222 = vector.load %arg1[%c3_207, %c4_208, %c0_209, %c0_210] : memref<5x5x32x32xf32, #tpu.memory_space<vmem>>, vector<1x1x32x32xf32>
    %223 = vector.shape_cast %222 : vector<1x1x32x32xf32> to vector<32x32xf32>
    %cst_211 = arith.constant dense<0.000000e+00> : vector<64x32xf32>
    %224 = tpu.matmul %221, %223, %cst_211 {dimension_numbers = #tpu.dot_dimension_numbers<[1], [0], [0], [1], [0, 0, 1, 1], [], []>} : vector<64x32xf32>, vector<32x32xf32>, vector<64x32xf32> -> vector<64x32xf32>
    %225 = arith.addf %204, %209 : vector<64x32xf32>
    %226 = arith.addf %214, %219 : vector<64x32xf32>
    %227 = arith.addf %225, %226 : vector<64x32xf32>
    %228 = arith.addf %227, %224 : vector<64x32xf32>
    %229 = vector.shape_cast %228 : vector<64x32xf32> to vector<2x32x32xf32>
    %c3_212 = arith.constant 3 : index
    %c0_213 = arith.constant 0 : index
    %c0_214 = arith.constant 0 : index
    %230 = vector.load %arg2[%c3_212, %c0_213, %c0_214] : memref<5x1x32xf32, #tpu.memory_space<vmem>>, vector<1x1x32xf32>
    %231 = vector.shape_cast %230 : vector<1x1x32xf32> to vector<1x32xf32>
    %232 = vector.shape_cast %231 : vector<1x32xf32> to vector<1x1x32xf32>
    %233 = vector.broadcast %232 : vector<1x1x32xf32> to vector<2x32x32xf32>
    %234 = arith.addf %229, %233 : vector<2x32x32xf32>
    %cst_215 = arith.constant 0.000000e+00 : f32
    %235 = vector.broadcast %cst_215 : f32 to vector<2x32x32xf32>
    %236 = arith.maximumf %234, %235 : vector<2x32x32xf32>
    %237 = arith.mulf %236, %236 : vector<2x32x32xf32>
    %238 = tpu.concatenate %236, %237 in 2 : vector<2x32x32xf32>, vector<2x32x32xf32> -> vector<2x32x64xf32>
    %cst_216 = arith.constant dense<0.000000e+00> : vector<2x64xf32>
    %239 = vector.multi_reduction <add>, %238, %cst_216 [1] : vector<2x32x64xf32> to vector<2x64xf32>
    %240 = vector.shape_cast %239 : vector<2x64xf32> to vector<2x1x64xf32>
    %cst_217 = arith.constant 3.125000e-02 : f32
    %241 = vector.broadcast %cst_217 : f32 to vector<2x1x64xf32>
    %242 = arith.mulf %240, %241 : vector<2x1x64xf32>
    %243 = vector.extract_strided_slice %242 {offsets = [0, 0, 0], sizes = [2, 1, 32], strides = [1, 1, 1]} : vector<2x1x64xf32> to vector<2x1x32xf32>
    %244 = vector.extract_strided_slice %242 {offsets = [0, 0, 32], sizes = [2, 1, 32], strides = [1, 1, 1]} : vector<2x1x64xf32> to vector<2x1x32xf32>
    %245 = arith.mulf %243, %243 : vector<2x1x32xf32>
    %246 = arith.subf %244, %245 : vector<2x1x32xf32>
    %247 = vector.broadcast %243 : vector<2x1x32xf32> to vector<2x32x32xf32>
    %248 = arith.subf %236, %247 : vector<2x32x32xf32>
    %cst_218 = arith.constant 9.99999974E-6 : f32
    %249 = vector.broadcast %cst_218 : f32 to vector<2x1x32xf32>
    %250 = arith.addf %246, %249 : vector<2x1x32xf32>
    %251 = math.rsqrt %250 : vector<2x1x32xf32>
    %252 = vector.broadcast %251 : vector<2x1x32xf32> to vector<2x32x32xf32>
    %253 = arith.mulf %248, %252 : vector<2x32x32xf32>
    %c3_219 = arith.constant 3 : index
    %c0_220 = arith.constant 0 : index
    %c0_221 = arith.constant 0 : index
    %254 = vector.load %arg3[%c3_219, %c0_220, %c0_221] : memref<5x32x1xf32, #tpu.memory_space<vmem>>, vector<1x32x1xf32>
    %255 = vector.shape_cast %254 : vector<1x32x1xf32> to vector<32x1xf32>
    %256 = vector.shape_cast %255 : vector<32x1xf32> to vector<1x32x1xf32>
    %257 = vector.broadcast %256 : vector<1x32x1xf32> to vector<2x32x32xf32>
    %258 = arith.mulf %253, %257 : vector<2x32x32xf32>
    %c3_222 = arith.constant 3 : index
    %c0_223 = arith.constant 0 : index
    %c0_224 = arith.constant 0 : index
    %259 = vector.load %arg4[%c3_222, %c0_223, %c0_224] : memref<5x32x1xf32, #tpu.memory_space<vmem>>, vector<1x32x1xf32>
    %260 = vector.shape_cast %259 : vector<1x32x1xf32> to vector<32x1xf32>
    %261 = vector.shape_cast %260 : vector<32x1xf32> to vector<1x32x1xf32>
    %262 = vector.broadcast %261 : vector<1x32x1xf32> to vector<2x32x32xf32>
    %263 = arith.addf %258, %262 : vector<2x32x32xf32>
    %c0_225 = arith.constant 0 : index
    %c2_226 = arith.constant 2 : index
    %c0_227 = arith.constant 0 : index
    %264 = vector.load %arg11[%c0_225, %c2_226, %c0_227] : memref<2x36x32xf32, #tpu.memory_space<vmem>>, vector<2x32x32xf32>
    tpu.vector_store %arg11[%c0_225, %c2_226, %c0_227], %263 {strides = array<i32>} : memref<2x36x32xf32, #tpu.memory_space<vmem>>, vector<2x32x32xf32>,
    %c0_228 = arith.constant 0 : index
    %c0_229 = arith.constant 0 : index
    %c0_230 = arith.constant 0 : index
    %265 = vector.load %arg11[%c0_228, %c0_229, %c0_230] : memref<2x36x32xf32, #tpu.memory_space<vmem>>, vector<2x32x32xf32>
    %266 = vector.shape_cast %265 : vector<2x32x32xf32> to vector<64x32xf32>
    %c4_231 = arith.constant 4 : index
    %c0_232 = arith.constant 0 : index
    %c0_233 = arith.constant 0 : index
    %c0_234 = arith.constant 0 : index
    %267 = vector.load %arg1[%c4_231, %c0_232, %c0_233, %c0_234] : memref<5x5x32x32xf32, #tpu.memory_space<vmem>>, vector<1x1x32x32xf32>
    %268 = vector.shape_cast %267 : vector<1x1x32x32xf32> to vector<32x32xf32>
    %cst_235 = arith.constant dense<0.000000e+00> : vector<64x32xf32>
    %269 = tpu.matmul %266, %268, %cst_235 {dimension_numbers = #tpu.dot_dimension_numbers<[1], [0], [0], [1], [0, 0, 1, 1], [], []>} : vector<64x32xf32>, vector<32x32xf32>, vector<64x32xf32> -> vector<64x32xf32>
    %c0_236 = arith.constant 0 : index
    %c1_237 = arith.constant 1 : index
    %c0_238 = arith.constant 0 : index
    %270 = vector.load %arg11[%c0_236, %c1_237, %c0_238] : memref<2x36x32xf32, #tpu.memory_space<vmem>>, vector<2x32x32xf32>
    %271 = vector.shape_cast %270 : vector<2x32x32xf32> to vector<64x32xf32>
    %c4_239 = arith.constant 4 : index
    %c1_240 = arith.constant 1 : index
    %c0_241 = arith.constant 0 : index
    %c0_242 = arith.constant 0 : index
    %272 = vector.load %arg1[%c4_239, %c1_240, %c0_241, %c0_242] : memref<5x5x32x32xf32, #tpu.memory_space<vmem>>, vector<1x1x32x32xf32>
    %273 = vector.shape_cast %272 : vector<1x1x32x32xf32> to vector<32x32xf32>
    %cst_243 = arith.constant dense<0.000000e+00> : vector<64x32xf32>
    %274 = tpu.matmul %271, %273, %cst_243 {dimension_numbers = #tpu.dot_dimension_numbers<[1], [0], [0], [1], [0, 0, 1, 1], [], []>} : vector<64x32xf32>, vector<32x32xf32>, vector<64x32xf32> -> vector<64x32xf32>
    %c0_244 = arith.constant 0 : index
    %c2_245 = arith.constant 2 : index
    %c0_246 = arith.constant 0 : index
    %275 = vector.load %arg11[%c0_244, %c2_245, %c0_246] : memref<2x36x32xf32, #tpu.memory_space<vmem>>, vector<2x32x32xf32>
    %276 = vector.shape_cast %275 : vector<2x32x32xf32> to vector<64x32xf32>
    %c4_247 = arith.constant 4 : index
    %c2_248 = arith.constant 2 : index
    %c0_249 = arith.constant 0 : index
    %c0_250 = arith.constant 0 : index
    %277 = vector.load %arg1[%c4_247, %c2_248, %c0_249, %c0_250] : memref<5x5x32x32xf32, #tpu.memory_space<vmem>>, vector<1x1x32x32xf32>
    %278 = vector.shape_cast %277 : vector<1x1x32x32xf32> to vector<32x32xf32>
    %cst_251 = arith.constant dense<0.000000e+00> : vector<64x32xf32>
    %279 = tpu.matmul %276, %278, %cst_251 {dimension_numbers = #tpu.dot_dimension_numbers<[1], [0], [0], [1], [0, 0, 1, 1], [], []>} : vector<64x32xf32>, vector<32x32xf32>, vector<64x32xf32> -> vector<64x32xf32>
    %c0_252 = arith.constant 0 : index
    %c3_253 = arith.constant 3 : index
    %c0_254 = arith.constant 0 : index
    %280 = vector.load %arg11[%c0_252, %c3_253, %c0_254] : memref<2x36x32xf32, #tpu.memory_space<vmem>>, vector<2x32x32xf32>
    %281 = vector.shape_cast %280 : vector<2x32x32xf32> to vector<64x32xf32>
    %c4_255 = arith.constant 4 : index
    %c3_256 = arith.constant 3 : index
    %c0_257 = arith.constant 0 : index
    %c0_258 = arith.constant 0 : index
    %282 = vector.load %arg1[%c4_255, %c3_256, %c0_257, %c0_258] : memref<5x5x32x32xf32, #tpu.memory_space<vmem>>, vector<1x1x32x32xf32>
    %283 = vector.shape_cast %282 : vector<1x1x32x32xf32> to vector<32x32xf32>
    %cst_259 = arith.constant dense<0.000000e+00> : vector<64x32xf32>
    %284 = tpu.matmul %281, %283, %cst_259 {dimension_numbers = #tpu.dot_dimension_numbers<[1], [0], [0], [1], [0, 0, 1, 1], [], []>} : vector<64x32xf32>, vector<32x32xf32>, vector<64x32xf32> -> vector<64x32xf32>
    %c0_260 = arith.constant 0 : index
    %c4_261 = arith.constant 4 : index
    %c0_262 = arith.constant 0 : index
    %285 = vector.load %arg11[%c0_260, %c4_261, %c0_262] : memref<2x36x32xf32, #tpu.memory_space<vmem>>, vector<2x32x32xf32>
    %286 = vector.shape_cast %285 : vector<2x32x32xf32> to vector<64x32xf32>
    %c4_263 = arith.constant 4 : index
    %c4_264 = arith.constant 4 : index
    %c0_265 = arith.constant 0 : index
    %c0_266 = arith.constant 0 : index
    %287 = vector.load %arg1[%c4_263, %c4_264, %c0_265, %c0_266] : memref<5x5x32x32xf32, #tpu.memory_space<vmem>>, vector<1x1x32x32xf32>
    %288 = vector.shape_cast %287 : vector<1x1x32x32xf32> to vector<32x32xf32>
    %cst_267 = arith.constant dense<0.000000e+00> : vector<64x32xf32>
    %289 = tpu.matmul %286, %288, %cst_267 {dimension_numbers = #tpu.dot_dimension_numbers<[1], [0], [0], [1], [0, 0, 1, 1], [], []>} : vector<64x32xf32>, vector<32x32xf32>, vector<64x32xf32> -> vector<64x32xf32>
    %290 = arith.addf %269, %274 : vector<64x32xf32>
    %291 = arith.addf %279, %284 : vector<64x32xf32>
    %292 = arith.addf %290, %291 : vector<64x32xf32>
    %293 = arith.addf %292, %289 : vector<64x32xf32>
    %294 = vector.shape_cast %293 : vector<64x32xf32> to vector<2x32x32xf32>
    %c4_268 = arith.constant 4 : index
    %c0_269 = arith.constant 0 : index
    %c0_270 = arith.constant 0 : index
    %295 = vector.load %arg2[%c4_268, %c0_269, %c0_270] : memref<5x1x32xf32, #tpu.memory_space<vmem>>, vector<1x1x32xf32>
    %296 = vector.shape_cast %295 : vector<1x1x32xf32> to vector<1x32xf32>
    %297 = vector.shape_cast %296 : vector<1x32xf32> to vector<1x1x32xf32>
    %298 = vector.broadcast %297 : vector<1x1x32xf32> to vector<2x32x32xf32>
    %299 = arith.addf %294, %298 : vector<2x32x32xf32>
    %cst_271 = arith.constant 0.000000e+00 : f32
    %300 = vector.broadcast %cst_271 : f32 to vector<2x32x32xf32>
    %301 = arith.maximumf %299, %300 : vector<2x32x32xf32>
    %302 = arith.mulf %301, %301 : vector<2x32x32xf32>
    %303 = tpu.concatenate %301, %302 in 2 : vector<2x32x32xf32>, vector<2x32x32xf32> -> vector<2x32x64xf32>
    %cst_272 = arith.constant dense<0.000000e+00> : vector<2x64xf32>
    %304 = vector.multi_reduction <add>, %303, %cst_272 [1] : vector<2x32x64xf32> to vector<2x64xf32>
    %305 = vector.shape_cast %304 : vector<2x64xf32> to vector<2x1x64xf32>
    %cst_273 = arith.constant 3.125000e-02 : f32
    %306 = vector.broadcast %cst_273 : f32 to vector<2x1x64xf32>
    %307 = arith.mulf %305, %306 : vector<2x1x64xf32>
    %308 = vector.extract_strided_slice %307 {offsets = [0, 0, 0], sizes = [2, 1, 32], strides = [1, 1, 1]} : vector<2x1x64xf32> to vector<2x1x32xf32>
    %309 = vector.extract_strided_slice %307 {offsets = [0, 0, 32], sizes = [2, 1, 32], strides = [1, 1, 1]} : vector<2x1x64xf32> to vector<2x1x32xf32>
    %310 = arith.mulf %308, %308 : vector<2x1x32xf32>
    %311 = arith.subf %309, %310 : vector<2x1x32xf32>
    %312 = vector.broadcast %308 : vector<2x1x32xf32> to vector<2x32x32xf32>
    %313 = arith.subf %301, %312 : vector<2x32x32xf32>
    %cst_274 = arith.constant 9.99999974E-6 : f32
    %314 = vector.broadcast %cst_274 : f32 to vector<2x1x32xf32>
    %315 = arith.addf %311, %314 : vector<2x1x32xf32>
    %316 = math.rsqrt %315 : vector<2x1x32xf32>
    %317 = vector.broadcast %316 : vector<2x1x32xf32> to vector<2x32x32xf32>
    %318 = arith.mulf %313, %317 : vector<2x32x32xf32>
    %c4_275 = arith.constant 4 : index
    %c0_276 = arith.constant 0 : index
    %c0_277 = arith.constant 0 : index
    %319 = vector.load %arg3[%c4_275, %c0_276, %c0_277] : memref<5x32x1xf32, #tpu.memory_space<vmem>>, vector<1x32x1xf32>
    %320 = vector.shape_cast %319 : vector<1x32x1xf32> to vector<32x1xf32>
    %321 = vector.shape_cast %320 : vector<32x1xf32> to vector<1x32x1xf32>
    %322 = vector.broadcast %321 : vector<1x32x1xf32> to vector<2x32x32xf32>
    %323 = arith.mulf %318, %322 : vector<2x32x32xf32>
    %c4_278 = arith.constant 4 : index
    %c0_279 = arith.constant 0 : index
    %c0_280 = arith.constant 0 : index
    %324 = vector.load %arg4[%c4_278, %c0_279, %c0_280] : memref<5x32x1xf32, #tpu.memory_space<vmem>>, vector<1x32x1xf32>
    %325 = vector.shape_cast %324 : vector<1x32x1xf32> to vector<32x1xf32>
    %326 = vector.shape_cast %325 : vector<32x1xf32> to vector<1x32x1xf32>
    %327 = vector.broadcast %326 : vector<1x32x1xf32> to vector<2x32x32xf32>
    %328 = arith.addf %323, %327 : vector<2x32x32xf32>
    %329 = arith.addf %328, %198 : vector<2x32x32xf32>
    %330 = vector.shape_cast %329 : vector<2x32x32xf32> to vector<64x32xf32>
    %c0_281 = arith.constant 0 : index
    %c0_282 = arith.constant 0 : index
    %331 = vector.load %arg5[%c0_281, %c0_282] : memref<32x192xf32, #tpu.memory_space<vmem>>, vector<32x192xf32>
    %cst_283 = arith.constant dense<0.000000e+00> : vector<64x192xf32>
    %332 = tpu.matmul %330, %331, %cst_283 {dimension_numbers = #tpu.dot_dimension_numbers<[1], [0], [0], [1], [0, 0, 1, 1], [], []>} : vector<64x32xf32>, vector<32x192xf32>, vector<64x192xf32> -> vector<64x192xf32>
    %c0_284 = arith.constant 0 : index
    %c0_285 = arith.constant 0 : index
    %333 = vector.load %arg6[%c0_284, %c0_285] : memref<1x192xf32, #tpu.memory_space<vmem>>, vector<1x192xf32>
    %334 = vector.broadcast %333 : vector<1x192xf32> to vector<64x192xf32>
    %335 = arith.addf %332, %334 : vector<64x192xf32>
    %c0_286 = arith.constant 0 : index
    %c0_287 = arith.constant 0 : index
    %336 = vector.load %arg9[%c0_286, %c0_287] : memref<64x64xf32, #tpu.memory_space<vmem>>, vector<64x64xf32>
    %337 = vector.extract_strided_slice %335 {offsets = [0, 0], sizes = [64, 16], strides = [1, 1]} : vector<64x192xf32> to vector<64x16xf32>
    %338 = vector.extract_strided_slice %335 {offsets = [0, 64], sizes = [64, 16], strides = [1, 1]} : vector<64x192xf32> to vector<64x16xf32>
    %339 = vector.extract_strided_slice %335 {offsets = [0, 128], sizes = [64, 16], strides = [1, 1]} : vector<64x192xf32> to vector<64x16xf32>
    %cst_288 = arith.constant dense<0.000000e+00> : vector<64x64xf32>
    %340 = tpu.matmul %337, %338, %cst_288 {dimension_numbers = #tpu.dot_dimension_numbers<[1], [1], [0], [0], [0, 0, 1, 0], [], []>} : vector<64x16xf32>, vector<64x16xf32>, vector<64x64xf32> -> vector<64x64xf32>
    %341 = arith.addf %340, %336 : vector<64x64xf32>
    %cst_289 = arith.constant dense<0xFF800000> : vector<64xf32>
    %342 = vector.multi_reduction <maximumf>, %341, %cst_289 [1] : vector<64x64xf32> to vector<64xf32>
    %343 = vector.shape_cast %342 : vector<64xf32> to vector<64x1xf32>
    %344 = vector.broadcast %343 : vector<64x1xf32> to vector<64x64xf32>
    %345 = arith.subf %341, %344 : vector<64x64xf32>
    %346 = math.exp %345 : vector<64x64xf32>
    %cst_290 = arith.constant dense<0.000000e+00> : vector<64xf32>
    %347 = vector.multi_reduction <add>, %346, %cst_290 [1] : vector<64x64xf32> to vector<64xf32>
    %348 = vector.shape_cast %347 : vector<64xf32> to vector<64x1xf32>
    %cst_291 = arith.constant dense<0.000000e+00> : vector<64x16xf32>
    %349 = tpu.matmul %346, %339, %cst_291 {dimension_numbers = #tpu.dot_dimension_numbers<[1], [0], [0], [1], [0, 0, 1, 1], [], []>} : vector<64x64xf32>, vector<64x16xf32>, vector<64x16xf32> -> vector<64x16xf32>
    %350 = tpu.reciprocal %348 {approx = true} : vector<64x1xf32> -> vector<64x1xf32>
    %351 = arith.mulf %348, %350 : vector<64x1xf32>
    %cst_292 = arith.constant 2.000000e+00 : f32
    %352 = vector.broadcast %cst_292 : f32 to vector<64x1xf32>
    %353 = arith.subf %352, %351 : vector<64x1xf32>
    %354 = arith.mulf %350, %353 : vector<64x1xf32>
    %355 = vector.broadcast %354 : vector<64x1xf32> to vector<64x16xf32>
    %356 = arith.mulf %349, %355 : vector<64x16xf32>
    %357 = vector.extract_strided_slice %335 {offsets = [0, 16], sizes = [64, 16], strides = [1, 1]} : vector<64x192xf32> to vector<64x16xf32>
    %358 = vector.extract_strided_slice %335 {offsets = [0, 80], sizes = [64, 16], strides = [1, 1]} : vector<64x192xf32> to vector<64x16xf32>
    %359 = vector.extract_strided_slice %335 {offsets = [0, 144], sizes = [64, 16], strides = [1, 1]} : vector<64x192xf32> to vector<64x16xf32>
    %cst_293 = arith.constant dense<0.000000e+00> : vector<64x64xf32>
    %360 = tpu.matmul %357, %358, %cst_293 {dimension_numbers = #tpu.dot_dimension_numbers<[1], [1], [0], [0], [0, 0, 1, 0], [], []>} : vector<64x16xf32>, vector<64x16xf32>, vector<64x64xf32> -> vector<64x64xf32>
    %361 = arith.addf %360, %336 : vector<64x64xf32>
    %cst_294 = arith.constant dense<0xFF800000> : vector<64xf32>
    %362 = vector.multi_reduction <maximumf>, %361, %cst_294 [1] : vector<64x64xf32> to vector<64xf32>
    %363 = vector.shape_cast %362 : vector<64xf32> to vector<64x1xf32>
    %364 = vector.broadcast %363 : vector<64x1xf32> to vector<64x64xf32>
    %365 = arith.subf %361, %364 : vector<64x64xf32>
    %366 = math.exp %365 : vector<64x64xf32>
    %cst_295 = arith.constant dense<0.000000e+00> : vector<64xf32>
    %367 = vector.multi_reduction <add>, %366, %cst_295 [1] : vector<64x64xf32> to vector<64xf32>
    %368 = vector.shape_cast %367 : vector<64xf32> to vector<64x1xf32>
    %cst_296 = arith.constant dense<0.000000e+00> : vector<64x16xf32>
    %369 = tpu.matmul %366, %359, %cst_296 {dimension_numbers = #tpu.dot_dimension_numbers<[1], [0], [0], [1], [0, 0, 1, 1], [], []>} : vector<64x64xf32>, vector<64x16xf32>, vector<64x16xf32> -> vector<64x16xf32>
    %370 = tpu.reciprocal %368 {approx = true} : vector<64x1xf32> -> vector<64x1xf32>
    %371 = arith.mulf %368, %370 : vector<64x1xf32>
    %cst_297 = arith.constant 2.000000e+00 : f32
    %372 = vector.broadcast %cst_297 : f32 to vector<64x1xf32>
    %373 = arith.subf %372, %371 : vector<64x1xf32>
    %374 = arith.mulf %370, %373 : vector<64x1xf32>
    %375 = vector.broadcast %374 : vector<64x1xf32> to vector<64x16xf32>
    %376 = arith.mulf %369, %375 : vector<64x16xf32>
    %377 = vector.extract_strided_slice %335 {offsets = [0, 32], sizes = [64, 16], strides = [1, 1]} : vector<64x192xf32> to vector<64x16xf32>
    %378 = vector.extract_strided_slice %335 {offsets = [0, 96], sizes = [64, 16], strides = [1, 1]} : vector<64x192xf32> to vector<64x16xf32>
    %379 = vector.extract_strided_slice %335 {offsets = [0, 160], sizes = [64, 16], strides = [1, 1]} : vector<64x192xf32> to vector<64x16xf32>
    %cst_298 = arith.constant dense<0.000000e+00> : vector<64x64xf32>
    %380 = tpu.matmul %377, %378, %cst_298 {dimension_numbers = #tpu.dot_dimension_numbers<[1], [1], [0], [0], [0, 0, 1, 0], [], []>} : vector<64x16xf32>, vector<64x16xf32>, vector<64x64xf32> -> vector<64x64xf32>
    %381 = arith.addf %380, %336 : vector<64x64xf32>
    %cst_299 = arith.constant dense<0xFF800000> : vector<64xf32>
    %382 = vector.multi_reduction <maximumf>, %381, %cst_299 [1] : vector<64x64xf32> to vector<64xf32>
    %383 = vector.shape_cast %382 : vector<64xf32> to vector<64x1xf32>
    %384 = vector.broadcast %383 : vector<64x1xf32> to vector<64x64xf32>
    %385 = arith.subf %381, %384 : vector<64x64xf32>
    %386 = math.exp %385 : vector<64x64xf32>
    %cst_300 = arith.constant dense<0.000000e+00> : vector<64xf32>
    %387 = vector.multi_reduction <add>, %386, %cst_300 [1] : vector<64x64xf32> to vector<64xf32>
    %388 = vector.shape_cast %387 : vector<64xf32> to vector<64x1xf32>
    %cst_301 = arith.constant dense<0.000000e+00> : vector<64x16xf32>
    %389 = tpu.matmul %386, %379, %cst_301 {dimension_numbers = #tpu.dot_dimension_numbers<[1], [0], [0], [1], [0, 0, 1, 1], [], []>} : vector<64x64xf32>, vector<64x16xf32>, vector<64x16xf32> -> vector<64x16xf32>
    %390 = tpu.reciprocal %388 {approx = true} : vector<64x1xf32> -> vector<64x1xf32>
    %391 = arith.mulf %388, %390 : vector<64x1xf32>
    %cst_302 = arith.constant 2.000000e+00 : f32
    %392 = vector.broadcast %cst_302 : f32 to vector<64x1xf32>
    %393 = arith.subf %392, %391 : vector<64x1xf32>
    %394 = arith.mulf %390, %393 : vector<64x1xf32>
    %395 = vector.broadcast %394 : vector<64x1xf32> to vector<64x16xf32>
    %396 = arith.mulf %389, %395 : vector<64x16xf32>
    %397 = vector.extract_strided_slice %335 {offsets = [0, 48], sizes = [64, 16], strides = [1, 1]} : vector<64x192xf32> to vector<64x16xf32>
    %398 = vector.extract_strided_slice %335 {offsets = [0, 112], sizes = [64, 16], strides = [1, 1]} : vector<64x192xf32> to vector<64x16xf32>
    %399 = vector.extract_strided_slice %335 {offsets = [0, 176], sizes = [64, 16], strides = [1, 1]} : vector<64x192xf32> to vector<64x16xf32>
    %cst_303 = arith.constant dense<0.000000e+00> : vector<64x64xf32>
    %400 = tpu.matmul %397, %398, %cst_303 {dimension_numbers = #tpu.dot_dimension_numbers<[1], [1], [0], [0], [0, 0, 1, 0], [], []>} : vector<64x16xf32>, vector<64x16xf32>, vector<64x64xf32> -> vector<64x64xf32>
    %401 = arith.addf %400, %336 : vector<64x64xf32>
    %cst_304 = arith.constant dense<0xFF800000> : vector<64xf32>
    %402 = vector.multi_reduction <maximumf>, %401, %cst_304 [1] : vector<64x64xf32> to vector<64xf32>
    %403 = vector.shape_cast %402 : vector<64xf32> to vector<64x1xf32>
    %404 = vector.broadcast %403 : vector<64x1xf32> to vector<64x64xf32>
    %405 = arith.subf %401, %404 : vector<64x64xf32>
    %406 = math.exp %405 : vector<64x64xf32>
    %cst_305 = arith.constant dense<0.000000e+00> : vector<64xf32>
    %407 = vector.multi_reduction <add>, %406, %cst_305 [1] : vector<64x64xf32> to vector<64xf32>
    %408 = vector.shape_cast %407 : vector<64xf32> to vector<64x1xf32>
    %cst_306 = arith.constant dense<0.000000e+00> : vector<64x16xf32>
    %409 = tpu.matmul %406, %399, %cst_306 {dimension_numbers = #tpu.dot_dimension_numbers<[1], [0], [0], [1], [0, 0, 1, 1], [], []>} : vector<64x64xf32>, vector<64x16xf32>, vector<64x16xf32> -> vector<64x16xf32>
    %410 = tpu.reciprocal %408 {approx = true} : vector<64x1xf32> -> vector<64x1xf32>
    %411 = arith.mulf %408, %410 : vector<64x1xf32>
    %cst_307 = arith.constant 2.000000e+00 : f32
    %412 = vector.broadcast %cst_307 : f32 to vector<64x1xf32>
    %413 = arith.subf %412, %411 : vector<64x1xf32>
    %414 = arith.mulf %410, %413 : vector<64x1xf32>
    %415 = vector.broadcast %414 : vector<64x1xf32> to vector<64x16xf32>
    %416 = arith.mulf %409, %415 : vector<64x16xf32>
    %417 = tpu.concatenate %356, %376, %396, %416 in 1 : vector<64x16xf32>, vector<64x16xf32>, vector<64x16xf32>, vector<64x16xf32> -> vector<64x64xf32>
    %c0_308 = arith.constant 0 : index
    %c0_309 = arith.constant 0 : index
    %418 = vector.load %arg7[%c0_308, %c0_309] : memref<64x128xf32, #tpu.memory_space<vmem>>, vector<64x128xf32>
    %cst_310 = arith.constant dense<0.000000e+00> : vector<64x128xf32>
    %419 = tpu.matmul %417, %418, %cst_310 {dimension_numbers = #tpu.dot_dimension_numbers<[1], [0], [0], [1], [0, 0, 1, 1], [], []>} : vector<64x64xf32>, vector<64x128xf32>, vector<64x128xf32> -> vector<64x128xf32>
    %c0_311 = arith.constant 0 : index
    %c0_312 = arith.constant 0 : index
    %420 = vector.load %arg8[%c0_311, %c0_312] : memref<1x128xf32, #tpu.memory_space<vmem>>, vector<1x128xf32>
    %421 = vector.broadcast %420 : vector<1x128xf32> to vector<64x128xf32>
    %422 = arith.addf %419, %421 : vector<64x128xf32>
    %423 = vector.shape_cast %422 : vector<64x128xf32> to vector<2x32x128xf32>
    %c0_313 = arith.constant 0 : index
    %c0_314 = arith.constant 0 : index
    %c0_315 = arith.constant 0 : index
    %424 = vector.load %arg10[%c0_313, %c0_314, %c0_315] : memref<2x32x128xf32, #tpu.memory_space<vmem>>, vector<2x32x128xf32>
    tpu.vector_store %arg10[%c0_313, %c0_314, %c0_315], %423 {strides = array<i32>} : memref<2x32x128xf32, #tpu.memory_space<vmem>>, vector<2x32x128xf32>,
    return
  }
}

</mosaic_0001>

<bundles_post_ra>
// kernel: prosody_encoder_forward.1
= control target key start
LH: loop header
LB: loop body
LE: loop exit
PB: predicated region body
PF: predicated region fallthrough
CT: control target
= control target key end

     0   :  { %15 = vsyncpa [#allocation4], 0  ;;  %s8712_s13 = smov [#allocation3]   ;;  %s10778_s0 = inlined_call_operand.vmem [shape: f32[2,32,16], index: 0, kind: input, shape index: {}]   ;;  %s10779_s1 = inlined_call_operand.hbm [shape: f32[5,5,32,32], index: 1, kind: input, shape index: {}]   ;;  %s10780_s2 = inlined_call_operand.vmem [shape: f32[5,1,32], index: 2, kind: input, shape index: {}]   ;;  %s10781_s3 = inlined_call_operand.vmem [shape: f32[5,32,1], index: 3, kind: input, shape index: {}]   ;;  %s10782_s4 = inlined_call_operand.vmem [shape: f32[5,32,1], index: 4, kind: input, shape index: {}]   ;;  %s10783_s5 = inlined_call_operand.vmem [shape: f32[32,192], index: 5, kind: input, shape index: {}]   ;;  %s10784_s6 = inlined_call_operand.vmem [shape: f32[1,192], index: 6, kind: input, shape index: {}]   ;;  %s10785_s7 = inlined_call_operand.vmem [shape: f32[64,128], index: 7, kind: input, shape index: {}]   ;;  %s10786_s8 = inlined_call_operand.vmem [shape: f32[1,128], index: 8, kind: input, shape index: {}]   ;;  %s10787_s9 = inlined_call_operand.vmem [shape: f32[64,64], index: 9, kind: input, shape index: {}]   ;;  %s10788_s10 = inlined_call_operand.vmem [shape: f32[2,32,128], index: 10, kind: output, shape index: {}]  }
   0x1   :  { %s23_s14 = sshll.u32 %s8712_s13, 4  ;;  %s24_s14 = int_to_ptr.vmem [resolvable:$true] %s23_s14 }
   0x2   :  { %s8698_s15 = scalar_lea.vmem %s24_s14, 12800  ;;  %p8703_p1 = scmp.lt.s32.totalorder %s24_s14, %s24_s14 }
   0x3   :  { %p8699_p0 = scmp.ne.s32.totalorder %s24_s14, %s8698_s15  ;;  %p8704_p2 = scmp.lt.s32.totalorder %s8698_s15, %s8698_s15 }
   0x5   :  { %p8705_p3 = por %p8704_p2, %p8703_p1 }
   0x7   :  { %p8706_p4 = pnand %p8705_p3, %p8699_p0 }
   0x9   :  { %8709 = shalt.err (!%p8706_p4)
}
   0xa   :  { %s8713_s16 = smov 128   ;;  %s8714_s17 = smov 8  }
   0xb   :  { %29 = dma.hbm_to_vmem [thread:$0]  %s10779_s1, 12800, %s24_s14, [#allocation4], %s8713_s16, %s8713_s16, %s8714_s17  }
   0xc   :  { %8710 = dma.done.wait [#allocation4], 12800  }
   0xd   :  { %8711 = vsyncadd [#allocation4], 4294954496  ;;  %vm49_vm0 = vcmask 261120   ;;  %vm54_vm1 = vcmask 257024   ;;  %v8715_v0 = vmov 0.0   ;;  %v102_v1 = vld [vmem:[#allocation3 + $0x38] sm:$0xff] }
   0xe   :  { %50 = vst.msk [vmem:[#allocation2] sm:$0xff] %vm49_vm0, %v8715_v0  ;;  %51 = vst.msk [vmem:[#allocation2 + $0x8] sm:$0xff] %vm49_vm0, %v8715_v0  ;;  %v257_v2 = vld [vmem:[#allocation3 + $0x78] sm:$0xff]  ;;  %v101_v3 = vld [vmem:[#allocation3 + $0x30] sm:$0xff]  ;;  %vm69_vm2 = vcmask 130048   ;;  %7776 = vmatprep.subr.mxu0 %v102_v1  ;;  %s8716_s16 = smov 32  }
   0xf   :  { %52 = vst.msk [vmem:[#allocation2 + $0x10] sm:$0xff] %vm49_vm0, %v8715_v0  ;;  %53 = vst.msk [vmem:[#allocation2 + $0x18] sm:$0xff] %vm49_vm0, %v8715_v0  ;;  %7796 = vmatprep.subr.mxu1 %v257_v2  ;;  %v256_v4 = vld [vmem:[#allocation3 + $0x70] sm:$0xff]  ;;  %7777 = vmatpush3.msra.mxu0 %v102_v1  ;;  %v100_v5 = vld [vmem:[#allocation3 + $0x28] sm:$0xff]  ;;  %vm874_vm3 = vcmask 523264   ;;  %s8718_s30 = smov 96  }
  0x10   :  { %56 = vst.msk [vmem:[#allocation2 + $0x28] sm:$0xff] %vm49_vm0, %v8715_v0  ;;  %57 = vst.msk [vmem:[#allocation2 + $0x30] sm:$0xff] %vm49_vm0, %v8715_v0  ;;  %7797 = vmatpush3.msra.mxu1 %v257_v2  ;;  %v255_v6 = vld [vmem:[#allocation3 + $0x68] sm:$0xff]  ;;  %v61_v7 = vld [vmem:[%s10778_s0] sm:$0xff]  ;;  %7778 = vmatprep.subr.mxu0 %v101_v3  ;;  %s8720_s18 = smov 48   ;;  %s8721_s19 = smov 112  }
  0x11   :  { %58 = vst.msk [vmem:[#allocation2 + $0x38] sm:$0xff] %vm49_vm0, %v8715_v0  ;;  %59 = vst.msk [vmem:[#allocation2 + $0x40] sm:$0xff] %vm49_vm0, %v8715_v0  ;;  %7798 = vmatprep.subr.mxu1 %v256_v4  ;;  %v99_v8 = vld [vmem:[#allocation3 + $0x20] sm:$0xff]  ;;  %v62_v9 = vld [vmem:[%s10778_s0 + $0x8] sm:$0xff]  ;;  %7779 = vmatpush3.msra.mxu0 %v101_v3  ;;  %vm6812_vm4 = vcmask 392192  }
  0x12   :  { %55 = vst.msk [vmem:[#allocation2 + $0x20] sm:$0xf] %vm54_vm1, %v8715_v0  ;;  %60 = vst.msk [vmem:[#allocation2 + $0x48] sm:$0xf] %vm54_vm1, %v8715_v0  ;;  %v63_v10 = vld [vmem:[%s10778_s0 + $0x10] sm:$0xff]  ;;  %7799 = vmatpush3.msra.mxu1 %v256_v4  ;;  %v64_v12 = vld [vmem:[%s10778_s0 + $0x18] sm:$0xff]  ;;  %7780 = vmatprep.subr.mxu0 %v100_v5 }
  0x13   :  { %70 = vst.msk [vmem:[#allocation2 + $0x2] sm:$0xff] %vm69_vm2, %v61_v7  ;;  %v254_v11 = vld [vmem:[#allocation3 + $0x60] sm:$0xff]  ;;  %71 = vst.msk [vmem:[#allocation2 + $0xa] sm:$0xff] %vm69_vm2, %v62_v9  ;;  %v65_v13 = vld [vmem:[%s10778_s0 + $0x20] sm:$0xff]  ;;  %7800 = vmatprep.subr.mxu1 %v255_v6  ;;  %7781 = vmatpush3.msra.mxu0 %v100_v5 }
  0x14   :  { %72 = vst.msk [vmem:[#allocation2 + $0x12] sm:$0xff] %vm69_vm2, %v63_v10  ;;  %73 = vst.msk [vmem:[#allocation2 + $0x1a] sm:$0xff] %vm69_vm2, %v64_v12  ;;  %v66_v14 = vld [vmem:[%s10778_s0 + $0x28] sm:$0xff]  ;;  %v67_v15 = vld [vmem:[%s10778_s0 + $0x30] sm:$0xff]  ;;  %7801 = vmatpush3.msra.mxu1 %v255_v6  ;;  %7782 = vmatprep.subr.mxu0 %v99_v8 }
  0x15   :  { %74 = vst.msk [vmem:[#allocation2 + $0x2a] sm:$0xff] %vm69_vm2, %v65_v13  ;;  %v399_v16 = vld [vmem:[#allocation3 + $0x98] sm:$0xff]  ;;  %75 = vst.msk [vmem:[#allocation2 + $0x32] sm:$0xff] %vm69_vm2, %v66_v14  ;;  %v68_v18 = vld [vmem:[%s10778_s0 + $0x38] sm:$0xff]  ;;  %7802 = vmatprep.subr.mxu1 %v254_v11  ;;  %7783 = vmatpush3.msra.mxu0 %v99_v8 }
  0x16   :  { %76 = vst.msk [vmem:[#allocation2 + $0x3a] sm:$0xff] %vm69_vm2, %v67_v15  ;;  %v89_v17 = vld [vmem:[#allocation3 + $0x18] sm:$0xff]  ;;  %77 = vst.msk [vmem:[#allocation2 + $0x42] sm:$0xff] %vm69_vm2, %v68_v18  ;;  %7803 = vmatpush3.msra.mxu1 %v254_v11  ;;  %7816 = vmatprep.subr.mxu0 %v399_v16  ;;  %v398_v25 = vld [vmem:[#allocation3 + $0x90] sm:$0xff] }
  0x17   :  { %7836 = vmatprep.subr.mxu1 %v89_v17  ;;  %v88_v27 = vld [vmem:[#allocation3 + $0x10] sm:$0xff]  ;;  %v397_v31 = vld [vmem:[#allocation3 + $0x88] sm:$0xff]  ;;  %v396_v37 = vld [vmem:[#allocation3 + $0x80] sm:$0xff] }
  0x18   :  { %v87_v33 = vld [vmem:[#allocation3 + $0x8] sm:$0xff]  ;;  %v86_v39 = vld [vmem:[#allocation3] sm:$0xff]  ;;  %v244_v43 = vld [vmem:[#allocation3 + $0x58] sm:$0xff] }
  0x19   :  { %v243_v48 = vld [vmem:[#allocation3 + $0x50] sm:$0xff]  ;;  %v242_v53 = vld [vmem:[#allocation3 + $0x48] sm:$0xff]  ;;  %v241_v58 = vld [vmem:[#allocation3 + $0x40] sm:$0xff] }
  0x1a   :  { %v90_v19 = vld [vmem:[#allocation2 + $0x1] sm:$0xff]  ;;  %v91_v21 = vld [vmem:[#allocation2 + $0x9] sm:$0xff] }
  0x1b   :  { %7784 = vmatprep.mubr.msk.f32.mxu0 %vm49_vm0, %v90_v19  ;;  %v245_v20 = vld [vmem:[#allocation2 + $0x3] sm:$0xff]  ;;  %v246_v22 = vld [vmem:[#allocation2 + $0xb] sm:$0xff]  ;;  %v247_v24 = vld [vmem:[#allocation2 + $0x13] sm:$0xff] }
  0x1c   :  { %7804 = vmatprep.mubr.msk.f32.mxu1 %vm49_vm0, %v245_v20  ;;  %7785 = vmatmul.mubr.msk.f32.vlgmr.msra.gmra.mxu0 %vm49_vm0, %v91_v21  ;;  %v92_v23 = vld [vmem:[#allocation2 + $0x11] sm:$0xff]  ;;  %v93_v26 = vld [vmem:[#allocation2 + $0x19] sm:$0xff]  ;;  %v94_v29 = vld [vmem:[#allocation2 + $0x29] sm:$0xff] }
  0x1d   :  { %7805 = vmatmul.mubr.msk.f32.vlgmr.msra.gmra.mxu1 %vm49_vm0, %v246_v22  ;;  %7817 = vmatpush3.msra.mxu0 %v399_v16  ;;  %v248_v28 = vld [vmem:[#allocation2 + $0x1b] sm:$0xff]  ;;  %v249_v30 = vld [vmem:[#allocation2 + $0x2b] sm:$0xff]  ;;  %v250_v34 = vld [vmem:[#allocation2 + $0x33] sm:$0xff] }
  0x1e   :  { %7787 = vmatprep.mubr.msk.f32.mxu0 %vm49_vm0, %v92_v23  ;;  %7807 = vmatprep.mubr.msk.f32.mxu1 %vm49_vm0, %v247_v24  ;;  %v95_v32 = vld [vmem:[#allocation2 + $0x31] sm:$0xff]  ;;  %v96_v35 = vld [vmem:[#allocation2 + $0x39] sm:$0xff]  ;;  %v97_v38 = vld [vmem:[#allocation2 + $0x41] sm:$0xff] }
  0x1f   :  { %7818 = vmatprep.subr.mxu0 %v398_v25  ;;  %7837 = vmatpush3.msra.mxu1 %v89_v17  ;;  %v251_v36 = vld [vmem:[#allocation2 + $0x3b] sm:$0xff]  ;;  %v252_v40 = vld [vmem:[#allocation2 + $0x43] sm:$0xff]  ;;  %v388_v44 = vld [vmem:[#allocation2 + $0xc] sm:$0xff] }
  0x20   :  { %7788 = vmatmul.mubr.msk.f32.gmra.mxu0 %vm49_vm0, %v93_v26  ;;  %7838 = vmatprep.subr.mxu1 %v88_v27  ;;  %v387_v41 = vld [vmem:[#allocation2 + $0x4] sm:$0xff]  ;;  %v389_v46 = vld [vmem:[#allocation2 + $0x14] sm:$0xff]  ;;  %v390_v49 = vld [vmem:[#allocation2 + $0x1c] sm:$0xff] }
  0x21   :  { %7808 = vmatmul.mubr.msk.f32.gmra.mxu1 %vm49_vm0, %v248_v28  ;;  %7819 = vmatpush3.msra.mxu0 %v398_v25  ;;  %v78_v42 = vld [vmem:[#allocation2] sm:$0xff]  ;;  %v79_v45 = vld [vmem:[#allocation2 + $0x8] sm:$0xff]  ;;  %v80_v47 = vld [vmem:[#allocation2 + $0x10] sm:$0xff] }
  0x22   :  { %7790 = vmatprep.mubr.msk.f32.mxu0 %vm49_vm0, %v94_v29  ;;  %7810 = vmatprep.mubr.msk.f32.mxu1 %vm49_vm0, %v249_v30  ;;  %v81_v50 = vld [vmem:[#allocation2 + $0x18] sm:$0xff]  ;;  %v391_v51 = vld [vmem:[#allocation2 + $0x2c] sm:$0xff]  ;;  %v394_v59 = vld [vmem:[#allocation2 + $0x44] sm:$0xff] }
  0x23   :  { %7820 = vmatprep.subr.mxu0 %v397_v31  ;;  %7839 = vmatpush3.msra.mxu1 %v88_v27  ;;  %v82_v52 = vld [vmem:[#allocation2 + $0x28] sm:$0xff]  ;;  %v392_v54 = vld [vmem:[#allocation2 + $0x34] sm:$0xff]  ;;  %v393_v56 = vld [vmem:[#allocation2 + $0x3c] sm:$0xff] }
  0x24   :  { %7791 = vmatmul.mubr.msk.f32.gmra.mxu0 %vm49_vm0, %v95_v32  ;;  %7840 = vmatprep.subr.mxu1 %v87_v33  ;;  %v83_v55 = vld [vmem:[#allocation2 + $0x30] sm:$0xff]  ;;  %v84_v57 = vld [vmem:[#allocation2 + $0x38] sm:$0xff]  ;;  %v85_v60 = vld [vmem:[#allocation2 + $0x40] sm:$0xff] }
  0x25   :  { %7811 = vmatmul.mubr.msk.f32.gmra.mxu1 %vm49_vm0, %v250_v34  ;;  %7821 = vmatpush3.msra.mxu0 %v397_v31  ;;  %v232_v61 = vld [vmem:[#allocation2 + $0x2] sm:$0xff]  ;;  %v233_v62 = vld [vmem:[#allocation2 + $0xa] sm:$0xff]  ;;  %v234_v63 = vld [vmem:[#allocation2 + $0x12] sm:$0xff] }
  0x26   :  { %7793 = vmatprep.mubr.msk.f32.mxu0 %vm49_vm0, %v96_v35  ;;  %7813 = vmatprep.mubr.msk.f32.mxu1 %vm49_vm0, %v251_v36  ;;  %v235_v1 = vld [vmem:[#allocation2 + $0x1a] sm:$0xff]  ;;  %v236_v2 = vld [vmem:[#allocation2 + $0x2a] sm:$0xff]  ;;  %v237_v3 = vld [vmem:[#allocation2 + $0x32] sm:$0xff] }
  0x27   :  { %7822 = vmatprep.subr.mxu0 %v396_v37  ;;  %7841 = vmatpush3.msra.mxu1 %v87_v33  ;;  %v238_v4 = vld [vmem:[#allocation2 + $0x3a] sm:$0xff]  ;;  %v239_v5 = vld [vmem:[#allocation2 + $0x42] sm:$0xff] }
  0x28   :  { %7794 = vmatmul.mubr.msk.f32.gmra.mxu0 %vm49_vm0, %v97_v38  ;;  %7842 = vmatprep.subr.mxu1 %v86_v39 }
  0x29   :  { %7814 = vmatmul.mubr.msk.f32.gmra.mxu1 %vm49_vm0, %v252_v40  ;;  %7823 = vmatpush3.msra.mxu0 %v396_v37 }
  0x2a   :  { %7824 = vmatprep.mubr.msk.f32.mxu0 %vm49_vm0, %v387_v41  ;;  %7843 = vmatpush3.msra.mxu1 %v86_v39 }
  0x2b   :  { %7844 = vmatprep.mubr.msk.f32.mxu1 %vm49_vm0, %v78_v42  ;;  %7856 = vmatprep.subr.mxu0 %v244_v43 }
  0x2c   :  { %7825 = vmatmul.mubr.msk.f32.vlgmr.msra.gmra.mxu0 %vm49_vm0, %v388_v44 }
  0x2d   :  { %7845 = vmatmul.mubr.msk.f32.vlgmr.msra.gmra.mxu1 %vm49_vm0, %v79_v45  ;;  %7857 = vmatpush3.msra.mxu0 %v244_v43 }
  0x2e   :  { %7827 = vmatprep.mubr.msk.f32.mxu0 %vm49_vm0, %v389_v46  ;;  %7847 = vmatprep.mubr.msk.f32.mxu1 %vm49_vm0, %v80_v47 }
  0x2f   :  { %7858 = vmatprep.subr.mxu0 %v243_v48 }
  0x30   :  { %7828 = vmatmul.mubr.msk.f32.gmra.mxu0 %vm49_vm0, %v390_v49 }
  0x31   :  { %7848 = vmatmul.mubr.msk.f32.gmra.mxu1 %vm49_vm0, %v81_v50  ;;  %7859 = vmatpush3.msra.mxu0 %v243_v48  ;;  %v7018_v48 = vld [vmem:[%s10780_s2] ss:$0 sm:$0xff] }
  0x32   :  { %7830 = vmatprep.mubr.msk.f32.mxu0 %vm49_vm0, %v391_v51  ;;  %7850 = vmatprep.mubr.msk.f32.mxu1 %vm49_vm0, %v82_v52 }
  0x33   :  { %7860 = vmatprep.subr.mxu0 %v242_v53 }
  0x34   :  { %7831 = vmatmul.mubr.msk.f32.gmra.mxu0 %vm49_vm0, %v392_v54 }
  0x35   :  { %7851 = vmatmul.mubr.msk.f32.gmra.mxu1 %vm49_vm0, %v83_v55  ;;  %7861 = vmatpush3.msra.mxu0 %v242_v53 }
  0x36   :  { %7833 = vmatprep.mubr.msk.f32.mxu0 %vm49_vm0, %v393_v56  ;;  %7853 = vmatprep.mubr.msk.f32.mxu1 %vm49_vm0, %v84_v57 }
  0x37   :  { %7862 = vmatprep.subr.mxu0 %v241_v58 }
  0x38   :  { %7834 = vmatmul.mubr.msk.f32.gmra.mxu0 %vm49_vm0, %v394_v59 }
  0x39   :  { %7854 = vmatmul.mubr.msk.f32.gmra.mxu1 %vm49_vm0, %v85_v60  ;;  %7863 = vmatpush3.msra.mxu0 %v241_v58 }
  0x3a   :  { %7864 = vmatprep.mubr.msk.f32.mxu0 %vm49_vm0, %v232_v61 }
  0x3c   :  { %7865 = vmatmul.mubr.msk.f32.vlgmr.msra.gmra.mxu0 %vm49_vm0, %v233_v62 }
  0x3d   :  { %7867 = vmatprep.mubr.msk.f32.mxu0 %vm49_vm0, %v234_v63 }
  0x40   :  { %7868 = vmatmul.mubr.msk.f32.gmra.mxu0 %vm49_vm0, %v235_v1 }
  0x41   :  { %7870 = vmatprep.mubr.msk.f32.mxu0 %vm49_vm0, %v236_v2 }
  0x44   :  { %7871 = vmatmul.mubr.msk.f32.gmra.mxu0 %vm49_vm0, %v237_v3 }
  0x45   :  { %7873 = vmatprep.mubr.msk.f32.mxu0 %vm49_vm0, %v238_v4 }
  0x48   :  { %7874 = vmatmul.mubr.msk.f32.gmra.mxu0 %vm49_vm0, %v239_v5 }
  0xdc   :  { %v7786_v6 = vpop.f32.mrf.mxu0 }
  0xdd   :  { %v7806_v7 = vpop.f32.mrf.mxu1 }
  0xde   :  { %v193_v8 = vpop.f32.mrf.mxu0 }
  0xdf   :  { %v348_v9 = vpop.f32.mrf.mxu1 }
  0xe0   :  { %v7789_v10 = vpop.f32.mrf.mxu0 }
  0xe1   :  { %v7809_v11 = vpop.f32.mrf.mxu1 }
  0xe2   :  { %v203_v12 = vpop.f32.mrf.mxu0 }
  0xe3   :  { %v358_v13 = vpop.f32.mrf.mxu1 }
  0xe4   :  { %v7792_v14 = vpop.f32.mrf.mxu0 }
  0xe5   :  { %v7812_v15 = vpop.f32.mrf.mxu1 }
  0xe6   :  { %v213_v16 = vpop.f32.mrf.mxu0 }
  0xe7   :  { %v368_v17 = vpop.f32.mrf.mxu1 }
  0xe8   :  { %v7795_v18 = vpop.f32.mrf.mxu0 }
  0xe9   :  { %v7815_v19 = vpop.f32.mrf.mxu1 }
  0xea   :  { %v223_v20 = vpop.f32.mrf.mxu0 }
  0xeb   :  { %v378_v21 = vpop.f32.mrf.mxu1 }
  0xec   :  { %v7826_v22 = vpop.f32.mrf.mxu0 }
  0xed   :  { %v7846_v23 = vpop.f32.mrf.mxu1 }
  0xee   :  { %v490_v24 = vpop.f32.mrf.mxu0  ;;  %v625_v36 = vadd.f32 %v7846_v23, %v7786_v6 }
  0xef   :  { %v619_v25 = vpop.f32.mrf.mxu1 }
  0xf0   :  { %v7829_v26 = vpop.f32.mrf.mxu0  ;;  %v620_v39 = vadd.f32 %v619_v25, %v193_v8 }
  0xf1   :  { %v7849_v28 = vpop.f32.mrf.mxu1 }
  0xf2   :  { %v500_v27 = vpop.f32.mrf.mxu0  ;;  %v635_v44 = vadd.f32 %v7849_v28, %v7789_v10 }
  0xf3   :  { %v629_v31 = vpop.f32.mrf.mxu1 }
  0xf4   :  { %v7832_v29 = vpop.f32.mrf.mxu0  ;;  %v630_v50 = vadd.f32 %v629_v31, %v203_v12 }
  0xf5   :  { %v7852_v34 = vpop.f32.mrf.mxu1 }
  0xf6   :  { %v510_v30 = vpop.f32.mrf.mxu0  ;;  %v645_v56 = vadd.f32 %v7852_v34, %v7792_v14 }
  0xf7   :  { %v639_v42 = vpop.f32.mrf.mxu1 }
  0xf8   :  { %v7835_v32 = vpop.f32.mrf.mxu0  ;;  %v640_v63 = vadd.f32 %v639_v42, %v213_v16 }
  0xf9   :  { %v7855_v54 = vpop.f32.mrf.mxu1 }
  0xfa   :  { %v520_v33 = vpop.f32.mrf.mxu0 }
  0xfb   :  { %v649_v4 = vpop.f32.mrf.mxu1 }
  0xfc   :  { %v7866_v35 = vpop.f32.mrf.mxu0  ;;  %v650_v16 = vadd.f32 %v649_v4, %v223_v20 }
  0xfd   :  { %v754_v37 = vadd.f32 %v7866_v35, %v7806_v7  ;;  %v655_v7 = vadd.f32 %v7855_v54, %v7795_v18 }
  0xfe   :  { %v748_v38 = vpop.f32.mrf.mxu0 }
  0xff   :  { %v788_v40 = vadd.f32 %v754_v37, %v625_v36  ;;  %v749_v41 = vadd.f32 %v748_v38, %v348_v9 }
 0x100   :  { %v7869_v43 = vpop.f32.mrf.mxu0 }
 0x101   :  { %v796_v45 = vadd.f32 %v7826_v22, %v788_v40  ;;  %v787_v46 = vadd.f32 %v749_v41, %v620_v39  ;;  %v764_v47 = vadd.f32 %v7869_v43, %v7809_v11  ;;  %v8717_v40 = vmov 0  }
 0x102   :  { %v758_v49 = vpop.f32.mrf.mxu0  ;;  %8541 = vset.pattern.permute.xlu1 %v8717_v40  ;;  %8540 = vset.pattern.permute.xlu0 %v8717_v40 }
 0x103   :  { %v795_v51 = vadd.f32 %v787_v46, %v490_v24  ;;  %v790_v52 = vadd.f32 %v764_v47, %v635_v44  ;;  %v759_v53 = vadd.f32 %v758_v49, %v358_v13  ;;  %v811_v57 = vadd.f32 %v7018_v48, %v796_v45 }
 0x104   :  { %v7872_v55 = vpop.f32.mrf.mxu0 }
 0x105   :  { %v789_v58 = vadd.f32 %v759_v53, %v630_v50  ;;  %v774_v59 = vadd.f32 %v7872_v55, %v7812_v15  ;;  %v798_v60 = vadd.f32 %v7829_v26, %v790_v52  ;;  %v810_v62 = vadd.f32 %v7018_v48, %v795_v51 }
 0x106   :  { %v768_v61 = vpop.f32.mrf.mxu0  ;;  %v8877_v8 = vmax.f32 %v811_v57, 0.0 }
 0x107   :  { %v797_v1 = vadd.f32 %v789_v58, %v500_v27  ;;  %v792_v2 = vadd.f32 %v774_v59, %v645_v56  ;;  %v769_v3 = vadd.f32 %v768_v61, %v368_v17  ;;  %v8875_v6 = vmax.f32 %v810_v62, 0.0 }
 0x108   :  { %v7875_v5 = vpop.f32.mrf.mxu0  ;;  %v813_v11 = vadd.f32 %v7018_v48, %v798_v60 }
 0x109   :  { %v791_v9 = vadd.f32 %v769_v3, %v640_v63  ;;  %v784_v10 = vadd.f32 %v7875_v5, %v7815_v19  ;;  %v800_v12 = vadd.f32 %v7832_v29, %v792_v2  ;;  %v826_v14 = vmul.f32 %v8875_v6, %v8875_v6 }
 0x10a   :  { %v778_v13 = vpop.f32.mrf.mxu0  ;;  %v812_v15 = vadd.f32 %v7018_v48, %v797_v1  ;;  %v827_v19 = vmul.f32 %v8877_v8, %v8877_v8  ;;  %v8886_v26 = vmax.f32 %v813_v11, 0.0 }
 0x10b   :  { %v799_v22 = vadd.f32 %v791_v9, %v510_v30  ;;  %v794_v23 = vadd.f32 %v784_v10, %v655_v7  ;;  %v779_v17 = vadd.f32 %v778_v13, %v378_v21  ;;  %842 = vrot.lane.b32.xlu0 %v826_v14, %s8716_s16  ;;  %v815_v27 = vadd.f32 %v7018_v48, %v800_v12 }
 0x10c   :  { %v8882_v24 = vmax.f32 %v812_v15, 0.0 }
 0x10d   :  { %v814_v18 = vadd.f32 %v7018_v48, %v799_v22  ;;  %v793_v25 = vadd.f32 %v779_v17, %v650_v16  ;;  %v802_v28 = vadd.f32 %v7835_v32, %v794_v23  ;;  %v8896_v34 = vmax.f32 %v815_v27, 0.0  ;;  %v951_v27 = vld [vmem:[%s10781_s3] sm:$0xff] }
 0x10e   :  { %v828_v20 = vmul.f32 %v8882_v24, %v8882_v24  ;;  %v829_v32 = vmul.f32 %v8886_v26, %v8886_v26 }
 0x10f   :  { %v8890_v29 = vmax.f32 %v814_v18, 0.0  ;;  %v801_v21 = vadd.f32 %v793_v25, %v520_v33  ;;  %844 = vrot.lane.b32.xlu0 %v827_v19, %s8716_s16  ;;  %v817_v35 = vadd.f32 %v7018_v48, %v802_v28  ;;  %v831_v38 = vmul.f32 %v8896_v34, %v8896_v34 }
 0x110   :  { %846 = vrot.lane.b32.xlu1 %v828_v20, %s8716_s16 }
 0x111   :  { %v816_v30 = vadd.f32 %v7018_v48, %v801_v21  ;;  %v830_v31 = vmul.f32 %v8890_v29, %v8890_v29  ;;  %v8906_v37 = vmax.f32 %v817_v35, 0.0  ;;  %v953_v21 = vld [vmem:[%s10781_s3 + $0x10] sm:$0xff]  ;;  %v983_v35 = vld [vmem:[%s10782_s4] sm:$0xff] }
 0x113   :  { %v8900_v36 = vmax.f32 %v816_v30, 0.0  ;;  %850 = vrot.lane.b32.xlu0 %v830_v31, %s8716_s16  ;;  %v833_v39 = vmul.f32 %v8906_v37, %v8906_v37  ;;  %v952_v31 = vld [vmem:[%s10781_s3 + $0x8] sm:$0xff] }
 0x114   :  { %848 = vrot.lane.b32.xlu1 %v829_v32, %s8716_s16  ;;  %v984_v32 = vld [vmem:[%s10782_s4 + $0x8] sm:$0xff] }
 0x115   :  { %v832_v33 = vmul.f32 %v8900_v36, %v8900_v36 }
 0x117   :  { %854 = vrot.lane.b32.xlu0 %v832_v33, %s8716_s16  ;;  %v954_v33 = vld [vmem:[%s10781_s3 + $0x18] sm:$0xff] }
 0x118   :  { %852 = vrot.lane.b32.xlu1 %v831_v38, %s8716_s16  ;;  %v986_v38 = vld [vmem:[%s10782_s4 + $0x18] sm:$0xff] }
 0x11c   :  { %856 = vrot.lane.b32.xlu1 %v833_v39, %s8716_s16 }
 0x17d   :  { %v843_v41 = vpop.permute.xlu0 %842 }
 0x17e   :  { %v866_v42 = vsel %vm49_vm0, %v8875_v6, %v843_v41 }
 0x17f   :  { %v875_v47 = vsel %vm874_vm3, %v866_v42, 0.0  ;;  %v927_v42 = vlaneseq }
 0x181   :  { %v845_v44 = vpop.permute.xlu0 %844 }
 0x182   :  { %v847_v43 = vpop.permute.xlu1 %846  ;;  %v867_v46 = vsel %vm49_vm0, %v8877_v8, %v845_v44 }
 0x183   :  { %v868_v45 = vsel %vm49_vm0, %v8882_v24, %v847_v43  ;;  %v876_v48 = vsel %vm874_vm3, %v867_v46, 0.0  ;;  %v8972_v46 = vshrl.u32 %v927_v42, 7 }
 0x184   :  { %v877_v49 = vadd.f32 %v876_v48, %v875_v47  ;;  %v878_v50 = vsel %vm874_vm3, %v868_v45, 0.0  ;;  %v1048_v47 = vld [vmem:[#allocation3 + $0xd8] sm:$0xff]  ;;  %v1047_v48 = vld [vmem:[#allocation3 + $0xd0] sm:$0xff] }
 0x185   :  { %v851_v52 = vpop.permute.xlu0 %850  ;;  %7876 = vmatprep.subr.mxu1 %v1048_v47 }
 0x186   :  { %v849_v51 = vpop.permute.xlu1 %848  ;;  %v879_v54 = vadd.f32 %v878_v50, %v877_v49  ;;  %v870_v57 = vsel %vm49_vm0, %v8890_v29, %v851_v52  ;;  %v8975_v49 = vsub.s32 0, %v8972_v46  ;;  %7877 = vmatpush3.msra.mxu1 %v1048_v47  ;;  %v1046_v50 = vld [vmem:[#allocation3 + $0xc8] sm:$0xff] }
 0x187   :  { %v869_v53 = vsel %vm49_vm0, %v8886_v26, %v849_v51  ;;  %v888_v63 = vsel %vm874_vm3, %v870_v57, 0.0  ;;  %7878 = vmatprep.subr.mxu1 %v1047_v48 }
 0x188   :  { %v880_v55 = vsel %vm874_vm3, %v869_v53, 0.0  ;;  %7879 = vmatpush3.msra.mxu1 %v1047_v48  ;;  %v1045_v53 = vld [vmem:[#allocation3 + $0xc0] sm:$0xff] }
 0x189   :  { %v881_v56 = vadd.f32 %v880_v55, %v879_v54  ;;  %v855_v59 = vpop.permute.xlu0 %854  ;;  %7880 = vmatprep.subr.mxu1 %v1046_v50  ;;  %v985_v54 = vld [vmem:[%s10782_s4 + $0x10] sm:$0xff]  ;;  %v1203_v55 = vld [vmem:[#allocation3 + $0x118] sm:$0xff] }
 0x18a   :  { %v853_v58 = vpop.permute.xlu1 %852  ;;  %v872_v62 = vsel %vm49_vm0, %v8900_v36, %v855_v59  ;;  %7881 = vmatpush3.msra.mxu1 %v1046_v50  ;;  %7896 = vmatprep.subr.mxu0 %v1203_v55  ;;  %v1201_v59 = vld [vmem:[#allocation3 + $0x108] sm:$0xff]  ;;  %v1190_v50 = vld [vmem:[#allocation3 + $0xf8] sm:$0xff] }
 0x18b   :  { %v882_v60 = vrot.slane %v881_v56, 4  ;;  %v871_v61 = vsel %vm49_vm0, %v8896_v34, %v853_v58  ;;  %v891_v4 = vsel %vm874_vm3, %v872_v62, 0.0  ;;  %7882 = vmatprep.subr.mxu1 %v1045_v53  ;;  %7897 = vmatpush3.msra.mxu0 %v1203_v55  ;;  %v8984_v62 = vld [vmem:[#allocation3 + $0xb8] sm:$0xff]  ;;  %v1034_v55 = vld [vmem:[#allocation3 + $0xb0] sm:$0xff] }
 0x18c   :  { %v889_v1 = vsel %vm874_vm3, %v871_v61, 0.0  ;;  %7883 = vmatpush3.msra.mxu1 %v1045_v53  ;;  %v1345_v61 = vld [vmem:[#allocation3 + $0x138] sm:$0xff] }
 0x18d   :  { %v883_v2 = vadd.f32 %v882_v60, %v881_v56  ;;  %v890_v3 = vadd.f32 %v889_v1, %v888_v63  ;;  %v1202_v56 = vld [vmem:[#allocation3 + $0x110] sm:$0xff]  ;;  %v1200_v60 = vld [vmem:[#allocation3 + $0x100] sm:$0xff]  ;;  %7916 = vmatprep.subr.mxu1 %v1345_v61 }
 0x18e   :  { %v857_v5 = vpop.permute.xlu1 %856  ;;  %7898 = vmatprep.subr.mxu0 %v1202_v56 }
 0x18f   :  { %v884_v7 = vrot.slane %v883_v2, 2  ;;  %v892_v9 = vadd.f32 %v891_v4, %v890_v3  ;;  %v873_v10 = vsel %vm49_vm0, %v8906_v37, %v857_v5  ;;  %7899 = vmatpush3.msra.mxu0 %v1202_v56 }
 0x190   :  { %v893_v11 = vsel %vm874_vm3, %v873_v10, 0.0  ;;  %7900 = vmatprep.subr.mxu0 %v1201_v59 }
 0x191   :  { %v885_v12 = vadd.f32 %v884_v7, %v883_v2  ;;  %v894_v13 = vadd.f32 %v893_v11, %v892_v9  ;;  %7901 = vmatpush3.msra.mxu0 %v1201_v59 }
 0x192   :  { %7902 = vmatprep.subr.mxu0 %v1200_v60 }
 0x193   :  { %v886_v14 = vrot.slane %v885_v12, 1  ;;  %v895_v15 = vrot.slane %v894_v13, 4  ;;  %7903 = vmatpush3.msra.mxu0 %v1200_v60 }
 0x194   :  { %7936 = vmatprep.subr.mxu0 %v8984_v62 }
 0x195   :  { %v887_v16 = vadd.f32 %v886_v14, %v885_v12  ;;  %v896_v22 = vadd.f32 %v895_v15, %v894_v13 }
 0x197   :  { %v8939_v23 = vmul.f32 0.03125, %v887_v16  ;;  %v897_v17 = vrot.slane %v896_v22, 2 }
 0x199   :  { %v898_v18 = vadd.f32 %v897_v17, %v896_v22  ;;  %v903_v25 = vmul.f32 %v8939_v23, %v8939_v23  ;;  %v915_v7 = vsub.f32 %v8875_v6, %v8939_v23  ;;  %v916_v9 = vsub.f32 %v8877_v8, %v8939_v23 }
 0x19a   :  { %v918_v10 = vsub.f32 %v8886_v26, %v8939_v23  ;;  %v917_v6 = vsub.f32 %v8882_v24, %v8939_v23  ;;  %v1344_v24 = vld [vmem:[#allocation3 + $0x130] sm:$0xff] }
 0x19b   :  { %v899_v19 = vrot.slane %v898_v18, 1  ;;  %907 = vrot.lane.b32.xlu0 %v903_v25, %s8716_s16 }
 0x19d   :  { %v900_v28 = vadd.f32 %v899_v19, %v898_v18 }
 0x19f   :  { %v8947_v20 = vmul.f32 0.03125, %v900_v28  ;;  %957 = vperm.xlu0 %8540, %v951_v27  }
 0x1a1   :  { %v904_v30 = vmul.f32 %v8947_v20, %v8947_v20 }
 0x1a3   :  { %909 = vrot.lane.b32.xlu1 %v904_v30, %s8716_s16  ;;  %967 = vperm.xlu0 %8540, %v953_v21  }
 0x1a7   :  { %962 = vperm.xlu1 %8541, %v952_v31  }
 0x1ab   :  { %989 = vperm.xlu1 %8541, %v983_v35   ;;  %v920_v35 = vsub.f32 %v8896_v34, %v8947_v20 }
 0x1af   :  { %994 = vperm.xlu1 %8541, %v984_v32   ;;  %v921_v32 = vsub.f32 %v8900_v36, %v8947_v20 }
 0x1b3   :  { %972 = vperm.xlu1 %8541, %v954_v33   ;;  %v922_v33 = vsub.f32 %v8906_v37, %v8947_v20 }
 0x1b7   :  { %1004 = vperm.xlu1 %8541, %v986_v38  }
 0x20d   :  { %v908_v39 = vpop.permute.xlu0 %907 }
 0x20e   :  { %v913_v40 = vsub.f32 %v8939_v23, %v908_v39  ;;  %v919_v23 = vsub.f32 %v8890_v29, %v8947_v20  ;;  %v1343_v39 = vld [vmem:[#allocation3 + $0x128] sm:$0xff] }
 0x210   :  { %v923_v41 = vadd.f32 1e-05, %v913_v40 }
 0x212   :  { %8542 = vrsqrt.f32 %v923_v41 }
 0x215   :  { %v910_v43 = vpop.permute.xlu1 %909 }
 0x216   :  { %v914_v44 = vsub.f32 %v8947_v20, %v910_v43 }
 0x218   :  { %v924_v45 = vadd.f32 1e-05, %v914_v44  ;;  %v1342_v44 = vld [vmem:[#allocation3 + $0x120] sm:$0xff] }
 0x21a   :  { %8544 = vrsqrt.f32 %v924_v45  ;;  %v958_v2 = vpop.permute.xlu0 %957 }
 0x21e   :  { %v968_v4 = vpop.permute.xlu0 %967 }
 0x21f   :  { %v8543_v51 = vpop.eup %8542 }
 0x220   :  { %v930_v52 = vrot.slane %v8543_v51, %v8975_v49 }
 0x222   :  { %937 = vrot.lane.b32.xlu0 %v930_v52, %s8718_s30  ;;  %v963_v63 = vpop.permute.xlu1 %962 }
 0x226   :  { %999 = vperm.xlu0 %8540, %v985_v54   ;;  %v990_v1 = vpop.permute.xlu1 %989 }
 0x227   :  { %v8545_v57 = vpop.eup %8544 }
 0x228   :  { %v934_v58 = vrot.slane %v8545_v57, %v8975_v49  ;;  %v1033_v57 = vld [vmem:[#allocation3 + $0xa8] sm:$0xff] }
 0x22a   :  { %939 = vrot.lane.b32.xlu0 %v934_v58, %s8718_s30  ;;  %v995_v3 = vpop.permute.xlu1 %994 }
 0x22e   :  { %v973_v5 = vpop.permute.xlu1 %972 }
 0x232   :  { %v1005_v17 = vpop.permute.xlu1 %1004 }
 0x294   :  { %v938_v11 = vpop.permute.xlu0 %937 }
 0x295   :  { %v943_v12 = vmul.f32 %v938_v11, %v915_v7  ;;  %v944_v13 = vmul.f32 %v938_v11, %v916_v9  ;;  %v946_v14 = vmul.f32 %v938_v11, %v918_v10  ;;  %v945_v8 = vmul.f32 %v938_v11, %v917_v6 }
 0x297   :  { %v975_v15 = vmul.f32 %v958_v2, %v943_v12  ;;  %v976_v16 = vmul.f32 %v963_v63, %v944_v13  ;;  %v978_v22 = vmul.f32 %v973_v5, %v946_v14  ;;  %v977_v26 = vmul.f32 %v968_v4, %v945_v8  ;;  %v1189_v12 = vld [vmem:[#allocation3 + $0xf0] sm:$0xff] }
 0x299   :  { %v8993_v18 = vadd.f32 %v990_v1, %v975_v15  ;;  %v8995_v25 = vadd.f32 %v995_v3, %v976_v16  ;;  %v8997_v19 = vadd.f32 %v1005_v17, %v978_v22  ;;  %v1188_v22 = vld [vmem:[#allocation3 + $0xe8] sm:$0xff] }
 0x29b   :  { %1015 = vst.msk [vmem:[#allocation2 + $0x2] sm:$0xff] %vm49_vm0, %v8993_v18  ;;  %1016 = vst.msk [vmem:[#allocation2 + $0xa] sm:$0xff] %vm49_vm0, %v8995_v25 }
 0x29c   :  { %1018 = vst.msk [vmem:[#allocation2 + $0x1a] sm:$0xff] %vm49_vm0, %v8997_v19 }
 0x2a1   :  { %v1000_v27 = vpop.permute.xlu0 %999 }
 0x2a2   :  { %v9007_v28 = vadd.f32 %v1000_v27, %v977_v26  ;;  %v1036_v21 = vld [vmem:[#allocation2 + $0x1] sm:$0xff]  ;;  %v1037_v31 = vld [vmem:[#allocation2 + $0x9] sm:$0xff] }
 0x2a3   :  { %v1191_v30 = vld [vmem:[#allocation2 + $0x3] sm:$0xff]  ;;  %7884 = vmatprep.mubr.msk.f32.mxu1 %vm49_vm0, %v1036_v21  ;;  %v1194_v56 = vld [vmem:[#allocation2 + $0x1b] sm:$0xff] }
 0x2a4   :  { %7904 = vmatprep.mubr.msk.f32.mxu0 %vm49_vm0, %v1191_v30  ;;  %1017 = vst.msk [vmem:[#allocation2 + $0x12] sm:$0xff] %vm49_vm0, %v9007_v28  ;;  %7885 = vmatmul.mubr.msk.f32.vlgmr.msra.gmra.mxu1 %vm49_vm0, %v1037_v31  ;;  %v1024_v9 = vld [vmem:[#allocation2 + $0x8] sm:$0xff]  ;;  %v1336_v13 = vld [vmem:[#allocation2 + $0x1c] sm:$0xff] }
 0x2a5   :  { %v940_v38 = vpop.permute.xlu0 %939  ;;  %7917 = vmatpush3.msra.mxu1 %v1345_v61  ;;  %v1178_v31 = vld [vmem:[#allocation2 + $0x2] sm:$0xff] }
 0x2a6   :  { %v947_v40 = vmul.f32 %v940_v38, %v919_v23  ;;  %v948_v41 = vmul.f32 %v940_v38, %v920_v35  ;;  %v949_v42 = vmul.f32 %v940_v38, %v921_v32  ;;  %v950_v43 = vmul.f32 %v940_v38, %v922_v33  ;;  %7918 = vmatprep.subr.mxu1 %v1344_v24  ;;  %v1181_v35 = vld [vmem:[#allocation2 + $0x1a] sm:$0xff] }
 0x2a7   :  { %7919 = vmatpush3.msra.mxu1 %v1344_v24  ;;  %v1179_v24 = vld [vmem:[#allocation2 + $0xa] sm:$0xff] }
 0x2a8   :  { %v979_v29 = vmul.f32 %v958_v2, %v947_v40  ;;  %v980_v45 = vmul.f32 %v963_v63, %v948_v41  ;;  %v981_v47 = vmul.f32 %v968_v4, %v949_v42  ;;  %v982_v34 = vmul.f32 %v973_v5, %v950_v43  ;;  %7920 = vmatprep.subr.mxu1 %v1343_v39  ;;  %v1032_v63 = vld [vmem:[#allocation3 + $0xa0] sm:$0xff]  ;;  %v1333_v4 = vld [vmem:[#allocation2 + $0x4] sm:$0xff] }
 0x2a9   :  { %7921 = vmatpush3.msra.mxu1 %v1343_v39  ;;  %v1023_v5 = vld [vmem:[#allocation2] sm:$0xff] }
 0x2aa   :  { %v9022_v36 = vadd.f32 %v990_v1, %v979_v29  ;;  %v9024_v48 = vadd.f32 %v995_v3, %v980_v45  ;;  %v9026_v37 = vadd.f32 %v1000_v27, %v981_v47  ;;  %v9028_v20 = vadd.f32 %v1005_v17, %v982_v34  ;;  %7922 = vmatprep.subr.mxu1 %v1342_v44  ;;  %v1187_v27 = vld [vmem:[#allocation3 + $0xe0] sm:$0xff] }
 0x2ab   :  { %v1038_v51 = vld [vmem:[#allocation2 + $0x11] sm:$0xff]  ;;  %v1039_v53 = vld [vmem:[#allocation2 + $0x19] sm:$0xff]  ;;  %7923 = vmatpush3.msra.mxu1 %v1342_v44 }
 0x2ac   :  { %v1192_v52 = vld [vmem:[#allocation2 + $0xb] sm:$0xff]  ;;  %1019 = vst.msk [vmem:[#allocation2 + $0x2a] sm:$0xff] %vm49_vm0, %v9022_v36  ;;  %1020 = vst.msk [vmem:[#allocation2 + $0x32] sm:$0xff] %vm49_vm0, %v9024_v48  ;;  %7887 = vmatprep.mubr.msk.f32.mxu1 %vm49_vm0, %v1038_v51  ;;  %v1193_v54 = vld [vmem:[#allocation2 + $0x13] sm:$0xff]  ;;  %7956 = vmatprep.subr.mxu1 %v1190_v50 }
 0x2ad   :  { %1021 = vst.msk [vmem:[#allocation2 + $0x3a] sm:$0xff] %vm49_vm0, %v9026_v37  ;;  %1022 = vst.msk [vmem:[#allocation2 + $0x42] sm:$0xff] %vm49_vm0, %v9028_v20  ;;  %7905 = vmatmul.mubr.msk.f32.vlgmr.msra.gmra.mxu0 %vm49_vm0, %v1192_v52  ;;  %7888 = vmatmul.mubr.msk.f32.gmra.mxu1 %vm49_vm0, %v1039_v53  ;;  %v1334_v7 = vld [vmem:[#allocation2 + $0xc] sm:$0xff]  ;;  %v1335_v10 = vld [vmem:[#allocation2 + $0x14] sm:$0xff] }
 0x2ae   :  { %7907 = vmatprep.mubr.msk.f32.mxu0 %vm49_vm0, %v1193_v54  ;;  %7937 = vmatpush3.msra.mxu0 %v8984_v62  ;;  %v1025_v11 = vld [vmem:[#allocation2 + $0x10] sm:$0xff]  ;;  %v1026_v14 = vld [vmem:[#allocation2 + $0x18] sm:$0xff] }
 0x2af   :  { %7938 = vmatprep.subr.mxu0 %v1034_v55  ;;  %v1180_v23 = vld [vmem:[#allocation2 + $0x12] sm:$0xff] }
 0x2b0   :  { %7939 = vmatpush3.msra.mxu0 %v1034_v55 }
 0x2b1   :  { %7908 = vmatmul.mubr.msk.f32.gmra.mxu0 %vm49_vm0, %v1194_v56  ;;  %7940 = vmatprep.subr.mxu0 %v1033_v57 }
 0x2b2   :  { %7941 = vmatpush3.msra.mxu0 %v1033_v57 }
 0x2b3   :  { %v1040_v58 = vld [vmem:[#allocation2 + $0x29] sm:$0xff]  ;;  %v1041_v60 = vld [vmem:[#allocation2 + $0x31] sm:$0xff]  ;;  %7942 = vmatprep.subr.mxu0 %v1032_v63 }
 0x2b4   :  { %v1195_v59 = vld [vmem:[#allocation2 + $0x2b] sm:$0xff]  ;;  %7890 = vmatprep.mubr.msk.f32.mxu1 %vm49_vm0, %v1040_v58  ;;  %v1196_v61 = vld [vmem:[#allocation2 + $0x33] sm:$0xff]  ;;  %v1197_v1 = vld [vmem:[#allocation2 + $0x3b] sm:$0xff]  ;;  %7943 = vmatpush3.msra.mxu0 %v1032_v63 }
 0x2b5   :  { %7910 = vmatprep.mubr.msk.f32.mxu0 %vm49_vm0, %v1195_v59  ;;  %7891 = vmatmul.mubr.msk.f32.gmra.mxu1 %vm49_vm0, %v1041_v60  ;;  %v1042_v62 = vld [vmem:[#allocation2 + $0x39] sm:$0xff]  ;;  %v1043_v2 = vld [vmem:[#allocation2 + $0x41] sm:$0xff]  ;;  %v1337_v15 = vld [vmem:[#allocation2 + $0x2c] sm:$0xff] }
 0x2b6   :  { %7911 = vmatmul.mubr.msk.f32.gmra.mxu0 %vm49_vm0, %v1196_v61  ;;  %7893 = vmatprep.mubr.msk.f32.mxu1 %vm49_vm0, %v1042_v62  ;;  %v1198_v3 = vld [vmem:[#allocation2 + $0x43] sm:$0xff]  ;;  %v1338_v17 = vld [vmem:[#allocation2 + $0x34] sm:$0xff] }
 0x2b7   :  { %7913 = vmatprep.mubr.msk.f32.mxu0 %vm49_vm0, %v1197_v1  ;;  %v1027_v16 = vld [vmem:[#allocation2 + $0x28] sm:$0xff]  ;;  %v1028_v6 = vld [vmem:[#allocation2 + $0x30] sm:$0xff]  ;;  %v1339_v8 = vld [vmem:[#allocation2 + $0x3c] sm:$0xff] }
 0x2b8   :  { %v1029_v26 = vld [vmem:[#allocation2 + $0x38] sm:$0xff]  ;;  %v1340_v21 = vld [vmem:[#allocation2 + $0x44] sm:$0xff] }
 0x2b9   :  { %7894 = vmatmul.mubr.msk.f32.gmra.mxu1 %vm49_vm0, %v1043_v2  ;;  %v1030_v30 = vld [vmem:[#allocation2 + $0x40] sm:$0xff]  ;;  %v1182_v32 = vld [vmem:[#allocation2 + $0x2a] sm:$0xff]  ;;  %v1183_v33 = vld [vmem:[#allocation2 + $0x32] sm:$0xff] }
 0x2ba   :  { %7914 = vmatmul.mubr.msk.f32.gmra.mxu0 %vm49_vm0, %v1198_v3  ;;  %7924 = vmatprep.mubr.msk.f32.mxu1 %vm49_vm0, %v1333_v4  ;;  %v1184_v38 = vld [vmem:[#allocation2 + $0x3a] sm:$0xff]  ;;  %v1185_v39 = vld [vmem:[#allocation2 + $0x42] sm:$0xff] }
 0x2bb   :  { %7944 = vmatprep.mubr.msk.f32.mxu0 %vm49_vm0, %v1023_v5 }
 0x2bd   :  { %7925 = vmatmul.mubr.msk.f32.vlgmr.msra.gmra.mxu1 %vm49_vm0, %v1334_v7 }
 0x2be   :  { %7945 = vmatmul.mubr.msk.f32.vlgmr.msra.gmra.mxu0 %vm49_vm0, %v1024_v9  ;;  %7927 = vmatprep.mubr.msk.f32.mxu1 %vm49_vm0, %v1335_v10 }
 0x2bf   :  { %7947 = vmatprep.mubr.msk.f32.mxu0 %vm49_vm0, %v1025_v11  ;;  %7957 = vmatpush3.msra.mxu1 %v1190_v50 }
 0x2c0   :  { %7958 = vmatprep.subr.mxu1 %v1189_v12 }
 0x2c1   :  { %7928 = vmatmul.mubr.msk.f32.gmra.mxu1 %vm49_vm0, %v1336_v13 }
 0x2c2   :  { %7948 = vmatmul.mubr.msk.f32.gmra.mxu0 %vm49_vm0, %v1026_v14  ;;  %7930 = vmatprep.mubr.msk.f32.mxu1 %vm49_vm0, %v1337_v15 }
 0x2c3   :  { %7950 = vmatprep.mubr.msk.f32.mxu0 %vm49_vm0, %v1027_v16  ;;  %7959 = vmatpush3.msra.mxu1 %v1189_v12 }
 0x2c4   :  { %7960 = vmatprep.subr.mxu1 %v1188_v22 }
 0x2c5   :  { %7931 = vmatmul.mubr.msk.f32.gmra.mxu1 %vm49_vm0, %v1338_v17 }
 0x2c6   :  { %7951 = vmatmul.mubr.msk.f32.gmra.mxu0 %vm49_vm0, %v1028_v6  ;;  %7933 = vmatprep.mubr.msk.f32.mxu1 %vm49_vm0, %v1339_v8 }
 0x2c7   :  { %7953 = vmatprep.mubr.msk.f32.mxu0 %vm49_vm0, %v1029_v26  ;;  %7961 = vmatpush3.msra.mxu1 %v1188_v22  ;;  %v7060_v22 = vld [vmem:[%s10780_s2 + $0x1] ss:$0 sm:$0xff] }
 0x2c8   :  { %7962 = vmatprep.subr.mxu1 %v1187_v27 }
 0x2c9   :  { %7934 = vmatmul.mubr.msk.f32.gmra.mxu1 %vm49_vm0, %v1340_v21 }
 0x2ca   :  { %7954 = vmatmul.mubr.msk.f32.gmra.mxu0 %vm49_vm0, %v1030_v30  ;;  %7963 = vmatpush3.msra.mxu1 %v1187_v27 }
 0x2cb   :  { %7964 = vmatprep.mubr.msk.f32.mxu1 %vm49_vm0, %v1178_v31 }
 0x2cd   :  { %7965 = vmatmul.mubr.msk.f32.vlgmr.msra.gmra.mxu1 %vm49_vm0, %v1179_v24 }
 0x2ce   :  { %7967 = vmatprep.mubr.msk.f32.mxu1 %vm49_vm0, %v1180_v23 }
 0x2d1   :  { %7968 = vmatmul.mubr.msk.f32.gmra.mxu1 %vm49_vm0, %v1181_v35 }
 0x2d2   :  { %7970 = vmatprep.mubr.msk.f32.mxu1 %vm49_vm0, %v1182_v32 }
 0x2d5   :  { %7971 = vmatmul.mubr.msk.f32.gmra.mxu1 %vm49_vm0, %v1183_v33 }
 0x2d6   :  { %7973 = vmatprep.mubr.msk.f32.mxu1 %vm49_vm0, %v1184_v38 }
 0x2d9   :  { %7974 = vmatmul.mubr.msk.f32.gmra.mxu1 %vm49_vm0, %v1185_v39 }
 0x364   :  { %v7886_v40 = vpop.f32.mrf.mxu1 }
 0x366   :  { %v1139_v42 = vpop.f32.mrf.mxu1 }
 0x36d   :  { %v7906_v41 = vpop.f32.mrf.mxu0  ;;  %v7889_v44 = vpop.f32.mrf.mxu1 }
 0x36f   :  { %v1294_v43 = vpop.f32.mrf.mxu0  ;;  %v1149_v47 = vpop.f32.mrf.mxu1 }
 0x371   :  { %v7909_v29 = vpop.f32.mrf.mxu0 }
 0x373   :  { %v1304_v45 = vpop.f32.mrf.mxu0 }
 0x375   :  { %v7892_v34 = vpop.f32.mrf.mxu1 }
 0x376   :  { %v7912_v50 = vpop.f32.mrf.mxu0 }
 0x377   :  { %v1159_v51 = vpop.f32.mrf.mxu1 }
 0x378   :  { %v1314_v52 = vpop.f32.mrf.mxu0 }
 0x379   :  { %v7895_v53 = vpop.f32.mrf.mxu1 }
 0x37a   :  { %v7915_v54 = vpop.f32.mrf.mxu0 }
 0x37b   :  { %v1169_v55 = vpop.f32.mrf.mxu1 }
 0x37c   :  { %v9076_v56 = vpop.f32.mrf.mxu0 }
 0x37d   :  { %v7926_v57 = vpop.f32.mrf.mxu1 }
 0x37e   :  { %v7946_v58 = vpop.f32.mrf.mxu0 }
 0x37f   :  { %v1436_v59 = vpop.f32.mrf.mxu1  ;;  %v1571_v10 = vadd.f32 %v7946_v58, %v7886_v40 }
 0x380   :  { %v1565_v60 = vpop.f32.mrf.mxu0 }
 0x381   :  { %v7929_v61 = vpop.f32.mrf.mxu1  ;;  %v1566_v13 = vadd.f32 %v1565_v60, %v1139_v42 }
 0x382   :  { %v7949_v62 = vpop.f32.mrf.mxu0 }
 0x383   :  { %v1446_v63 = vpop.f32.mrf.mxu1  ;;  %v1581_v6 = vadd.f32 %v7949_v62, %v7889_v44 }
 0x384   :  { %v1575_v3 = vpop.f32.mrf.mxu0 }
 0x385   :  { %v7932_v1 = vpop.f32.mrf.mxu1  ;;  %v1576_v21 = vadd.f32 %v1575_v3, %v1149_v47 }
 0x386   :  { %v7952_v7 = vpop.f32.mrf.mxu0 }
 0x387   :  { %v1456_v2 = vpop.f32.mrf.mxu1  ;;  %v1591_v42 = vadd.f32 %v7952_v7, %v7892_v34 }
 0x388   :  { %v1585_v14 = vpop.f32.mrf.mxu0 }
 0x389   :  { %v7935_v4 = vpop.f32.mrf.mxu1 }
 0x38a   :  { %v7955_v31 = vpop.f32.mrf.mxu0 }
 0x38b   :  { %v9078_v5 = vpop.f32.mrf.mxu1  ;;  %v1601_v3 = vadd.f32 %v7955_v31, %v7895_v53 }
 0x38d   :  { %v7966_v9 = vpop.f32.mrf.mxu1 }
 0x38e   :  { %v1700_v11 = vadd.f32 %v7966_v9, %v7906_v41 }
 0x38f   :  { %v1694_v12 = vpop.f32.mrf.mxu1 }
 0x390   :  { %v1734_v15 = vadd.f32 %v1700_v11, %v1571_v10  ;;  %v1695_v16 = vadd.f32 %v1694_v12, %v1294_v43  ;;  %v1586_v43 = vadd.f32 %v1585_v14, %v1159_v51 }
 0x391   :  { %v7969_v17 = vpop.f32.mrf.mxu1 }
 0x392   :  { %v1742_v8 = vadd.f32 %v7926_v57, %v1734_v15  ;;  %v1733_v26 = vadd.f32 %v1695_v16, %v1566_v13  ;;  %v1710_v27 = vadd.f32 %v7969_v17, %v7909_v29  ;;  %v1595_v57 = vpop.f32.mrf.mxu0 }
 0x393   :  { %v1704_v30 = vpop.f32.mrf.mxu1  ;;  %v1596_v51 = vadd.f32 %v1595_v57, %v1169_v55 }
 0x394   :  { %v1758_v24 = vadd.f32 %v7060_v22, %v1742_v8  ;;  %v1741_v23 = vadd.f32 %v1733_v26, %v1436_v59  ;;  %v1736_v35 = vadd.f32 %v1710_v27, %v1581_v6  ;;  %v1705_v32 = vadd.f32 %v1704_v30, %v1304_v45 }
 0x395   :  { %v7972_v33 = vpop.f32.mrf.mxu1 }
 0x396   :  { %v9083_v38 = vmax.f32 %v1758_v24, 0.0  ;;  %v1757_v39 = vadd.f32 %v7060_v22, %v1741_v23  ;;  %v1744_v40 = vadd.f32 %v7929_v61, %v1736_v35  ;;  %v1735_v41 = vadd.f32 %v1705_v32, %v1576_v21 }
 0x397   :  { %v1720_v58 = vadd.f32 %v7972_v33, %v7912_v50  ;;  %v1714_v44 = vpop.f32.mrf.mxu1 }
 0x398   :  { %v9085_v60 = vmax.f32 %v1757_v39, 0.0  ;;  %v1760_v29 = vadd.f32 %v7060_v22, %v1744_v40  ;;  %v1743_v47 = vadd.f32 %v1735_v41, %v1446_v63  ;;  %v1715_v62 = vadd.f32 %v1714_v44, %v1314_v52 }
 0x399   :  { %v1738_v59 = vadd.f32 %v1720_v58, %v1591_v42  ;;  %v7975_v9 = vpop.f32.mrf.mxu1  ;;  %v1774_v45 = vmul.f32 %v9083_v38, %v9083_v38 }
 0x39a   :  { %v9089_v10 = vmax.f32 %v1760_v29, 0.0  ;;  %v1759_v61 = vadd.f32 %v7060_v22, %v1743_v47  ;;  %v1737_v11 = vadd.f32 %v1715_v62, %v1586_v43  ;;  %v1730_v34 = vadd.f32 %v7975_v9, %v7915_v54 }
 0x39b   :  { %v1746_v50 = vadd.f32 %v7932_v1, %v1738_v59  ;;  %1791 = vrot.lane.b32.xlu0 %v1774_v45, %s8716_s16  ;;  %v1724_v7 = vpop.f32.mrf.mxu1  ;;  %v1773_v63 = vmul.f32 %v9085_v60, %v9085_v60 }
 0x39c   :  { %v9094_v52 = vmax.f32 %v1759_v61, 0.0  ;;  %v1745_v53 = vadd.f32 %v1737_v11, %v1456_v2  ;;  %v1740_v12 = vadd.f32 %v1730_v34, %v1601_v3  ;;  %v1725_v13 = vadd.f32 %v1724_v7, %v9076_v56 }
 0x39d   :  { %v1762_v14 = vadd.f32 %v7060_v22, %v1746_v50  ;;  %1789 = vrot.lane.b32.xlu1 %v1773_v63, %s8716_s16  ;;  %v1776_v54 = vmul.f32 %v9089_v10, %v9089_v10 }
 0x39e   :  { %v1761_v55 = vadd.f32 %v7060_v22, %v1745_v53  ;;  %v1748_v1 = vadd.f32 %v7935_v4, %v1740_v12  ;;  %v1739_v15 = vadd.f32 %v1725_v13, %v1596_v51  ;;  %v1775_v16 = vmul.f32 %v9094_v52, %v9094_v52 }
 0x39f   :  { %v9102_v17 = vmax.f32 %v1762_v14, 0.0  ;;  %1795 = vrot.lane.b32.xlu0 %v1776_v54, %s8716_s16 }
 0x3a0   :  { %v9105_v2 = vmax.f32 %v1761_v55, 0.0  ;;  %v1764_v6 = vadd.f32 %v7060_v22, %v1748_v1  ;;  %v1747_v56 = vadd.f32 %v1739_v15, %v9078_v5 }
 0x3a1   :  { %1793 = vrot.lane.b32.xlu1 %v1775_v16, %s8716_s16  ;;  %v1778_v8 = vmul.f32 %v9102_v17, %v9102_v17 }
 0x3a2   :  { %v9111_v26 = vmax.f32 %v1764_v6, 0.0  ;;  %v1763_v4 = vadd.f32 %v7060_v22, %v1747_v56  ;;  %v1777_v27 = vmul.f32 %v9105_v2, %v9105_v2 }
 0x3a3   :  { %1799 = vrot.lane.b32.xlu0 %v1778_v8, %s8716_s16 }
 0x3a4   :  { %v9116_v21 = vmax.f32 %v1763_v4, 0.0  ;;  %v1780_v30 = vmul.f32 %v9111_v26, %v9111_v26 }
 0x3a5   :  { %1797 = vrot.lane.b32.xlu1 %v1777_v27, %s8716_s16 }
 0x3a6   :  { %v1779_v5 = vmul.f32 %v9116_v21, %v9116_v21 }
 0x3a7   :  { %1803 = vrot.lane.b32.xlu0 %v1780_v30, %s8716_s16  ;;  %v7061_v30 = vld [vmem:[%s10781_s3 + $0x20] sm:$0xff] }
 0x3a9   :  { %1801 = vrot.lane.b32.xlu1 %v1779_v5, %s8716_s16 }
 0x40d   :  { %v1792_v22 = vpop.permute.xlu0 %1791 }
 0x40e   :  { %v1814_v24 = vsel %vm49_vm0, %v9083_v38, %v1792_v22 }
 0x40f   :  { %v1790_v31 = vpop.permute.xlu1 %1789  ;;  %v1822_v33 = vsel %vm874_vm3, %v1814_v24, 0.0 }
 0x410   :  { %v1813_v23 = vsel %vm49_vm0, %v9085_v60, %v1790_v31  ;;  %v7065_v31 = vld [vmem:[%s10782_s4 + $0x20] sm:$0xff] }
 0x411   :  { %v1821_v35 = vsel %vm874_vm3, %v1813_v23, 0.0  ;;  %v1796_v32 = vpop.permute.xlu0 %1795  ;;  %v7066_v23 = vld [vmem:[%s10782_s4 + $0x28] sm:$0xff] }
 0x412   :  { %v1823_v40 = vadd.f32 %v1822_v33, %v1821_v35  ;;  %v1816_v41 = vsel %vm49_vm0, %v9089_v10, %v1796_v32  ;;  %v7062_v35 = vld [vmem:[%s10781_s3 + $0x28] sm:$0xff]  ;;  %v7064_v32 = vld [vmem:[%s10781_s3 + $0x38] sm:$0xff]  ;;  %v7063_v33 = vld [vmem:[%s10781_s3 + $0x30] sm:$0xff] }
 0x413   :  { %v1794_v39 = vpop.permute.xlu1 %1793  ;;  %v1826_v57 = vsel %vm874_vm3, %v1816_v41, 0.0 }
 0x414   :  { %v1815_v42 = vsel %vm49_vm0, %v9094_v52, %v1794_v39  ;;  %v7068_v39 = vld [vmem:[%s10782_s4 + $0x38] sm:$0xff] }
 0x415   :  { %v1824_v43 = vsel %vm874_vm3, %v1815_v42, 0.0  ;;  %v1800_v58 = vpop.permute.xlu0 %1799 }
 0x416   :  { %v1825_v44 = vadd.f32 %v1824_v43, %v1823_v40  ;;  %v1818_v62 = vsel %vm49_vm0, %v9102_v17, %v1800_v58 }
 0x417   :  { %v1798_v29 = vpop.permute.xlu1 %1797  ;;  %v1835_v61 = vsel %vm874_vm3, %v1818_v62, 0.0 }
 0x418   :  { %v1827_v47 = vadd.f32 %v1826_v57, %v1825_v44  ;;  %v1817_v3 = vsel %vm49_vm0, %v9105_v2, %v1798_v29  ;;  %v1996_v57 = vld [vmem:[#allocation3 + $0x178] sm:$0xff]  ;;  %v1995_v29 = vld [vmem:[#allocation3 + $0x170] sm:$0xff] }
 0x419   :  { %v1834_v59 = vsel %vm874_vm3, %v1817_v3, 0.0  ;;  %v1804_v9 = vpop.permute.xlu0 %1803  ;;  %7976 = vmatprep.subr.mxu0 %v1996_v57 }
 0x41a   :  { %v1828_v45 = vrot.slane %v1827_v47, 4  ;;  %v1836_v51 = vadd.f32 %v1835_v61, %v1834_v59  ;;  %v1820_v50 = vsel %vm49_vm0, %v9111_v26, %v1804_v9  ;;  %7977 = vmatpush3.msra.mxu0 %v1996_v57  ;;  %v7067_v59 = vld [vmem:[%s10782_s4 + $0x30] sm:$0xff] }
 0x41b   :  { %v1802_v11 = vpop.permute.xlu1 %1801  ;;  %v1839_v13 = vsel %vm874_vm3, %v1820_v50, 0.0  ;;  %7978 = vmatprep.subr.mxu0 %v1995_v29  ;;  %v1993_v9 = vld [vmem:[#allocation3 + $0x160] sm:$0xff] }
 0x41c   :  { %v1829_v34 = vadd.f32 %v1828_v45, %v1827_v47  ;;  %v1819_v7 = vsel %vm49_vm0, %v9116_v21, %v1802_v11  ;;  %v1994_v47 = vld [vmem:[#allocation3 + $0x168] sm:$0xff]  ;;  %7979 = vmatpush3.msra.mxu0 %v1995_v29  ;;  %v2151_v45 = vld [vmem:[#allocation3 + $0x1b8] sm:$0xff]  ;;  %v2148_v50 = vld [vmem:[#allocation3 + $0x1a0] sm:$0xff] }
 0x41d   :  { %v1837_v63 = vsel %vm874_vm3, %v1819_v7, 0.0  ;;  %7980 = vmatprep.subr.mxu0 %v1994_v47  ;;  %7996 = vmatprep.subr.mxu1 %v2151_v45  ;;  %v2293_v7 = vld [vmem:[#allocation3 + $0x1d8] sm:$0xff]  ;;  %v2291_v29 = vld [vmem:[#allocation3 + $0x1c8] sm:$0xff] }
 0x41e   :  { %v1830_v53 = vrot.slane %v1829_v34, 2  ;;  %v1838_v12 = vadd.f32 %v1837_v63, %v1836_v51  ;;  %7981 = vmatpush3.msra.mxu0 %v1994_v47  ;;  %7997 = vmatpush3.msra.mxu1 %v2151_v45  ;;  %v2149_v51 = vld [vmem:[#allocation3 + $0x1a8] sm:$0xff]  ;;  %v9189_v63 = vld [vmem:[#allocation3 + $0x158] sm:$0xff] }
 0x41f   :  { %7982 = vmatprep.subr.mxu0 %v1993_v9 }
 0x420   :  { %v1831_v14 = vadd.f32 %v1830_v53, %v1829_v34  ;;  %v1840_v54 = vadd.f32 %v1839_v13, %v1838_v12  ;;  %7983 = vmatpush3.msra.mxu0 %v1993_v9  ;;  %v2150_v34 = vld [vmem:[#allocation3 + $0x1b0] sm:$0xff]  ;;  %v2290_v9 = vld [vmem:[#allocation3 + $0x1c0] sm:$0xff] }
 0x421   :  { %7998 = vmatprep.subr.mxu1 %v2150_v34  ;;  %8016 = vmatprep.subr.mxu0 %v2293_v7 }
 0x422   :  { %v1832_v55 = vrot.slane %v1831_v14, 1  ;;  %v1841_v1 = vrot.slane %v1840_v54, 4  ;;  %7999 = vmatpush3.msra.mxu1 %v2150_v34 }
 0x423   :  { %8000 = vmatprep.subr.mxu1 %v2149_v51 }
 0x424   :  { %v1833_v15 = vadd.f32 %v1832_v55, %v1831_v14  ;;  %v1842_v16 = vadd.f32 %v1841_v1, %v1840_v54  ;;  %8001 = vmatpush3.msra.mxu1 %v2149_v51 }
 0x425   :  { %8002 = vmatprep.subr.mxu1 %v2148_v50 }
 0x426   :  { %v9149_v6 = vmul.f32 0.03125, %v1833_v15  ;;  %v1843_v56 = vrot.slane %v1842_v16, 2  ;;  %8003 = vmatpush3.msra.mxu1 %v2148_v50 }
 0x427   :  { %8036 = vmatprep.subr.mxu1 %v9189_v63 }
 0x428   :  { %v1844_v8 = vadd.f32 %v1843_v56, %v1842_v16  ;;  %v1849_v4 = vmul.f32 %v9149_v6, %v9149_v6  ;;  %v1861_v1 = vsub.f32 %v9085_v60, %v9149_v6  ;;  %v1862_v15 = vsub.f32 %v9083_v38, %v9149_v6 }
 0x429   :  { %v1864_v16 = vsub.f32 %v9089_v10, %v9149_v6  ;;  %v1863_v60 = vsub.f32 %v9094_v52, %v9149_v6 }
 0x42a   :  { %v1845_v27 = vrot.slane %v1844_v8, 1  ;;  %1853 = vrot.lane.b32.xlu1 %v1849_v4, %s8716_s16 }
 0x42c   :  { %v1846_v5 = vadd.f32 %v1845_v27, %v1844_v8 }
 0x42e   :  { %v9157_v22 = vmul.f32 0.03125, %v1846_v5  ;;  %1904 = vperm.xlu1 %8541, %v7061_v30  }
 0x430   :  { %v1850_v24 = vmul.f32 %v9157_v22, %v9157_v22  ;;  %v1865_v52 = vsub.f32 %v9105_v2, %v9157_v22 }
 0x432   :  { %1937 = vperm.xlu1 %8541, %v7065_v31   ;;  %1855 = vrot.lane.b32.xlu0 %v1850_v24, %s8716_s16 }
 0x436   :  { %1942 = vperm.xlu1 %8541, %v7066_v23   ;;  %1909 = vperm.xlu0 %8540, %v7062_v35  }
 0x43a   :  { %1919 = vperm.xlu1 %8541, %v7064_v32   ;;  %1914 = vperm.xlu0 %8540, %v7063_v33  }
 0x43e   :  { %1952 = vperm.xlu1 %8541, %v7068_v39  }
 0x49c   :  { %v1854_v40 = vpop.permute.xlu1 %1853 }
 0x49d   :  { %v1859_v41 = vsub.f32 %v9149_v6, %v1854_v40  ;;  %v1866_v6 = vsub.f32 %v9102_v17, %v9157_v22 }
 0x49f   :  { %v1869_v42 = vadd.f32 1e-05, %v1859_v41 }
 0x4a1   :  { %8546 = vrsqrt.f32 %v1869_v42 }
 0x4a4   :  { %v1856_v43 = vpop.permute.xlu0 %1855 }
 0x4a5   :  { %v1860_v58 = vsub.f32 %v9157_v22, %v1856_v43  ;;  %v2292_v43 = vld [vmem:[#allocation3 + $0x1d0] sm:$0xff] }
 0x4a7   :  { %v1870_v44 = vadd.f32 1e-05, %v1860_v58  ;;  %v1867_v58 = vsub.f32 %v9116_v21, %v9157_v22 }
 0x4a9   :  { %8548 = vrsqrt.f32 %v1870_v44  ;;  %v1905_v53 = vpop.permute.xlu1 %1904  ;;  %v1868_v44 = vsub.f32 %v9111_v26, %v9157_v22  ;;  %v2138_v22 = vld [vmem:[#allocation3 + $0x198] sm:$0xff] }
 0x4ad   :  { %v1938_v12 = vpop.permute.xlu1 %1937 }
 0x4ae   :  { %v8547_v62 = vpop.eup %8546 }
 0x4af   :  { %v1876_v3 = vrot.slane %v8547_v62, %v8975_v49 }
 0x4b1   :  { %1883 = vrot.lane.b32.xlu0 %v1876_v3, %s8718_s30  ;;  %v1910_v13 = vpop.permute.xlu0 %1909  ;;  %v1943_v14 = vpop.permute.xlu1 %1942 }
 0x4b5   :  { %1947 = vperm.xlu0 %8540, %v7067_v59   ;;  %v1915_v54 = vpop.permute.xlu0 %1914  ;;  %v1920_v55 = vpop.permute.xlu1 %1919 }
 0x4b6   :  { %v8549_v61 = vpop.eup %8548 }
 0x4b7   :  { %v1880_v11 = vrot.slane %v8549_v61, %v8975_v49 }
 0x4b9   :  { %1885 = vrot.lane.b32.xlu0 %v1880_v11, %s8718_s30  ;;  %v1953_v24 = vpop.permute.xlu1 %1952 }
 0x523   :  { %v1884_v56 = vpop.permute.xlu0 %1883 }
 0x524   :  { %v1889_v8 = vmul.f32 %v1884_v56, %v1861_v1  ;;  %v1890_v4 = vmul.f32 %v1884_v56, %v1862_v15  ;;  %v1892_v27 = vmul.f32 %v1884_v56, %v1864_v16  ;;  %v1891_v38 = vmul.f32 %v1884_v56, %v1863_v60  ;;  %v1980_v16 = vld [vmem:[#allocation3 + $0x140] sm:$0xff] }
 0x526   :  { %v1922_v30 = vmul.f32 %v1905_v53, %v1889_v8  ;;  %v1923_v5 = vmul.f32 %v1910_v13, %v1890_v4  ;;  %v1925_v31 = vmul.f32 %v1920_v55, %v1892_v27  ;;  %v1924_v10 = vmul.f32 %v1915_v54, %v1891_v38 }
 0x528   :  { %v1955_v23 = vadd.f32 %v1938_v12, %v1922_v30  ;;  %v1956_v35 = vadd.f32 %v1943_v14, %v1923_v5  ;;  %v1958_v32 = vadd.f32 %v1953_v24, %v1925_v31 }
 0x52a   :  { %1963 = vst.msk [vmem:[#allocation2 + $0x2] sm:$0xff] %vm49_vm0, %v1955_v23  ;;  %1964 = vst.msk [vmem:[#allocation2 + $0xa] sm:$0xff] %vm49_vm0, %v1956_v35  ;;  %v2137_v35 = vld [vmem:[#allocation3 + $0x190] sm:$0xff] }
 0x52b   :  { %1966 = vst.msk [vmem:[#allocation2 + $0x1a] sm:$0xff] %vm49_vm0, %v1958_v32 }
 0x530   :  { %v1948_v33 = vpop.permute.xlu0 %1947 }
 0x531   :  { %v1957_v39 = vadd.f32 %v1948_v33, %v1924_v10  ;;  %v1984_v40 = vld [vmem:[#allocation2 + $0x1] sm:$0xff]  ;;  %v1985_v42 = vld [vmem:[#allocation2 + $0x9] sm:$0xff] }
 0x532   :  { %v2139_v41 = vld [vmem:[#allocation2 + $0x3] sm:$0xff]  ;;  %7984 = vmatprep.mubr.msk.f32.mxu0 %vm49_vm0, %v1984_v40 }
 0x533   :  { %8004 = vmatprep.mubr.msk.f32.mxu1 %vm49_vm0, %v2139_v41  ;;  %1965 = vst.msk [vmem:[#allocation2 + $0x12] sm:$0xff] %vm49_vm0, %v1957_v39  ;;  %7985 = vmatmul.mubr.msk.f32.vlgmr.msra.gmra.mxu0 %vm49_vm0, %v1985_v42  ;;  %v2281_v27 = vld [vmem:[#allocation2 + $0x4] sm:$0xff]  ;;  %v2284_v32 = vld [vmem:[#allocation2 + $0x1c] sm:$0xff] }
 0x534   :  { %v1886_v57 = vpop.permute.xlu0 %1885  ;;  %8017 = vmatpush3.msra.mxu0 %v2293_v7  ;;  %v1971_v30 = vld [vmem:[#allocation2] sm:$0xff]  ;;  %v1972_v31 = vld [vmem:[#allocation2 + $0x8] sm:$0xff] }
 0x535   :  { %v1893_v47 = vmul.f32 %v1886_v57, %v1865_v52  ;;  %v1894_v62 = vmul.f32 %v1886_v57, %v1866_v6  ;;  %v1895_v3 = vmul.f32 %v1886_v57, %v1867_v58  ;;  %v1896_v59 = vmul.f32 %v1886_v57, %v1868_v44  ;;  %8018 = vmatprep.subr.mxu0 %v2292_v43  ;;  %v2126_v58 = vld [vmem:[#allocation2 + $0x2] sm:$0xff]  ;;  %v2127_v44 = vld [vmem:[#allocation2 + $0xa] sm:$0xff] }
 0x536   :  { %8019 = vmatpush3.msra.mxu0 %v2292_v43  ;;  %v2135_v43 = vld [vmem:[#allocation3 + $0x180] sm:$0xff] }
 0x537   :  { %v1926_v2 = vmul.f32 %v1905_v53, %v1893_v47  ;;  %v1927_v45 = vmul.f32 %v1910_v13, %v1894_v62  ;;  %v1928_v61 = vmul.f32 %v1915_v54, %v1895_v3  ;;  %v1929_v17 = vmul.f32 %v1920_v55, %v1896_v59  ;;  %8020 = vmatprep.subr.mxu0 %v2291_v29  ;;  %v2142_v13 = vld [vmem:[#allocation2 + $0x1b] sm:$0xff] }
 0x538   :  { %8021 = vmatpush3.msra.mxu0 %v2291_v29  ;;  %v2129_v29 = vld [vmem:[#allocation2 + $0x1a] sm:$0xff] }
 0x539   :  { %v1959_v21 = vadd.f32 %v1938_v12, %v1926_v2  ;;  %v1960_v11 = vadd.f32 %v1943_v14, %v1927_v45  ;;  %v1961_v34 = vadd.f32 %v1948_v33, %v1928_v61  ;;  %v1962_v26 = vadd.f32 %v1953_v24, %v1929_v17  ;;  %8022 = vmatprep.subr.mxu0 %v2290_v9  ;;  %v1982_v12 = vld [vmem:[#allocation3 + $0x150] sm:$0xff]  ;;  %v1981_v14 = vld [vmem:[#allocation3 + $0x148] sm:$0xff] }
 0x53a   :  { %v1986_v51 = vld [vmem:[#allocation2 + $0x11] sm:$0xff]  ;;  %v1987_v7 = vld [vmem:[#allocation2 + $0x19] sm:$0xff]  ;;  %8023 = vmatpush3.msra.mxu0 %v2290_v9 }
 0x53b   :  { %v2140_v50 = vld [vmem:[#allocation2 + $0xb] sm:$0xff]  ;;  %1967 = vst.msk [vmem:[#allocation2 + $0x2a] sm:$0xff] %vm49_vm0, %v1959_v21  ;;  %1968 = vst.msk [vmem:[#allocation2 + $0x32] sm:$0xff] %vm49_vm0, %v1960_v11  ;;  %7987 = vmatprep.mubr.msk.f32.mxu0 %vm49_vm0, %v1986_v51  ;;  %v2141_v53 = vld [vmem:[#allocation2 + $0x13] sm:$0xff]  ;;  %8056 = vmatprep.subr.mxu0 %v2138_v22 }
 0x53c   :  { %1969 = vst.msk [vmem:[#allocation2 + $0x3a] sm:$0xff] %vm49_vm0, %v1961_v34  ;;  %1970 = vst.msk [vmem:[#allocation2 + $0x42] sm:$0xff] %vm49_vm0, %v1962_v26  ;;  %8005 = vmatmul.mubr.msk.f32.vlgmr.msra.gmra.mxu1 %vm49_vm0, %v2140_v50  ;;  %7988 = vmatmul.mubr.msk.f32.gmra.mxu0 %vm49_vm0, %v1987_v7  ;;  %v2282_v5 = vld [vmem:[#allocation2 + $0xc] sm:$0xff]  ;;  %v2283_v24 = vld [vmem:[#allocation2 + $0x14] sm:$0xff] }
 0x53d   :  { %8007 = vmatprep.mubr.msk.f32.mxu1 %vm49_vm0, %v2141_v53  ;;  %8037 = vmatpush3.msra.mxu1 %v9189_v63  ;;  %v1973_v23 = vld [vmem:[#allocation2 + $0x10] sm:$0xff]  ;;  %v1974_v60 = vld [vmem:[#allocation2 + $0x18] sm:$0xff] }
 0x53e   :  { %8038 = vmatprep.subr.mxu1 %v1982_v12  ;;  %v2136_v33 = vld [vmem:[#allocation3 + $0x188] sm:$0xff] }
 0x53f   :  { %8039 = vmatpush3.msra.mxu1 %v1982_v12  ;;  %v2128_v57 = vld [vmem:[#allocation2 + $0x12] sm:$0xff] }
 0x540   :  { %8008 = vmatmul.mubr.msk.f32.gmra.mxu1 %vm49_vm0, %v2142_v13  ;;  %8040 = vmatprep.subr.mxu1 %v1981_v14 }
 0x541   :  { %8041 = vmatpush3.msra.mxu1 %v1981_v14 }
 0x542   :  { %v1988_v54 = vld [vmem:[#allocation2 + $0x29] sm:$0xff]  ;;  %v1989_v1 = vld [vmem:[#allocation2 + $0x31] sm:$0xff]  ;;  %8042 = vmatprep.subr.mxu1 %v1980_v16 }
 0x543   :  { %v2143_v55 = vld [vmem:[#allocation2 + $0x2b] sm:$0xff]  ;;  %7990 = vmatprep.mubr.msk.f32.mxu0 %vm49_vm0, %v1988_v54  ;;  %v2144_v15 = vld [vmem:[#allocation2 + $0x33] sm:$0xff]  ;;  %v2145_v56 = vld [vmem:[#allocation2 + $0x3b] sm:$0xff]  ;;  %8043 = vmatpush3.msra.mxu1 %v1980_v16 }
 0x544   :  { %8010 = vmatprep.mubr.msk.f32.mxu1 %vm49_vm0, %v2143_v55  ;;  %7991 = vmatmul.mubr.msk.f32.gmra.mxu0 %vm49_vm0, %v1989_v1  ;;  %v1990_v63 = vld [vmem:[#allocation2 + $0x39] sm:$0xff]  ;;  %v1991_v8 = vld [vmem:[#allocation2 + $0x41] sm:$0xff]  ;;  %v2285_v38 = vld [vmem:[#allocation2 + $0x2c] sm:$0xff] }
 0x545   :  { %8011 = vmatmul.mubr.msk.f32.gmra.mxu1 %vm49_vm0, %v2144_v15  ;;  %7993 = vmatprep.mubr.msk.f32.mxu0 %vm49_vm0, %v1990_v63  ;;  %v2146_v4 = vld [vmem:[#allocation2 + $0x43] sm:$0xff]  ;;  %v2286_v39 = vld [vmem:[#allocation2 + $0x34] sm:$0xff] }
 0x546   :  { %8013 = vmatprep.mubr.msk.f32.mxu1 %vm49_vm0, %v2145_v56  ;;  %v1975_v10 = vld [vmem:[#allocation2 + $0x28] sm:$0xff]  ;;  %v1976_v40 = vld [vmem:[#allocation2 + $0x30] sm:$0xff]  ;;  %v2287_v41 = vld [vmem:[#allocation2 + $0x3c] sm:$0xff] }
 0x547   :  { %v1977_v42 = vld [vmem:[#allocation2 + $0x38] sm:$0xff]  ;;  %v2288_v52 = vld [vmem:[#allocation2 + $0x44] sm:$0xff] }
 0x548   :  { %7994 = vmatmul.mubr.msk.f32.gmra.mxu0 %vm49_vm0, %v1991_v8  ;;  %v1978_v6 = vld [vmem:[#allocation2 + $0x40] sm:$0xff]  ;;  %v2130_v47 = vld [vmem:[#allocation2 + $0x2a] sm:$0xff]  ;;  %v2131_v62 = vld [vmem:[#allocation2 + $0x32] sm:$0xff] }
 0x549   :  { %8014 = vmatmul.mubr.msk.f32.gmra.mxu1 %vm49_vm0, %v2146_v4  ;;  %8024 = vmatprep.mubr.msk.f32.mxu0 %vm49_vm0, %v2281_v27  ;;  %v2132_v3 = vld [vmem:[#allocation2 + $0x3a] sm:$0xff]  ;;  %v2133_v59 = vld [vmem:[#allocation2 + $0x42] sm:$0xff] }
 0x54a   :  { %8044 = vmatprep.mubr.msk.f32.mxu1 %vm49_vm0, %v1971_v30 }
 0x54c   :  { %8025 = vmatmul.mubr.msk.f32.vlgmr.msra.gmra.mxu0 %vm49_vm0, %v2282_v5 }
 0x54d   :  { %8045 = vmatmul.mubr.msk.f32.vlgmr.msra.gmra.mxu1 %vm49_vm0, %v1972_v31  ;;  %8027 = vmatprep.mubr.msk.f32.mxu0 %vm49_vm0, %v2283_v24 }
 0x54e   :  { %8047 = vmatprep.mubr.msk.f32.mxu1 %vm49_vm0, %v1973_v23  ;;  %8057 = vmatpush3.msra.mxu0 %v2138_v22 }
 0x54f   :  { %8058 = vmatprep.subr.mxu0 %v2137_v35 }
 0x550   :  { %8028 = vmatmul.mubr.msk.f32.gmra.mxu0 %vm49_vm0, %v2284_v32 }
 0x551   :  { %8048 = vmatmul.mubr.msk.f32.gmra.mxu1 %vm49_vm0, %v1974_v60  ;;  %8030 = vmatprep.mubr.msk.f32.mxu0 %vm49_vm0, %v2285_v38 }
 0x552   :  { %8050 = vmatprep.mubr.msk.f32.mxu1 %vm49_vm0, %v1975_v10  ;;  %8059 = vmatpush3.msra.mxu0 %v2137_v35 }
 0x553   :  { %8060 = vmatprep.subr.mxu0 %v2136_v33 }
 0x554   :  { %8031 = vmatmul.mubr.msk.f32.gmra.mxu0 %vm49_vm0, %v2286_v39 }
 0x555   :  { %8051 = vmatmul.mubr.msk.f32.gmra.mxu1 %vm49_vm0, %v1976_v40  ;;  %8033 = vmatprep.mubr.msk.f32.mxu0 %vm49_vm0, %v2287_v41 }
 0x556   :  { %8053 = vmatprep.mubr.msk.f32.mxu1 %vm49_vm0, %v1977_v42  ;;  %8061 = vmatpush3.msra.mxu0 %v2136_v33  ;;  %v7110_v33 = vld [vmem:[%s10780_s2 + $0x2] ss:$0 sm:$0xff] }
 0x557   :  { %8062 = vmatprep.subr.mxu0 %v2135_v43 }
 0x558   :  { %8034 = vmatmul.mubr.msk.f32.gmra.mxu0 %vm49_vm0, %v2288_v52 }
 0x559   :  { %8054 = vmatmul.mubr.msk.f32.gmra.mxu1 %vm49_vm0, %v1978_v6  ;;  %8063 = vmatpush3.msra.mxu0 %v2135_v43 }
 0x55a   :  { %8064 = vmatprep.mubr.msk.f32.mxu0 %vm49_vm0, %v2126_v58 }
 0x55c   :  { %8065 = vmatmul.mubr.msk.f32.vlgmr.msra.gmra.mxu0 %vm49_vm0, %v2127_v44 }
 0x55d   :  { %8067 = vmatprep.mubr.msk.f32.mxu0 %vm49_vm0, %v2128_v57 }
 0x560   :  { %8068 = vmatmul.mubr.msk.f32.gmra.mxu0 %vm49_vm0, %v2129_v29 }
 0x561   :  { %8070 = vmatprep.mubr.msk.f32.mxu0 %vm49_vm0, %v2130_v47 }
 0x564   :  { %8071 = vmatmul.mubr.msk.f32.gmra.mxu0 %vm49_vm0, %v2131_v62 }
 0x565   :  { %8073 = vmatprep.mubr.msk.f32.mxu0 %vm49_vm0, %v2132_v3 }
 0x568   :  { %8074 = vmatmul.mubr.msk.f32.gmra.mxu0 %vm49_vm0, %v2133_v59 }
 0x5f3   :  { %v7986_v9 = vpop.f32.mrf.mxu0 }
 0x5f5   :  { %v2087_v45 = vpop.f32.mrf.mxu0 }
 0x5fc   :  { %v8006_v2 = vpop.f32.mrf.mxu1  ;;  %v7989_v17 = vpop.f32.mrf.mxu0 }
 0x5fe   :  { %v2242_v61 = vpop.f32.mrf.mxu1  ;;  %v2097_v34 = vpop.f32.mrf.mxu0 }
 0x600   :  { %v8009_v21 = vpop.f32.mrf.mxu1 }
 0x602   :  { %v2252_v11 = vpop.f32.mrf.mxu1 }
 0x604   :  { %v7992_v26 = vpop.f32.mrf.mxu0 }
 0x605   :  { %v8012_v22 = vpop.f32.mrf.mxu1 }
 0x606   :  { %v2107_v51 = vpop.f32.mrf.mxu0 }
 0x607   :  { %v2262_v50 = vpop.f32.mrf.mxu1 }
 0x608   :  { %v7995_v7 = vpop.f32.mrf.mxu0 }
 0x609   :  { %v8015_v53 = vpop.f32.mrf.mxu1 }
 0x60a   :  { %v2117_v12 = vpop.f32.mrf.mxu0 }
 0x60b   :  { %v9257_v13 = vpop.f32.mrf.mxu1 }
 0x60c   :  { %v8026_v14 = vpop.f32.mrf.mxu0 }
 0x60d   :  { %v8046_v54 = vpop.f32.mrf.mxu1 }
 0x60e   :  { %v2384_v55 = vpop.f32.mrf.mxu0  ;;  %v2519_v24 = vadd.f32 %v8046_v54, %v7986_v9 }
 0x60f   :  { %v2513_v1 = vpop.f32.mrf.mxu1 }
 0x610   :  { %v8029_v15 = vpop.f32.mrf.mxu0  ;;  %v2514_v32 = vadd.f32 %v2513_v1, %v2087_v45 }
 0x611   :  { %v8049_v63 = vpop.f32.mrf.mxu1 }
 0x612   :  { %v2394_v16 = vpop.f32.mrf.mxu0  ;;  %v2529_v40 = vadd.f32 %v8049_v63, %v7989_v17 }
 0x613   :  { %v2523_v4 = vpop.f32.mrf.mxu1 }
 0x614   :  { %v8032_v56 = vpop.f32.mrf.mxu0  ;;  %v2524_v52 = vadd.f32 %v2523_v4, %v2097_v34 }
 0x615   :  { %v8052_v5 = vpop.f32.mrf.mxu1 }
 0x616   :  { %v2404_v8 = vpop.f32.mrf.mxu0  ;;  %v2539_v45 = vadd.f32 %v8052_v5, %v7992_v26 }
 0x617   :  { %v2533_v60 = vpop.f32.mrf.mxu1 }
 0x618   :  { %v8035_v27 = vpop.f32.mrf.mxu0 }
 0x619   :  { %v8055_v58 = vpop.f32.mrf.mxu1 }
 0x61a   :  { %v9259_v30 = vpop.f32.mrf.mxu0  ;;  %v2549_v4 = vadd.f32 %v8055_v58, %v7995_v7 }
 0x61c   :  { %v8066_v31 = vpop.f32.mrf.mxu0 }
 0x61d   :  { %v2648_v23 = vadd.f32 %v8066_v31, %v8006_v2 }
 0x61e   :  { %v2642_v35 = vpop.f32.mrf.mxu0 }
 0x61f   :  { %v2682_v38 = vadd.f32 %v2648_v23, %v2519_v24  ;;  %v2643_v10 = vadd.f32 %v2642_v35, %v2242_v61  ;;  %v2534_v61 = vadd.f32 %v2533_v60, %v2107_v51 }
 0x620   :  { %v8069_v39 = vpop.f32.mrf.mxu0 }
 0x621   :  { %v2690_v41 = vadd.f32 %v8026_v14, %v2682_v38  ;;  %v2681_v42 = vadd.f32 %v2643_v10, %v2514_v32  ;;  %v2658_v43 = vadd.f32 %v8069_v39, %v8009_v21  ;;  %v2543_v14 = vpop.f32.mrf.mxu1 }
 0x622   :  { %v2652_v6 = vpop.f32.mrf.mxu0  ;;  %v2544_v51 = vadd.f32 %v2543_v14, %v2117_v12 }
 0x623   :  { %v2706_v44 = vadd.f32 %v7110_v33, %v2690_v41  ;;  %v2689_v57 = vadd.f32 %v2681_v42, %v2384_v55  ;;  %v2684_v29 = vadd.f32 %v2658_v43, %v2529_v40  ;;  %v2653_v47 = vadd.f32 %v2652_v6, %v2252_v11 }
 0x624   :  { %v8072_v62 = vpop.f32.mrf.mxu0 }
 0x625   :  { %v9264_v3 = vmax.f32 %v2706_v44, 0.0  ;;  %v2705_v59 = vadd.f32 %v7110_v33, %v2689_v57  ;;  %v2692_v9 = vadd.f32 %v8029_v15, %v2684_v29  ;;  %v2683_v2 = vadd.f32 %v2653_v47, %v2524_v52 }
 0x626   :  { %v2668_v54 = vadd.f32 %v8072_v62, %v8012_v22  ;;  %v2662_v17 = vpop.f32.mrf.mxu0 }
 0x627   :  { %v9266_v1 = vmax.f32 %v2705_v59, 0.0  ;;  %v2708_v21 = vadd.f32 %v7110_v33, %v2692_v9  ;;  %v2691_v34 = vadd.f32 %v2683_v2, %v2394_v16  ;;  %v2663_v63 = vadd.f32 %v2662_v17, %v2262_v50 }
 0x628   :  { %v2686_v55 = vadd.f32 %v2668_v54, %v2539_v45  ;;  %v8075_v31 = vpop.f32.mrf.mxu0  ;;  %v2722_v11 = vmul.f32 %v9264_v3, %v9264_v3 }
 0x629   :  { %v9270_v24 = vmax.f32 %v2708_v21, 0.0  ;;  %v2707_v15 = vadd.f32 %v7110_v33, %v2691_v34  ;;  %v2685_v23 = vadd.f32 %v2663_v63, %v2534_v61  ;;  %v2678_v26 = vadd.f32 %v8075_v31, %v8015_v53 }
 0x62a   :  { %v2694_v22 = vadd.f32 %v8032_v56, %v2686_v55  ;;  %2739 = vrot.lane.b32.xlu0 %v2722_v11, %s8716_s16  ;;  %v2672_v5 = vpop.f32.mrf.mxu0  ;;  %v2721_v16 = vmul.f32 %v9266_v1, %v9266_v1 }
 0x62b   :  { %v9275_v50 = vmax.f32 %v2707_v15, 0.0  ;;  %v2693_v7 = vadd.f32 %v2685_v23, %v2404_v8  ;;  %v2688_v35 = vadd.f32 %v2678_v26, %v2549_v4  ;;  %v2673_v32 = vadd.f32 %v2672_v5, %v9257_v13 }
 0x62c   :  { %v2710_v60 = vadd.f32 %v7110_v33, %v2694_v22  ;;  %2737 = vrot.lane.b32.xlu1 %v2721_v16, %s8716_s16  ;;  %v2724_v53 = vmul.f32 %v9270_v24, %v9270_v24 }
 0x62d   :  { %v2709_v12 = vadd.f32 %v7110_v33, %v2693_v7  ;;  %v2696_v56 = vadd.f32 %v8035_v27, %v2688_v35  ;;  %v2687_v38 = vadd.f32 %v2673_v32, %v2544_v51  ;;  %v2723_v10 = vmul.f32 %v9275_v50, %v9275_v50 }
 0x62e   :  { %v9283_v39 = vmax.f32 %v2710_v60, 0.0  ;;  %2743 = vrot.lane.b32.xlu0 %v2724_v53, %s8716_s16 }
 0x62f   :  { %v9286_v8 = vmax.f32 %v2709_v12, 0.0  ;;  %v2712_v40 = vadd.f32 %v7110_v33, %v2696_v56  ;;  %v2695_v13 = vadd.f32 %v2687_v38, %v9259_v30 }
 0x630   :  { %2741 = vrot.lane.b32.xlu1 %v2723_v10, %s8716_s16  ;;  %v2726_v41 = vmul.f32 %v9283_v39, %v9283_v39 }
 0x631   :  { %v9292_v42 = vmax.f32 %v2712_v40, 0.0  ;;  %v2711_v27 = vadd.f32 %v7110_v33, %v2695_v13  ;;  %v2725_v43 = vmul.f32 %v9286_v8, %v9286_v8 }
 0x632   :  { %2747 = vrot.lane.b32.xlu0 %v2726_v41, %s8716_s16 }
 0x633   :  { %v9297_v52 = vmax.f32 %v2711_v27, 0.0  ;;  %v2728_v6 = vmul.f32 %v9292_v42, %v9292_v42 }
 0x634   :  { %2745 = vrot.lane.b32.xlu1 %v2725_v43, %s8716_s16 }
 0x635   :  { %v2727_v30 = vmul.f32 %v9297_v52, %v9297_v52 }
 0x636   :  { %2751 = vrot.lane.b32.xlu0 %v2728_v6, %s8716_s16  ;;  %v7111_v6 = vld [vmem:[%s10781_s3 + $0x40] sm:$0xff] }
 0x638   :  { %2749 = vrot.lane.b32.xlu1 %v2727_v30, %s8716_s16 }
 0x69c   :  { %v2740_v33 = vpop.permute.xlu0 %2739 }
 0x69d   :  { %v2762_v44 = vsel %vm49_vm0, %v9264_v3, %v2740_v33 }
 0x69e   :  { %v2738_v58 = vpop.permute.xlu1 %2737  ;;  %v2770_v62 = vsel %vm874_vm3, %v2762_v44, 0.0 }
 0x69f   :  { %v2761_v57 = vsel %vm49_vm0, %v9266_v1, %v2738_v58  ;;  %v7115_v58 = vld [vmem:[%s10782_s4 + $0x40] sm:$0xff] }
 0x6a0   :  { %v2769_v29 = vsel %vm874_vm3, %v2761_v57, 0.0  ;;  %v2744_v47 = vpop.permute.xlu0 %2743  ;;  %v7116_v57 = vld [vmem:[%s10782_s4 + $0x48] sm:$0xff] }
 0x6a1   :  { %v2771_v9 = vadd.f32 %v2770_v62, %v2769_v29  ;;  %v2764_v2 = vsel %vm49_vm0, %v9270_v24, %v2744_v47  ;;  %v7112_v29 = vld [vmem:[%s10781_s3 + $0x48] sm:$0xff]  ;;  %v7114_v47 = vld [vmem:[%s10781_s3 + $0x58] sm:$0xff]  ;;  %v7113_v62 = vld [vmem:[%s10781_s3 + $0x50] sm:$0xff] }
 0x6a2   :  { %v2742_v59 = vpop.permute.xlu1 %2741  ;;  %v2774_v14 = vsel %vm874_vm3, %v2764_v2, 0.0 }
 0x6a3   :  { %v2763_v45 = vsel %vm49_vm0, %v9275_v50, %v2742_v59  ;;  %v7118_v59 = vld [vmem:[%s10782_s4 + $0x58] sm:$0xff] }
 0x6a4   :  { %v2772_v61 = vsel %vm874_vm3, %v2763_v45, 0.0  ;;  %v2748_v54 = vpop.permute.xlu0 %2747 }
 0x6a5   :  { %v2773_v17 = vadd.f32 %v2772_v61, %v2771_v9  ;;  %v2766_v63 = vsel %vm49_vm0, %v9283_v39, %v2748_v54 }
 0x6a6   :  { %v2746_v21 = vpop.permute.xlu1 %2745  ;;  %v2783_v15 = vsel %vm874_vm3, %v2766_v63, 0.0 }
 0x6a7   :  { %v2775_v34 = vadd.f32 %v2774_v14, %v2773_v17  ;;  %v2765_v4 = vsel %vm49_vm0, %v9286_v8, %v2746_v21  ;;  %v2952_v14 = vld [vmem:[#allocation3 + $0x218] sm:$0xff]  ;;  %v2951_v21 = vld [vmem:[#allocation3 + $0x210] sm:$0xff] }
 0x6a8   :  { %v2782_v55 = vsel %vm874_vm3, %v2765_v4, 0.0  ;;  %v2752_v31 = vpop.permute.xlu0 %2751  ;;  %8076 = vmatprep.subr.mxu1 %v2952_v14  ;;  %v7117_v4 = vld [vmem:[%s10782_s4 + $0x50] sm:$0xff] }
 0x6a9   :  { %v2776_v11 = vrot.slane %v2775_v34, 4  ;;  %v2784_v51 = vadd.f32 %v2783_v15, %v2782_v55  ;;  %v2768_v22 = vsel %vm49_vm0, %v9292_v42, %v2752_v31  ;;  %8077 = vmatpush3.msra.mxu1 %v2952_v14  ;;  %v2950_v55 = vld [vmem:[#allocation3 + $0x208] sm:$0xff]  ;;  %v2949_v31 = vld [vmem:[#allocation3 + $0x200] sm:$0xff] }
 0x6aa   :  { %v2750_v23 = vpop.permute.xlu1 %2749  ;;  %v2787_v32 = vsel %vm874_vm3, %v2768_v22, 0.0  ;;  %8078 = vmatprep.subr.mxu1 %v2951_v21  ;;  %v3104_v22 = vld [vmem:[#allocation3 + $0x240] sm:$0xff] }
 0x6ab   :  { %v2777_v26 = vadd.f32 %v2776_v11, %v2775_v34  ;;  %v2767_v5 = vsel %vm49_vm0, %v9297_v52, %v2750_v23  ;;  %8079 = vmatpush3.msra.mxu1 %v2951_v21  ;;  %v3107_v23 = vld [vmem:[#allocation3 + $0x258] sm:$0xff] }
 0x6ac   :  { %v2785_v16 = vsel %vm874_vm3, %v2767_v5, 0.0  ;;  %8080 = vmatprep.subr.mxu1 %v2950_v55  ;;  %8096 = vmatprep.subr.mxu0 %v3107_v23  ;;  %v3249_v5 = vld [vmem:[#allocation3 + $0x278] sm:$0xff] }
 0x6ad   :  { %v2778_v7 = vrot.slane %v2777_v26, 2  ;;  %v2786_v35 = vadd.f32 %v2785_v16, %v2784_v51  ;;  %8081 = vmatpush3.msra.mxu1 %v2950_v55  ;;  %8097 = vmatpush3.msra.mxu0 %v3107_v23  ;;  %v3105_v51 = vld [vmem:[#allocation3 + $0x248] sm:$0xff]  ;;  %v9370_v16 = vld [vmem:[#allocation3 + $0x1f8] sm:$0xff]  ;;  %v3246_v55 = vld [vmem:[#allocation3 + $0x260] sm:$0xff] }
 0x6ae   :  { %8082 = vmatprep.subr.mxu1 %v2949_v31 }
 0x6af   :  { %v2779_v60 = vadd.f32 %v2778_v7, %v2777_v26  ;;  %v2788_v53 = vadd.f32 %v2787_v32, %v2786_v35  ;;  %8083 = vmatpush3.msra.mxu1 %v2949_v31  ;;  %v3106_v26 = vld [vmem:[#allocation3 + $0x250] sm:$0xff] }
 0x6b0   :  { %8098 = vmatprep.subr.mxu0 %v3106_v26  ;;  %8116 = vmatprep.subr.mxu1 %v3249_v5 }
 0x6b1   :  { %v2780_v12 = vrot.slane %v2779_v60, 1  ;;  %v2789_v56 = vrot.slane %v2788_v53, 4  ;;  %8099 = vmatpush3.msra.mxu0 %v3106_v26 }
 0x6b2   :  { %8100 = vmatprep.subr.mxu0 %v3105_v51 }
 0x6b3   :  { %v2781_v38 = vadd.f32 %v2780_v12, %v2779_v60  ;;  %v2790_v10 = vadd.f32 %v2789_v56, %v2788_v53  ;;  %8101 = vmatpush3.msra.mxu0 %v3105_v51 }
 0x6b4   :  { %8102 = vmatprep.subr.mxu0 %v3104_v22 }
 0x6b5   :  { %v9330_v40 = vmul.f32 0.03125, %v2781_v38  ;;  %v2791_v13 = vrot.slane %v2790_v10, 2  ;;  %8103 = vmatpush3.msra.mxu0 %v3104_v22 }
 0x6b6   :  { %8136 = vmatprep.subr.mxu0 %v9370_v16 }
 0x6b7   :  { %v2792_v41 = vadd.f32 %v2791_v13, %v2790_v10  ;;  %v2797_v27 = vmul.f32 %v9330_v40, %v9330_v40  ;;  %v2809_v56 = vsub.f32 %v9266_v1, %v9330_v40  ;;  %v2810_v38 = vsub.f32 %v9264_v3, %v9330_v40 }
 0x6b8   :  { %v2812_v10 = vsub.f32 %v9270_v24, %v9330_v40  ;;  %v2811_v1 = vsub.f32 %v9275_v50, %v9330_v40 }
 0x6b9   :  { %v2793_v43 = vrot.slane %v2792_v41, 1  ;;  %2801 = vrot.lane.b32.xlu1 %v2797_v27, %s8716_s16 }
 0x6bb   :  { %v2794_v30 = vadd.f32 %v2793_v43, %v2792_v41 }
 0x6bd   :  { %v9338_v33 = vmul.f32 0.03125, %v2794_v30  ;;  %2852 = vperm.xlu1 %8541, %v7111_v6  }
 0x6bf   :  { %v2798_v44 = vmul.f32 %v9338_v33, %v9338_v33 }
 0x6c1   :  { %2885 = vperm.xlu1 %8541, %v7115_v58   ;;  %2803 = vrot.lane.b32.xlu0 %v2798_v44, %s8716_s16 }
 0x6c5   :  { %2890 = vperm.xlu1 %8541, %v7116_v57   ;;  %2857 = vperm.xlu0 %8540, %v7112_v29  }
 0x6c9   :  { %2867 = vperm.xlu1 %8541, %v7114_v47   ;;  %2862 = vperm.xlu0 %8540, %v7113_v62  }
 0x6cd   :  { %2900 = vperm.xlu1 %8541, %v7118_v59  }
 0x72b   :  { %v2802_v9 = vpop.permute.xlu1 %2801 }
 0x72c   :  { %v2807_v2 = vsub.f32 %v9330_v40, %v2802_v9 }
 0x72e   :  { %v2817_v45 = vadd.f32 1e-05, %v2807_v2  ;;  %v2815_v2 = vsub.f32 %v9297_v52, %v9338_v33 }
 0x730   :  { %8550 = vrsqrt.f32 %v2817_v45  ;;  %v2816_v45 = vsub.f32 %v9292_v42, %v9338_v33  ;;  %v3247_v42 = vld [vmem:[#allocation3 + $0x268] sm:$0xff] }
 0x733   :  { %v2804_v61 = vpop.permute.xlu0 %2803 }
 0x734   :  { %v2808_v54 = vsub.f32 %v9338_v33, %v2804_v61 }
 0x736   :  { %v2818_v17 = vadd.f32 1e-05, %v2808_v54 }
 0x738   :  { %8552 = vrsqrt.f32 %v2818_v17  ;;  %v2853_v7 = vpop.permute.xlu1 %2852 }
 0x73c   :  { %v2886_v35 = vpop.permute.xlu1 %2885 }
 0x73d   :  { %v8551_v34 = vpop.eup %8550 }
 0x73e   :  { %v2824_v63 = vrot.slane %v8551_v34, %v8975_v49 }
 0x740   :  { %2831 = vrot.lane.b32.xlu0 %v2824_v63, %s8718_s30  ;;  %v2858_v32 = vpop.permute.xlu0 %2857  ;;  %v2891_v60 = vpop.permute.xlu1 %2890 }
 0x744   :  { %2895 = vperm.xlu0 %8540, %v7117_v4   ;;  %v2863_v53 = vpop.permute.xlu0 %2862  ;;  %v2868_v12 = vpop.permute.xlu1 %2867 }
 0x745   :  { %v8553_v11 = vpop.eup %8552 }
 0x746   :  { %v2828_v15 = vrot.slane %v8553_v11, %v8975_v49 }
 0x748   :  { %2833 = vrot.lane.b32.xlu0 %v2828_v15, %s8718_s30  ;;  %v2901_v44 = vpop.permute.xlu1 %2900 }
 0x7b2   :  { %v2832_v13 = vpop.permute.xlu0 %2831 }
 0x7b3   :  { %v2837_v41 = vmul.f32 %v2832_v13, %v2809_v56  ;;  %v2838_v27 = vmul.f32 %v2832_v13, %v2810_v38  ;;  %v2840_v43 = vmul.f32 %v2832_v13, %v2812_v10  ;;  %v2839_v59 = vmul.f32 %v2832_v13, %v2811_v1  ;;  %v2936_v10 = vld [vmem:[#allocation3 + $0x1e0] sm:$0xff] }
 0x7b5   :  { %v2870_v6 = vmul.f32 %v2853_v7, %v2837_v41  ;;  %v2871_v30 = vmul.f32 %v2858_v32, %v2838_v27  ;;  %v2873_v58 = vmul.f32 %v2868_v12, %v2840_v43  ;;  %v2872_v50 = vmul.f32 %v2863_v53, %v2839_v59 }
 0x7b7   :  { %v2903_v57 = vadd.f32 %v2886_v35, %v2870_v6  ;;  %v2904_v29 = vadd.f32 %v2891_v60, %v2871_v30  ;;  %v2906_v47 = vadd.f32 %v2901_v44, %v2873_v58 }
 0x7b9   :  { %v9382_v62 = vadd.f32 %v2903_v57, %v8993_v18  ;;  %v9385_v3 = vadd.f32 %v2904_v29, %v8995_v25  ;;  %v9388_v24 = vadd.f32 %v2906_v47, %v8997_v19  ;;  %v2813_v25 = vsub.f32 %v9286_v8, %v9338_v33  ;;  %v3248_v8 = vld [vmem:[#allocation3 + $0x270] sm:$0xff] }
 0x7ba   :  { %v2814_v19 = vsub.f32 %v9283_v39, %v9338_v33  ;;  %v3093_v29 = vld [vmem:[#allocation3 + $0x230] sm:$0xff] }
 0x7bb   :  { %2919 = vst.msk [vmem:[#allocation2 + $0x2] sm:$0xff] %vm49_vm0, %v9382_v62  ;;  %2920 = vst.msk [vmem:[#allocation2 + $0xa] sm:$0xff] %vm49_vm0, %v9385_v3 }
 0x7bc   :  { %2922 = vst.msk [vmem:[#allocation2 + $0x1a] sm:$0xff] %vm49_vm0, %v9388_v24 }
 0x7bf   :  { %v2896_v40 = vpop.permute.xlu0 %2895 }
 0x7c0   :  { %v2905_v18 = vadd.f32 %v2896_v40, %v2872_v50 }
 0x7c2   :  { %v9399_v9 = vadd.f32 %v2905_v18, %v9007_v28  ;;  %v2940_v61 = vld [vmem:[#allocation2 + $0x1] sm:$0xff]  ;;  %v2941_v17 = vld [vmem:[#allocation2 + $0x9] sm:$0xff] }
 0x7c3   :  { %v3095_v54 = vld [vmem:[#allocation2 + $0x3] sm:$0xff]  ;;  %v2834_v14 = vpop.permute.xlu0 %2833  ;;  %8084 = vmatprep.mubr.msk.f32.mxu1 %vm49_vm0, %v2940_v61 }
 0x7c4   :  { %8104 = vmatprep.mubr.msk.f32.mxu0 %vm49_vm0, %v3095_v54  ;;  %2921 = vst.msk [vmem:[#allocation2 + $0x12] sm:$0xff] %vm49_vm0, %v9399_v9  ;;  %v2841_v28 = vmul.f32 %v2834_v14, %v2813_v25  ;;  %v2842_v39 = vmul.f32 %v2834_v14, %v2814_v19  ;;  %v2843_v21 = vmul.f32 %v2834_v14, %v2815_v2  ;;  %v3237_v43 = vld [vmem:[#allocation2 + $0x4] sm:$0xff]  ;;  %v3240_v47 = vld [vmem:[#allocation2 + $0x1c] sm:$0xff] }
 0x7c5   :  { %v2844_v34 = vmul.f32 %v2834_v14, %v2816_v45  ;;  %8085 = vmatmul.mubr.msk.f32.vlgmr.msra.gmra.mxu1 %vm49_vm0, %v2941_v17  ;;  %v2927_v6 = vld [vmem:[#allocation2] sm:$0xff]  ;;  %v2928_v58 = vld [vmem:[#allocation2 + $0x8] sm:$0xff]  ;;  %v3091_v45 = vld [vmem:[#allocation3 + $0x220] sm:$0xff] }
 0x7c6   :  { %8117 = vmatpush3.msra.mxu1 %v3249_v5  ;;  %v2874_v52 = vmul.f32 %v2853_v7, %v2841_v28  ;;  %v2875_v33 = vmul.f32 %v2858_v32, %v2842_v39  ;;  %v2876_v63 = vmul.f32 %v2863_v53, %v2843_v21  ;;  %v3094_v7 = vld [vmem:[#allocation3 + $0x238] sm:$0xff]  ;;  %v3085_v28 = vld [vmem:[#allocation2 + $0x1a] sm:$0xff] }
 0x7c7   :  { %v2877_v4 = vmul.f32 %v2868_v12, %v2844_v34  ;;  %8118 = vmatprep.subr.mxu1 %v3248_v8  ;;  %v3082_v17 = vld [vmem:[#allocation2 + $0x2] sm:$0xff]  ;;  %v3083_v14 = vld [vmem:[#allocation2 + $0xa] sm:$0xff] }
 0x7c8   :  { %8119 = vmatpush3.msra.mxu1 %v3248_v8  ;;  %v2907_v31 = vadd.f32 %v2886_v35, %v2874_v52  ;;  %v2908_v11 = vadd.f32 %v2891_v60, %v2875_v33  ;;  %v2909_v15 = vadd.f32 %v2896_v40, %v2876_v63  ;;  %v3092_v40 = vld [vmem:[#allocation3 + $0x228] sm:$0xff] }
 0x7c9   :  { %v2910_v23 = vadd.f32 %v2901_v44, %v2877_v4  ;;  %8120 = vmatprep.subr.mxu1 %v3247_v42 }
 0x7ca   :  { %8121 = vmatpush3.msra.mxu1 %v3247_v42  ;;  %v9413_v26 = vadd.f32 %v2907_v31, %v9022_v36  ;;  %v9416_v51 = vadd.f32 %v2908_v11, %v9024_v48  ;;  %v9419_v22 = vadd.f32 %v2909_v15, %v9026_v37  ;;  %v2938_v48 = vld [vmem:[#allocation3 + $0x1f0] sm:$0xff] }
 0x7cb   :  { %v9422_v5 = vadd.f32 %v2910_v23, %v9028_v20  ;;  %8122 = vmatprep.subr.mxu1 %v3246_v55  ;;  %v2942_v35 = vld [vmem:[#allocation2 + $0x11] sm:$0xff]  ;;  %v2943_v60 = vld [vmem:[#allocation2 + $0x19] sm:$0xff] }
 0x7cc   :  { %v3096_v32 = vld [vmem:[#allocation2 + $0xb] sm:$0xff]  ;;  %8123 = vmatpush3.msra.mxu1 %v3246_v55  ;;  %2923 = vst.msk [vmem:[#allocation2 + $0x2a] sm:$0xff] %vm49_vm0, %v9413_v26  ;;  %2924 = vst.msk [vmem:[#allocation2 + $0x32] sm:$0xff] %vm49_vm0, %v9416_v51  ;;  %8087 = vmatprep.mubr.msk.f32.mxu1 %vm49_vm0, %v2942_v35  ;;  %v3097_v36 = vld [vmem:[#allocation2 + $0x13] sm:$0xff] }
 0x7cd   :  { %2925 = vst.msk [vmem:[#allocation2 + $0x3a] sm:$0xff] %vm49_vm0, %v9419_v22  ;;  %2926 = vst.msk [vmem:[#allocation2 + $0x42] sm:$0xff] %vm49_vm0, %v9422_v5  ;;  %8105 = vmatmul.mubr.msk.f32.vlgmr.msra.gmra.mxu0 %vm49_vm0, %v3096_v32  ;;  %8088 = vmatmul.mubr.msk.f32.gmra.mxu1 %vm49_vm0, %v2943_v60  ;;  %v3098_v37 = vld [vmem:[#allocation2 + $0x1b] sm:$0xff]  ;;  %v3238_v30 = vld [vmem:[#allocation2 + $0xc] sm:$0xff] }
 0x7ce   :  { %8107 = vmatprep.mubr.msk.f32.mxu0 %vm49_vm0, %v3097_v36  ;;  %8137 = vmatpush3.msra.mxu0 %v9370_v16  ;;  %v2937_v20 = vld [vmem:[#allocation3 + $0x1e8] sm:$0xff]  ;;  %v2929_v57 = vld [vmem:[#allocation2 + $0x10] sm:$0xff] }
 0x7cf   :  { %8156 = vmatprep.subr.mxu1 %v3094_v7  ;;  %8138 = vmatprep.subr.mxu0 %v2938_v48  ;;  %v3239_v44 = vld [vmem:[#allocation2 + $0x14] sm:$0xff] }
 0x7d0   :  { %8139 = vmatpush3.msra.mxu0 %v2938_v48  ;;  %v2930_v1 = vld [vmem:[#allocation2 + $0x18] sm:$0xff] }
 0x7d1   :  { %8108 = vmatmul.mubr.msk.f32.gmra.mxu0 %vm49_vm0, %v3098_v37  ;;  %8140 = vmatprep.subr.mxu0 %v2937_v20  ;;  %v3084_v8 = vld [vmem:[#allocation2 + $0x12] sm:$0xff] }
 0x7d2   :  { %8141 = vmatpush3.msra.mxu0 %v2937_v20 }
 0x7d3   :  { %v2944_v53 = vld [vmem:[#allocation2 + $0x29] sm:$0xff]  ;;  %v2945_v56 = vld [vmem:[#allocation2 + $0x31] sm:$0xff]  ;;  %8142 = vmatprep.subr.mxu0 %v2936_v10 }
 0x7d4   :  { %v3099_v12 = vld [vmem:[#allocation2 + $0x2b] sm:$0xff]  ;;  %8090 = vmatprep.mubr.msk.f32.mxu1 %vm49_vm0, %v2944_v53  ;;  %v3100_v38 = vld [vmem:[#allocation2 + $0x33] sm:$0xff]  ;;  %v3101_v13 = vld [vmem:[#allocation2 + $0x3b] sm:$0xff]  ;;  %8143 = vmatpush3.msra.mxu0 %v2936_v10 }
 0x7d5   :  { %8110 = vmatprep.mubr.msk.f32.mxu0 %vm49_vm0, %v3099_v12  ;;  %8091 = vmatmul.mubr.msk.f32.gmra.mxu1 %vm49_vm0, %v2945_v56  ;;  %v2946_v16 = vld [vmem:[#allocation2 + $0x39] sm:$0xff]  ;;  %v2947_v41 = vld [vmem:[#allocation2 + $0x41] sm:$0xff]  ;;  %v3241_v59 = vld [vmem:[#allocation2 + $0x2c] sm:$0xff] }
 0x7d6   :  { %8111 = vmatmul.mubr.msk.f32.gmra.mxu0 %vm49_vm0, %v3100_v38  ;;  %8093 = vmatprep.mubr.msk.f32.mxu1 %vm49_vm0, %v2946_v16  ;;  %v3102_v27 = vld [vmem:[#allocation2 + $0x43] sm:$0xff]  ;;  %v3242_v18 = vld [vmem:[#allocation2 + $0x34] sm:$0xff] }
 0x7d7   :  { %8113 = vmatprep.mubr.msk.f32.mxu0 %vm49_vm0, %v3101_v13  ;;  %v2931_v50 = vld [vmem:[#allocation2 + $0x28] sm:$0xff]  ;;  %v2932_v25 = vld [vmem:[#allocation2 + $0x30] sm:$0xff]  ;;  %v3243_v19 = vld [vmem:[#allocation2 + $0x3c] sm:$0xff] }
 0x7d8   :  { %v2933_v2 = vld [vmem:[#allocation2 + $0x38] sm:$0xff]  ;;  %v3244_v61 = vld [vmem:[#allocation2 + $0x44] sm:$0xff] }
 0x7d9   :  { %8094 = vmatmul.mubr.msk.f32.gmra.mxu1 %vm49_vm0, %v2947_v41  ;;  %v2934_v54 = vld [vmem:[#allocation2 + $0x40] sm:$0xff]  ;;  %v3086_v39 = vld [vmem:[#allocation2 + $0x2a] sm:$0xff]  ;;  %v3087_v21 = vld [vmem:[#allocation2 + $0x32] sm:$0xff] }
 0x7da   :  { %8114 = vmatmul.mubr.msk.f32.gmra.mxu0 %vm49_vm0, %v3102_v27  ;;  %8124 = vmatprep.mubr.msk.f32.mxu1 %vm49_vm0, %v3237_v43  ;;  %v3088_v34 = vld [vmem:[#allocation2 + $0x3a] sm:$0xff]  ;;  %v3089_v42 = vld [vmem:[#allocation2 + $0x42] sm:$0xff] }
 0x7db   :  { %8144 = vmatprep.mubr.msk.f32.mxu0 %vm49_vm0, %v2927_v6 }
 0x7dd   :  { %8125 = vmatmul.mubr.msk.f32.vlgmr.msra.gmra.mxu1 %vm49_vm0, %v3238_v30 }
 0x7de   :  { %8145 = vmatmul.mubr.msk.f32.vlgmr.msra.gmra.mxu0 %vm49_vm0, %v2928_v58  ;;  %8127 = vmatprep.mubr.msk.f32.mxu1 %vm49_vm0, %v3239_v44 }
 0x7df   :  { %8147 = vmatprep.mubr.msk.f32.mxu0 %vm49_vm0, %v2929_v57  ;;  %8157 = vmatpush3.msra.mxu1 %v3094_v7 }
 0x7e0   :  { %8158 = vmatprep.subr.mxu1 %v3093_v29 }
 0x7e1   :  { %8128 = vmatmul.mubr.msk.f32.gmra.mxu1 %vm49_vm0, %v3240_v47 }
 0x7e2   :  { %8148 = vmatmul.mubr.msk.f32.gmra.mxu0 %vm49_vm0, %v2930_v1  ;;  %8130 = vmatprep.mubr.msk.f32.mxu1 %vm49_vm0, %v3241_v59 }
 0x7e3   :  { %8150 = vmatprep.mubr.msk.f32.mxu0 %vm49_vm0, %v2931_v50  ;;  %8159 = vmatpush3.msra.mxu1 %v3093_v29 }
 0x7e4   :  { %8160 = vmatprep.subr.mxu1 %v3092_v40 }
 0x7e5   :  { %8131 = vmatmul.mubr.msk.f32.gmra.mxu1 %vm49_vm0, %v3242_v18 }
 0x7e6   :  { %8151 = vmatmul.mubr.msk.f32.gmra.mxu0 %vm49_vm0, %v2932_v25  ;;  %8133 = vmatprep.mubr.msk.f32.mxu1 %vm49_vm0, %v3243_v19 }
 0x7e7   :  { %8153 = vmatprep.mubr.msk.f32.mxu0 %vm49_vm0, %v2933_v2  ;;  %8161 = vmatpush3.msra.mxu1 %v3092_v40  ;;  %v7160_v40 = vld [vmem:[%s10780_s2 + $0x3] ss:$0 sm:$0xff] }
 0x7e8   :  { %8162 = vmatprep.subr.mxu1 %v3091_v45 }
 0x7e9   :  { %8134 = vmatmul.mubr.msk.f32.gmra.mxu1 %vm49_vm0, %v3244_v61 }
 0x7ea   :  { %8154 = vmatmul.mubr.msk.f32.gmra.mxu0 %vm49_vm0, %v2934_v54  ;;  %8163 = vmatpush3.msra.mxu1 %v3091_v45 }
 0x7eb   :  { %8164 = vmatprep.mubr.msk.f32.mxu1 %vm49_vm0, %v3082_v17 }
 0x7ed   :  { %8165 = vmatmul.mubr.msk.f32.vlgmr.msra.gmra.mxu1 %vm49_vm0, %v3083_v14 }
 0x7ee   :  { %8167 = vmatprep.mubr.msk.f32.mxu1 %vm49_vm0, %v3084_v8 }
 0x7f1   :  { %8168 = vmatmul.mubr.msk.f32.gmra.mxu1 %vm49_vm0, %v3085_v28 }
 0x7f2   :  { %8170 = vmatprep.mubr.msk.f32.mxu1 %vm49_vm0, %v3086_v39 }
 0x7f5   :  { %8171 = vmatmul.mubr.msk.f32.gmra.mxu1 %vm49_vm0, %v3087_v21 }
 0x7f6   :  { %8173 = vmatprep.mubr.msk.f32.mxu1 %vm49_vm0, %v3088_v34 }
 0x7f9   :  { %8174 = vmatmul.mubr.msk.f32.gmra.mxu1 %vm49_vm0, %v3089_v42 }
 0x885   :  { %v8086_v52 = vpop.f32.mrf.mxu1 }
 0x887   :  { %v3043_v63 = vpop.f32.mrf.mxu1 }
 0x88d   :  { %v8106_v33 = vpop.f32.mrf.mxu0  ;;  %v8089_v55 = vpop.f32.mrf.mxu1 }
 0x88f   :  { %v3198_v4 = vpop.f32.mrf.mxu0  ;;  %v3053_v15 = vpop.f32.mrf.mxu1 }
 0x891   :  { %v8109_v31 = vpop.f32.mrf.mxu0 }
 0x893   :  { %v3208_v11 = vpop.f32.mrf.mxu0 }
 0x895   :  { %v8092_v23 = vpop.f32.mrf.mxu1 }
 0x896   :  { %v8112_v7 = vpop.f32.mrf.mxu0 }
 0x897   :  { %v3063_v35 = vpop.f32.mrf.mxu1 }
 0x898   :  { %v3218_v32 = vpop.f32.mrf.mxu0 }
 0x899   :  { %v8095_v60 = vpop.f32.mrf.mxu1 }
 0x89a   :  { %v8115_v36 = vpop.f32.mrf.mxu0 }
 0x89b   :  { %v3073_v48 = vpop.f32.mrf.mxu1 }
 0x89c   :  { %v9470_v37 = vpop.f32.mrf.mxu0 }
 0x89d   :  { %v8126_v20 = vpop.f32.mrf.mxu1 }
 0x89e   :  { %v8146_v53 = vpop.f32.mrf.mxu0 }
 0x89f   :  { %v3340_v12 = vpop.f32.mrf.mxu1  ;;  %v3475_v44 = vadd.f32 %v8146_v53, %v8086_v52 }
 0x8a0   :  { %v3469_v56 = vpop.f32.mrf.mxu0 }
 0x8a1   :  { %v8129_v38 = vpop.f32.mrf.mxu1  ;;  %v3470_v47 = vadd.f32 %v3469_v56, %v3043_v63 }
 0x8a2   :  { %v8149_v16 = vpop.f32.mrf.mxu0 }
 0x8a3   :  { %v3350_v10 = vpop.f32.mrf.mxu1  ;;  %v3485_v25 = vadd.f32 %v8149_v16, %v8089_v55 }
 0x8a4   :  { %v3479_v27 = vpop.f32.mrf.mxu0 }
 0x8a5   :  { %v8132_v13 = vpop.f32.mrf.mxu1  ;;  %v3480_v61 = vadd.f32 %v3479_v27, %v3053_v15 }
 0x8a6   :  { %v8152_v30 = vpop.f32.mrf.mxu0 }
 0x8a7   :  { %v3360_v41 = vpop.f32.mrf.mxu1  ;;  %v3495_v63 = vadd.f32 %v8152_v30, %v8092_v23 }
 0x8a8   :  { %v3489_v1 = vpop.f32.mrf.mxu0 }
 0x8a9   :  { %v8135_v43 = vpop.f32.mrf.mxu1 }
 0x8aa   :  { %v8155_v17 = vpop.f32.mrf.mxu0 }
 0x8ab   :  { %v9472_v6 = vpop.f32.mrf.mxu1  ;;  %v3505_v27 = vadd.f32 %v8155_v17, %v8095_v60 }
 0x8ad   :  { %v8166_v58 = vpop.f32.mrf.mxu1 }
 0x8ae   :  { %v3604_v57 = vadd.f32 %v8166_v58, %v8106_v33 }
 0x8af   :  { %v3598_v29 = vpop.f32.mrf.mxu1 }
 0x8b0   :  { %v3638_v59 = vadd.f32 %v3604_v57, %v3475_v44  ;;  %v3599_v50 = vadd.f32 %v3598_v29, %v3198_v4  ;;  %v3490_v4 = vadd.f32 %v3489_v1, %v3063_v35 }
 0x8b1   :  { %v8169_v18 = vpop.f32.mrf.mxu1 }
 0x8b2   :  { %v3646_v19 = vadd.f32 %v8126_v20, %v3638_v59  ;;  %v3637_v2 = vadd.f32 %v3599_v50, %v3470_v47  ;;  %v3614_v45 = vadd.f32 %v8169_v18, %v8109_v31  ;;  %v3499_v20 = vpop.f32.mrf.mxu0 }
 0x8b3   :  { %v3608_v54 = vpop.f32.mrf.mxu1  ;;  %v3500_v35 = vadd.f32 %v3499_v20, %v3073_v48 }
 0x8b4   :  { %v3662_v14 = vadd.f32 %v7160_v40, %v3646_v19  ;;  %v3645_v8 = vadd.f32 %v3637_v2, %v3340_v12  ;;  %v3640_v28 = vadd.f32 %v3614_v45, %v3485_v25  ;;  %v3609_v39 = vadd.f32 %v3608_v54, %v3208_v11 }
 0x8b5   :  { %v8172_v21 = vpop.f32.mrf.mxu1 }
 0x8b6   :  { %v9477_v34 = vmax.f32 %v3662_v14, 0.0  ;;  %v3661_v42 = vadd.f32 %v7160_v40, %v3645_v8  ;;  %v3648_v52 = vadd.f32 %v8129_v38, %v3640_v28  ;;  %v3639_v33 = vadd.f32 %v3609_v39, %v3480_v61 }
 0x8b7   :  { %v3624_v53 = vadd.f32 %v8172_v21, %v8112_v7  ;;  %v3618_v55 = vpop.f32.mrf.mxu1 }
 0x8b8   :  { %v9479_v56 = vmax.f32 %v3661_v42, 0.0  ;;  %v3664_v31 = vadd.f32 %v7160_v40, %v3648_v52  ;;  %v3647_v15 = vadd.f32 %v3639_v33, %v3350_v10  ;;  %v3619_v16 = vadd.f32 %v3618_v55, %v3218_v32 }
 0x8b9   :  { %v3642_v12 = vadd.f32 %v3624_v53, %v3495_v63  ;;  %v8175_v58 = vpop.f32.mrf.mxu1  ;;  %v3678_v11 = vmul.f32 %v9477_v34, %v9477_v34 }
 0x8ba   :  { %v9483_v44 = vmax.f32 %v3664_v31, 0.0  ;;  %v3663_v38 = vadd.f32 %v7160_v40, %v3647_v15  ;;  %v3641_v57 = vadd.f32 %v3619_v16, %v3490_v4  ;;  %v3634_v23 = vadd.f32 %v8175_v58, %v8115_v36 }
 0x8bb   :  { %v3650_v7 = vadd.f32 %v8132_v13, %v3642_v12  ;;  %3695 = vrot.lane.b32.xlu0 %v3678_v11, %s8716_s16  ;;  %v3628_v30 = vpop.f32.mrf.mxu1  ;;  %v3677_v10 = vmul.f32 %v9479_v56, %v9479_v56 }
 0x8bc   :  { %v9488_v32 = vmax.f32 %v3663_v38, 0.0  ;;  %v3649_v60 = vadd.f32 %v3641_v57, %v3360_v41  ;;  %v3644_v29 = vadd.f32 %v3634_v23, %v3505_v27  ;;  %v3629_v47 = vadd.f32 %v3628_v30, %v9470_v37 }
 0x8bd   :  { %v3666_v1 = vadd.f32 %v7160_v40, %v3650_v7  ;;  %3693 = vrot.lane.b32.xlu1 %v3677_v10, %s8716_s16  ;;  %v3680_v36 = vmul.f32 %v9483_v44, %v9483_v44 }
 0x8be   :  { %v3665_v48 = vadd.f32 %v7160_v40, %v3649_v60  ;;  %v3652_v13 = vadd.f32 %v8135_v43, %v3644_v29  ;;  %v3643_v59 = vadd.f32 %v3629_v47, %v3500_v35  ;;  %v3679_v50 = vmul.f32 %v9488_v32, %v9488_v32 }
 0x8bf   :  { %v9496_v18 = vmax.f32 %v3666_v1, 0.0  ;;  %3699 = vrot.lane.b32.xlu0 %v3680_v36, %s8716_s16 }
 0x8c0   :  { %v9499_v41 = vmax.f32 %v3665_v48, 0.0  ;;  %v3668_v25 = vadd.f32 %v7160_v40, %v3652_v13  ;;  %v3651_v37 = vadd.f32 %v3643_v59, %v9472_v6 }
 0x8c1   :  { %3697 = vrot.lane.b32.xlu1 %v3679_v50, %s8716_s16  ;;  %v3682_v19 = vmul.f32 %v9496_v18, %v9496_v18 }
 0x8c2   :  { %v9505_v2 = vmax.f32 %v3668_v25, 0.0  ;;  %v3667_v43 = vadd.f32 %v7160_v40, %v3651_v37  ;;  %v3681_v45 = vmul.f32 %v9499_v41, %v9499_v41 }
 0x8c3   :  { %3703 = vrot.lane.b32.xlu0 %v3682_v19, %s8716_s16 }
 0x8c4   :  { %v9510_v61 = vmax.f32 %v3667_v43, 0.0  ;;  %v3684_v54 = vmul.f32 %v9505_v2, %v9505_v2 }
 0x8c5   :  { %3701 = vrot.lane.b32.xlu1 %v3681_v45, %s8716_s16 }
 0x8c6   :  { %v3683_v6 = vmul.f32 %v9510_v61, %v9510_v61 }
 0x8c7   :  { %3707 = vrot.lane.b32.xlu0 %v3684_v54, %s8716_s16  ;;  %v7161_v54 = vld [vmem:[%s10781_s3 + $0x60] sm:$0xff] }
 0x8c9   :  { %3705 = vrot.lane.b32.xlu1 %v3683_v6, %s8716_s16 }
 0x92d   :  { %v3696_v40 = vpop.permute.xlu0 %3695 }
 0x92e   :  { %v3718_v14 = vsel %vm49_vm0, %v9477_v34, %v3696_v40 }
 0x92f   :  { %v3694_v17 = vpop.permute.xlu1 %3693  ;;  %v3726_v21 = vsel %vm874_vm3, %v3718_v14, 0.0 }
 0x930   :  { %v3717_v8 = vsel %vm49_vm0, %v9479_v56, %v3694_v17  ;;  %v7165_v17 = vld [vmem:[%s10782_s4 + $0x60] sm:$0xff] }
 0x931   :  { %v3725_v28 = vsel %vm874_vm3, %v3717_v8, 0.0  ;;  %v3700_v39 = vpop.permute.xlu0 %3699  ;;  %v7166_v8 = vld [vmem:[%s10782_s4 + $0x68] sm:$0xff] }
 0x932   :  { %v3727_v52 = vadd.f32 %v3726_v21, %v3725_v28  ;;  %v3720_v33 = vsel %vm49_vm0, %v9483_v44, %v3700_v39  ;;  %v7162_v28 = vld [vmem:[%s10781_s3 + $0x68] sm:$0xff]  ;;  %v7164_v39 = vld [vmem:[%s10781_s3 + $0x78] sm:$0xff]  ;;  %v7163_v21 = vld [vmem:[%s10781_s3 + $0x70] sm:$0xff] }
 0x933   :  { %v3698_v42 = vpop.permute.xlu1 %3697  ;;  %v3730_v20 = vsel %vm874_vm3, %v3720_v33, 0.0 }
 0x934   :  { %v3719_v63 = vsel %vm49_vm0, %v9488_v32, %v3698_v42  ;;  %v7168_v42 = vld [vmem:[%s10782_s4 + $0x78] sm:$0xff] }
 0x935   :  { %v3728_v4 = vsel %vm874_vm3, %v3719_v63, 0.0  ;;  %v3704_v53 = vpop.permute.xlu0 %3703 }
 0x936   :  { %v3729_v55 = vadd.f32 %v3728_v4, %v3727_v52  ;;  %v3722_v16 = vsel %vm49_vm0, %v9496_v18, %v3704_v53 }
 0x937   :  { %v3702_v31 = vpop.permute.xlu1 %3701  ;;  %v3739_v38 = vsel %vm874_vm3, %v3722_v16, 0.0 }
 0x938   :  { %v3731_v15 = vadd.f32 %v3730_v20, %v3729_v55  ;;  %v3721_v27 = vsel %vm49_vm0, %v9499_v41, %v3702_v31  ;;  %v3900_v20 = vld [vmem:[#allocation3 + $0x2b8] sm:$0xff]  ;;  %v3899_v31 = vld [vmem:[#allocation3 + $0x2b0] sm:$0xff] }
 0x939   :  { %v3738_v12 = vsel %vm874_vm3, %v3721_v27, 0.0  ;;  %v3708_v58 = vpop.permute.xlu0 %3707  ;;  %8176 = vmatprep.subr.mxu0 %v3900_v20 }
 0x93a   :  { %v3732_v11 = vrot.slane %v3731_v15, 4  ;;  %v3740_v35 = vadd.f32 %v3739_v38, %v3738_v12  ;;  %v3724_v7 = vsel %vm49_vm0, %v9505_v2, %v3708_v58  ;;  %8177 = vmatpush3.msra.mxu0 %v3900_v20  ;;  %v7167_v12 = vld [vmem:[%s10782_s4 + $0x70] sm:$0xff] }
 0x93b   :  { %v3706_v57 = vpop.permute.xlu1 %3705  ;;  %v3743_v47 = vsel %vm874_vm3, %v3724_v7, 0.0  ;;  %8178 = vmatprep.subr.mxu0 %v3899_v31  ;;  %v3897_v58 = vld [vmem:[#allocation3 + $0x2a0] sm:$0xff] }
 0x93c   :  { %v3733_v23 = vadd.f32 %v3732_v11, %v3731_v15  ;;  %v3723_v30 = vsel %vm49_vm0, %v9510_v61, %v3706_v57  ;;  %v3898_v15 = vld [vmem:[#allocation3 + $0x2a8] sm:$0xff]  ;;  %8179 = vmatpush3.msra.mxu0 %v3899_v31  ;;  %v4055_v11 = vld [vmem:[#allocation3 + $0x2f8] sm:$0xff]  ;;  %v4052_v7 = vld [vmem:[#allocation3 + $0x2e0] sm:$0xff] }
 0x93d   :  { %v3741_v10 = vsel %vm874_vm3, %v3723_v30, 0.0  ;;  %8180 = vmatprep.subr.mxu0 %v3898_v15  ;;  %8196 = vmatprep.subr.mxu1 %v4055_v11  ;;  %v4197_v30 = vld [vmem:[#allocation3 + $0x318] sm:$0xff]  ;;  %v4195_v31 = vld [vmem:[#allocation3 + $0x308] sm:$0xff] }
 0x93e   :  { %v3734_v60 = vrot.slane %v3733_v23, 2  ;;  %v3742_v29 = vadd.f32 %v3741_v10, %v3740_v35  ;;  %8181 = vmatpush3.msra.mxu0 %v3898_v15  ;;  %8197 = vmatpush3.msra.mxu1 %v4055_v11  ;;  %v4053_v35 = vld [vmem:[#allocation3 + $0x2e8] sm:$0xff]  ;;  %v9583_v10 = vld [vmem:[#allocation3 + $0x298] sm:$0xff] }
 0x93f   :  { %8182 = vmatprep.subr.mxu0 %v3897_v58 }
 0x940   :  { %v3735_v1 = vadd.f32 %v3734_v60, %v3733_v23  ;;  %v3744_v36 = vadd.f32 %v3743_v47, %v3742_v29  ;;  %8183 = vmatpush3.msra.mxu0 %v3897_v58  ;;  %v4054_v23 = vld [vmem:[#allocation3 + $0x2f0] sm:$0xff]  ;;  %v4194_v58 = vld [vmem:[#allocation3 + $0x300] sm:$0xff] }
 0x941   :  { %8198 = vmatprep.subr.mxu1 %v4054_v23  ;;  %8216 = vmatprep.subr.mxu0 %v4197_v30 }
 0x942   :  { %v3736_v48 = vrot.slane %v3735_v1, 1  ;;  %v3745_v13 = vrot.slane %v3744_v36, 4  ;;  %8199 = vmatpush3.msra.mxu1 %v4054_v23 }
 0x943   :  { %8200 = vmatprep.subr.mxu1 %v4053_v35 }
 0x944   :  { %v3737_v59 = vadd.f32 %v3736_v48, %v3735_v1  ;;  %v3746_v50 = vadd.f32 %v3745_v13, %v3744_v36  ;;  %8201 = vmatpush3.msra.mxu1 %v4053_v35 }
 0x945   :  { %8202 = vmatprep.subr.mxu1 %v4052_v7 }
 0x946   :  { %v9543_v25 = vmul.f32 0.03125, %v3737_v59  ;;  %v3747_v37 = vrot.slane %v3746_v50, 2  ;;  %8203 = vmatpush3.msra.mxu1 %v4052_v7 }
 0x947   :  { %8236 = vmatprep.subr.mxu1 %v9583_v10 }
 0x948   :  { %v3748_v19 = vadd.f32 %v3747_v37, %v3746_v50  ;;  %v3753_v43 = vmul.f32 %v9543_v25, %v9543_v25  ;;  %v3765_v13 = vsub.f32 %v9479_v56, %v9543_v25  ;;  %v3766_v59 = vsub.f32 %v9477_v34, %v9543_v25 }
 0x949   :  { %v3768_v50 = vsub.f32 %v9483_v44, %v9543_v25  ;;  %v3767_v56 = vsub.f32 %v9488_v32, %v9543_v25 }
 0x94a   :  { %v3749_v45 = vrot.slane %v3748_v19, 1  ;;  %3757 = vrot.lane.b32.xlu1 %v3753_v43, %s8716_s16 }
 0x94c   :  { %v3750_v6 = vadd.f32 %v3749_v45, %v3748_v19 }
 0x94e   :  { %v9551_v40 = vmul.f32 0.03125, %v3750_v6  ;;  %3808 = vperm.xlu1 %8541, %v7161_v54  }
 0x950   :  { %v3754_v14 = vmul.f32 %v9551_v40, %v9551_v40  ;;  %v3769_v32 = vsub.f32 %v9499_v41, %v9551_v40 }
 0x952   :  { %3841 = vperm.xlu1 %8541, %v7165_v17   ;;  %3759 = vrot.lane.b32.xlu0 %v3754_v14, %s8716_s16 }
 0x956   :  { %3846 = vperm.xlu1 %8541, %v7166_v8   ;;  %3813 = vperm.xlu0 %8540, %v7162_v28  }
 0x95a   :  { %3823 = vperm.xlu1 %8541, %v7164_v39   ;;  %3818 = vperm.xlu0 %8540, %v7163_v21  }
 0x95e   :  { %3856 = vperm.xlu1 %8541, %v7168_v42  }
 0x9bc   :  { %v3758_v52 = vpop.permute.xlu1 %3757 }
 0x9bd   :  { %v3763_v33 = vsub.f32 %v9543_v25, %v3758_v52  ;;  %v3770_v25 = vsub.f32 %v9496_v18, %v9551_v40 }
 0x9bf   :  { %v3773_v63 = vadd.f32 1e-05, %v3763_v33 }
 0x9c1   :  { %8554 = vrsqrt.f32 %v3773_v63 }
 0x9c4   :  { %v3760_v4 = vpop.permute.xlu0 %3759 }
 0x9c5   :  { %v3764_v53 = vsub.f32 %v9551_v40, %v3760_v4  ;;  %v4196_v4 = vld [vmem:[#allocation3 + $0x310] sm:$0xff] }
 0x9c7   :  { %v3774_v55 = vadd.f32 1e-05, %v3764_v53  ;;  %v3771_v53 = vsub.f32 %v9510_v61, %v9551_v40 }
 0x9c9   :  { %8556 = vrsqrt.f32 %v3774_v55  ;;  %v3809_v60 = vpop.permute.xlu1 %3808  ;;  %v3772_v55 = vsub.f32 %v9505_v2, %v9551_v40  ;;  %v4042_v40 = vld [vmem:[#allocation3 + $0x2d8] sm:$0xff] }
 0x9cd   :  { %v3842_v29 = vpop.permute.xlu1 %3841 }
 0x9ce   :  { %v8555_v16 = vpop.eup %8554 }
 0x9cf   :  { %v3780_v27 = vrot.slane %v8555_v16, %v8975_v49 }
 0x9d1   :  { %3787 = vrot.lane.b32.xlu0 %v3780_v27, %s8718_s30  ;;  %v3814_v47 = vpop.permute.xlu0 %3813  ;;  %v3847_v1 = vpop.permute.xlu1 %3846 }
 0x9d5   :  { %3851 = vperm.xlu0 %8540, %v7167_v12   ;;  %v3819_v36 = vpop.permute.xlu0 %3818  ;;  %v3824_v48 = vpop.permute.xlu1 %3823 }
 0x9d6   :  { %v8557_v38 = vpop.eup %8556 }
 0x9d7   :  { %v3784_v57 = vrot.slane %v8557_v38, %v8975_v49 }
 0x9d9   :  { %3789 = vrot.lane.b32.xlu0 %v3784_v57, %s8718_s30  ;;  %v3857_v14 = vpop.permute.xlu1 %3856 }
 0xa43   :  { %v3788_v37 = vpop.permute.xlu0 %3787 }
 0xa44   :  { %v3793_v19 = vmul.f32 %v3788_v37, %v3765_v13  ;;  %v3794_v43 = vmul.f32 %v3788_v37, %v3766_v59  ;;  %v3796_v45 = vmul.f32 %v3788_v37, %v3768_v50  ;;  %v3795_v34 = vmul.f32 %v3788_v37, %v3767_v56  ;;  %v3884_v50 = vld [vmem:[#allocation3 + $0x280] sm:$0xff] }
 0xa46   :  { %v3826_v54 = vmul.f32 %v3809_v60, %v3793_v19  ;;  %v3827_v6 = vmul.f32 %v3814_v47, %v3794_v43  ;;  %v3829_v17 = vmul.f32 %v3824_v48, %v3796_v45  ;;  %v3828_v44 = vmul.f32 %v3819_v36, %v3795_v34 }
 0xa48   :  { %v3859_v8 = vadd.f32 %v3842_v29, %v3826_v54  ;;  %v3860_v28 = vadd.f32 %v3847_v1, %v3827_v6  ;;  %v3862_v39 = vadd.f32 %v3857_v14, %v3829_v17 }
 0xa4a   :  { %3867 = vst.msk [vmem:[#allocation2 + $0x2] sm:$0xff] %vm49_vm0, %v3859_v8  ;;  %3868 = vst.msk [vmem:[#allocation2 + $0xa] sm:$0xff] %vm49_vm0, %v3860_v28  ;;  %v4041_v28 = vld [vmem:[#allocation3 + $0x2d0] sm:$0xff] }
 0xa4b   :  { %3870 = vst.msk [vmem:[#allocation2 + $0x1a] sm:$0xff] %vm49_vm0, %v3862_v39 }
 0xa50   :  { %v3852_v21 = vpop.permute.xlu0 %3851 }
 0xa51   :  { %v3861_v42 = vadd.f32 %v3852_v21, %v3828_v44  ;;  %v3888_v52 = vld [vmem:[#allocation2 + $0x1] sm:$0xff]  ;;  %v3889_v63 = vld [vmem:[#allocation2 + $0x9] sm:$0xff] }
 0xa52   :  { %v4043_v33 = vld [vmem:[#allocation2 + $0x3] sm:$0xff]  ;;  %8184 = vmatprep.mubr.msk.f32.mxu0 %vm49_vm0, %v3888_v52 }
 0xa53   :  { %8204 = vmatprep.mubr.msk.f32.mxu1 %vm49_vm0, %v4043_v33  ;;  %3869 = vst.msk [vmem:[#allocation2 + $0x12] sm:$0xff] %vm49_vm0, %v3861_v42  ;;  %8185 = vmatmul.mubr.msk.f32.vlgmr.msra.gmra.mxu0 %vm49_vm0, %v3889_v63  ;;  %v4185_v45 = vld [vmem:[#allocation2 + $0x4] sm:$0xff]  ;;  %v4188_v39 = vld [vmem:[#allocation2 + $0x1c] sm:$0xff] }
 0xa54   :  { %v3790_v20 = vpop.permute.xlu0 %3789  ;;  %8217 = vmatpush3.msra.mxu0 %v4197_v30  ;;  %v3875_v54 = vld [vmem:[#allocation2] sm:$0xff]  ;;  %v3876_v17 = vld [vmem:[#allocation2 + $0x8] sm:$0xff] }
 0xa55   :  { %v3797_v15 = vmul.f32 %v3790_v20, %v3769_v32  ;;  %v3798_v16 = vmul.f32 %v3790_v20, %v3770_v25  ;;  %v3799_v27 = vmul.f32 %v3790_v20, %v3771_v53  ;;  %v3800_v12 = vmul.f32 %v3790_v20, %v3772_v55  ;;  %8218 = vmatprep.subr.mxu0 %v4196_v4  ;;  %v4030_v53 = vld [vmem:[#allocation2 + $0x2] sm:$0xff]  ;;  %v4031_v55 = vld [vmem:[#allocation2 + $0xa] sm:$0xff] }
 0xa56   :  { %8219 = vmatpush3.msra.mxu0 %v4196_v4  ;;  %v4039_v4 = vld [vmem:[#allocation3 + $0x2c0] sm:$0xff] }
 0xa57   :  { %v3830_v41 = vmul.f32 %v3809_v60, %v3797_v15  ;;  %v3831_v11 = vmul.f32 %v3814_v47, %v3798_v16  ;;  %v3832_v38 = vmul.f32 %v3819_v36, %v3799_v27  ;;  %v3833_v18 = vmul.f32 %v3824_v48, %v3800_v12  ;;  %8220 = vmatprep.subr.mxu0 %v4195_v31  ;;  %v4046_v47 = vld [vmem:[#allocation2 + $0x1b] sm:$0xff] }
 0xa58   :  { %8221 = vmatpush3.msra.mxu0 %v4195_v31  ;;  %v4033_v31 = vld [vmem:[#allocation2 + $0x1a] sm:$0xff] }
 0xa59   :  { %v3863_v61 = vadd.f32 %v3842_v29, %v3830_v41  ;;  %v3864_v57 = vadd.f32 %v3847_v1, %v3831_v11  ;;  %v3865_v23 = vadd.f32 %v3852_v21, %v3832_v38  ;;  %v3866_v2 = vadd.f32 %v3857_v14, %v3833_v18  ;;  %8222 = vmatprep.subr.mxu0 %v4194_v58  ;;  %v3886_v29 = vld [vmem:[#allocation3 + $0x290] sm:$0xff]  ;;  %v3885_v1 = vld [vmem:[#allocation3 + $0x288] sm:$0xff] }
 0xa5a   :  { %v3890_v35 = vld [vmem:[#allocation2 + $0x11] sm:$0xff]  ;;  %v3891_v30 = vld [vmem:[#allocation2 + $0x19] sm:$0xff]  ;;  %8223 = vmatpush3.msra.mxu0 %v4194_v58 }
 0xa5b   :  { %v4044_v7 = vld [vmem:[#allocation2 + $0xb] sm:$0xff]  ;;  %3871 = vst.msk [vmem:[#allocation2 + $0x2a] sm:$0xff] %vm49_vm0, %v3863_v61  ;;  %3872 = vst.msk [vmem:[#allocation2 + $0x32] sm:$0xff] %vm49_vm0, %v3864_v57  ;;  %8187 = vmatprep.mubr.msk.f32.mxu0 %vm49_vm0, %v3890_v35  ;;  %v4045_v60 = vld [vmem:[#allocation2 + $0x13] sm:$0xff]  ;;  %8256 = vmatprep.subr.mxu0 %v4042_v40 }
 0xa5c   :  { %3873 = vst.msk [vmem:[#allocation2 + $0x3a] sm:$0xff] %vm49_vm0, %v3865_v23  ;;  %3874 = vst.msk [vmem:[#allocation2 + $0x42] sm:$0xff] %vm49_vm0, %v3866_v2  ;;  %8205 = vmatmul.mubr.msk.f32.vlgmr.msra.gmra.mxu1 %vm49_vm0, %v4044_v7  ;;  %8188 = vmatmul.mubr.msk.f32.gmra.mxu0 %vm49_vm0, %v3891_v30  ;;  %v4186_v6 = vld [vmem:[#allocation2 + $0xc] sm:$0xff]  ;;  %v4187_v14 = vld [vmem:[#allocation2 + $0x14] sm:$0xff] }
 0xa5d   :  { %8207 = vmatprep.mubr.msk.f32.mxu1 %vm49_vm0, %v4045_v60  ;;  %8237 = vmatpush3.msra.mxu1 %v9583_v10  ;;  %v3877_v8 = vld [vmem:[#allocation2 + $0x10] sm:$0xff]  ;;  %v3878_v56 = vld [vmem:[#allocation2 + $0x18] sm:$0xff] }
 0xa5e   :  { %8238 = vmatprep.subr.mxu1 %v3886_v29  ;;  %v4040_v21 = vld [vmem:[#allocation3 + $0x2c8] sm:$0xff] }
 0xa5f   :  { %8239 = vmatpush3.msra.mxu1 %v3886_v29  ;;  %v4032_v20 = vld [vmem:[#allocation2 + $0x12] sm:$0xff] }
 0xa60   :  { %8208 = vmatmul.mubr.msk.f32.gmra.mxu1 %vm49_vm0, %v4046_v47  ;;  %8240 = vmatprep.subr.mxu1 %v3885_v1 }
 0xa61   :  { %8241 = vmatpush3.msra.mxu1 %v3885_v1 }
 0xa62   :  { %v3892_v36 = vld [vmem:[#allocation2 + $0x29] sm:$0xff]  ;;  %v3893_v13 = vld [vmem:[#allocation2 + $0x31] sm:$0xff]  ;;  %8242 = vmatprep.subr.mxu1 %v3884_v50 }
 0xa63   :  { %v4047_v48 = vld [vmem:[#allocation2 + $0x2b] sm:$0xff]  ;;  %8190 = vmatprep.mubr.msk.f32.mxu0 %vm49_vm0, %v3892_v36  ;;  %v4048_v59 = vld [vmem:[#allocation2 + $0x33] sm:$0xff]  ;;  %v4049_v37 = vld [vmem:[#allocation2 + $0x3b] sm:$0xff]  ;;  %8243 = vmatpush3.msra.mxu1 %v3884_v50 }
 0xa64   :  { %8210 = vmatprep.mubr.msk.f32.mxu1 %vm49_vm0, %v4047_v48  ;;  %8191 = vmatmul.mubr.msk.f32.gmra.mxu0 %vm49_vm0, %v3893_v13  ;;  %v3894_v10 = vld [vmem:[#allocation2 + $0x39] sm:$0xff]  ;;  %v3895_v19 = vld [vmem:[#allocation2 + $0x41] sm:$0xff]  ;;  %v4189_v34 = vld [vmem:[#allocation2 + $0x2c] sm:$0xff] }
 0xa65   :  { %8211 = vmatmul.mubr.msk.f32.gmra.mxu1 %vm49_vm0, %v4048_v59  ;;  %8193 = vmatprep.mubr.msk.f32.mxu0 %vm49_vm0, %v3894_v10  ;;  %v4050_v43 = vld [vmem:[#allocation2 + $0x43] sm:$0xff]  ;;  %v4190_v42 = vld [vmem:[#allocation2 + $0x34] sm:$0xff] }
 0xa66   :  { %8213 = vmatprep.mubr.msk.f32.mxu1 %vm49_vm0, %v4049_v37  ;;  %v3879_v44 = vld [vmem:[#allocation2 + $0x28] sm:$0xff]  ;;  %v3880_v52 = vld [vmem:[#allocation2 + $0x30] sm:$0xff]  ;;  %v4191_v33 = vld [vmem:[#allocation2 + $0x3c] sm:$0xff] }
 0xa67   :  { %v3881_v63 = vld [vmem:[#allocation2 + $0x38] sm:$0xff]  ;;  %v4192_v32 = vld [vmem:[#allocation2 + $0x44] sm:$0xff] }
 0xa68   :  { %8194 = vmatmul.mubr.msk.f32.gmra.mxu0 %vm49_vm0, %v3895_v19  ;;  %v3882_v25 = vld [vmem:[#allocation2 + $0x40] sm:$0xff]  ;;  %v4034_v15 = vld [vmem:[#allocation2 + $0x2a] sm:$0xff]  ;;  %v4035_v16 = vld [vmem:[#allocation2 + $0x32] sm:$0xff] }
 0xa69   :  { %8214 = vmatmul.mubr.msk.f32.gmra.mxu1 %vm49_vm0, %v4050_v43  ;;  %8224 = vmatprep.mubr.msk.f32.mxu0 %vm49_vm0, %v4185_v45  ;;  %v4036_v27 = vld [vmem:[#allocation2 + $0x3a] sm:$0xff]  ;;  %v4037_v12 = vld [vmem:[#allocation2 + $0x42] sm:$0xff] }
 0xa6a   :  { %8244 = vmatprep.mubr.msk.f32.mxu1 %vm49_vm0, %v3875_v54 }
 0xa6c   :  { %8225 = vmatmul.mubr.msk.f32.vlgmr.msra.gmra.mxu0 %vm49_vm0, %v4186_v6 }
 0xa6d   :  { %8245 = vmatmul.mubr.msk.f32.vlgmr.msra.gmra.mxu1 %vm49_vm0, %v3876_v17  ;;  %8227 = vmatprep.mubr.msk.f32.mxu0 %vm49_vm0, %v4187_v14 }
 0xa6e   :  { %8247 = vmatprep.mubr.msk.f32.mxu1 %vm49_vm0, %v3877_v8  ;;  %8257 = vmatpush3.msra.mxu0 %v4042_v40 }
 0xa6f   :  { %8258 = vmatprep.subr.mxu0 %v4041_v28 }
 0xa70   :  { %8228 = vmatmul.mubr.msk.f32.gmra.mxu0 %vm49_vm0, %v4188_v39 }
 0xa71   :  { %8248 = vmatmul.mubr.msk.f32.gmra.mxu1 %vm49_vm0, %v3878_v56  ;;  %8230 = vmatprep.mubr.msk.f32.mxu0 %vm49_vm0, %v4189_v34 }
 0xa72   :  { %8250 = vmatprep.mubr.msk.f32.mxu1 %vm49_vm0, %v3879_v44  ;;  %8259 = vmatpush3.msra.mxu0 %v4041_v28 }
 0xa73   :  { %8260 = vmatprep.subr.mxu0 %v4040_v21 }
 0xa74   :  { %8231 = vmatmul.mubr.msk.f32.gmra.mxu0 %vm49_vm0, %v4190_v42 }
 0xa75   :  { %8251 = vmatmul.mubr.msk.f32.gmra.mxu1 %vm49_vm0, %v3880_v52  ;;  %8233 = vmatprep.mubr.msk.f32.mxu0 %vm49_vm0, %v4191_v33 }
 0xa76   :  { %8253 = vmatprep.mubr.msk.f32.mxu1 %vm49_vm0, %v3881_v63  ;;  %8261 = vmatpush3.msra.mxu0 %v4040_v21  ;;  %v7210_v21 = vld [vmem:[%s10780_s2 + $0x4] ss:$0 sm:$0xff] }
 0xa77   :  { %8262 = vmatprep.subr.mxu0 %v4039_v4 }
 0xa78   :  { %8234 = vmatmul.mubr.msk.f32.gmra.mxu0 %vm49_vm0, %v4192_v32 }
 0xa79   :  { %8254 = vmatmul.mubr.msk.f32.gmra.mxu1 %vm49_vm0, %v3882_v25  ;;  %8263 = vmatpush3.msra.mxu0 %v4039_v4 }
 0xa7a   :  { %8264 = vmatprep.mubr.msk.f32.mxu0 %vm49_vm0, %v4030_v53  ;;  %4931 = vmatprep.mubr.f32.mxu1 %v8715_v0 }
 0xa7c   :  { %8265 = vmatmul.mubr.msk.f32.vlgmr.msra.gmra.mxu0 %vm49_vm0, %v4031_v55 }
 0xa7d   :  { %8267 = vmatprep.mubr.msk.f32.mxu0 %vm49_vm0, %v4032_v20 }
 0xa80   :  { %8268 = vmatmul.mubr.msk.f32.gmra.mxu0 %vm49_vm0, %v4033_v31 }
 0xa81   :  { %8270 = vmatprep.mubr.msk.f32.mxu0 %vm49_vm0, %v4034_v15 }
 0xa84   :  { %8271 = vmatmul.mubr.msk.f32.gmra.mxu0 %vm49_vm0, %v4035_v16 }
 0xa85   :  { %8273 = vmatprep.mubr.msk.f32.mxu0 %vm49_vm0, %v4036_v27 }
 0xa88   :  { %8274 = vmatmul.mubr.msk.f32.gmra.mxu0 %vm49_vm0, %v4037_v12 }
 0xb13   :  { %v8186_v58 = vpop.f32.mrf.mxu0 }
 0xb15   :  { %v3991_v11 = vpop.f32.mrf.mxu0 }
 0xb1c   :  { %v8206_v41 = vpop.f32.mrf.mxu1  ;;  %v8189_v18 = vpop.f32.mrf.mxu0 }
 0xb1e   :  { %v4146_v38 = vpop.f32.mrf.mxu1  ;;  %v4001_v23 = vpop.f32.mrf.mxu0 }
 0xb20   :  { %v8209_v61 = vpop.f32.mrf.mxu1 }
 0xb22   :  { %v4156_v57 = vpop.f32.mrf.mxu1 }
 0xb24   :  { %v8192_v2 = vpop.f32.mrf.mxu0 }
 0xb25   :  { %v8212_v40 = vpop.f32.mrf.mxu1 }
 0xb26   :  { %v4011_v35 = vpop.f32.mrf.mxu0 }
 0xb27   :  { %v4166_v7 = vpop.f32.mrf.mxu1 }
 0xb28   :  { %v8195_v30 = vpop.f32.mrf.mxu0 }
 0xb29   :  { %v8215_v60 = vpop.f32.mrf.mxu1 }
 0xb2a   :  { %v4021_v29 = vpop.f32.mrf.mxu0 }
 0xb2b   :  { %v9652_v47 = vpop.f32.mrf.mxu1 }
 0xb2c   :  { %v8226_v1 = vpop.f32.mrf.mxu0 }
 0xb2d   :  { %v8246_v36 = vpop.f32.mrf.mxu1 }
 0xb2e   :  { %v4288_v48 = vpop.f32.mrf.mxu0  ;;  %v4423_v14 = vadd.f32 %v8246_v36, %v8186_v58 }
 0xb2f   :  { %v4417_v13 = vpop.f32.mrf.mxu1 }
 0xb30   :  { %v8229_v59 = vpop.f32.mrf.mxu0  ;;  %v4418_v39 = vadd.f32 %v4417_v13, %v3991_v11 }
 0xb31   :  { %v8249_v10 = vpop.f32.mrf.mxu1 }
 0xb32   :  { %v4298_v50 = vpop.f32.mrf.mxu0  ;;  %v4433_v52 = vadd.f32 %v8249_v10, %v8189_v18 }
 0xb33   :  { %v4427_v43 = vpop.f32.mrf.mxu1 }
 0xb34   :  { %v8232_v37 = vpop.f32.mrf.mxu0  ;;  %v4428_v32 = vadd.f32 %v4427_v43, %v4001_v23 }
 0xb35   :  { %v8252_v6 = vpop.f32.mrf.mxu1 }
 0xb36   :  { %v4308_v19 = vpop.f32.mrf.mxu0  ;;  %v4443_v11 = vadd.f32 %v8252_v6, %v8192_v2 }
 0xb37   :  { %v4437_v56 = vpop.f32.mrf.mxu1 }
 0xb38   :  { %v8235_v45 = vpop.f32.mrf.mxu0 }
 0xb39   :  { %v8255_v53 = vpop.f32.mrf.mxu1 }
 0xb3a   :  { %v9654_v54 = vpop.f32.mrf.mxu0  ;;  %v4453_v43 = vadd.f32 %v8255_v53, %v8195_v30 }
 0xb3c   :  { %v8266_v17 = vpop.f32.mrf.mxu0 }
 0xb3d   :  { %v4552_v8 = vadd.f32 %v8266_v17, %v8206_v41 }
 0xb3e   :  { %v4546_v28 = vpop.f32.mrf.mxu0 }
 0xb3f   :  { %v4586_v34 = vadd.f32 %v4552_v8, %v4423_v14  ;;  %v4547_v44 = vadd.f32 %v4546_v28, %v4146_v38  ;;  %v4438_v38 = vadd.f32 %v4437_v56, %v4011_v35 }
 0xb40   :  { %v8269_v42 = vpop.f32.mrf.mxu0 }
 0xb41   :  { %v4594_v33 = vadd.f32 %v8226_v1, %v4586_v34  ;;  %v4585_v63 = vadd.f32 %v4547_v44, %v4418_v39  ;;  %v4562_v4 = vadd.f32 %v8269_v42, %v8209_v61  ;;  %v4447_v1 = vpop.f32.mrf.mxu1 }
 0xb42   :  { %v4556_v25 = vpop.f32.mrf.mxu0  ;;  %v4448_v35 = vadd.f32 %v4447_v1, %v4021_v29 }
 0xb43   :  { %v4610_v55 = vadd.f32 %v7210_v21, %v4594_v33  ;;  %v4593_v20 = vadd.f32 %v4585_v63, %v4288_v48  ;;  %v4588_v31 = vadd.f32 %v4562_v4, %v4433_v52  ;;  %v4557_v15 = vadd.f32 %v4556_v25, %v4156_v57 }
 0xb44   :  { %v8272_v16 = vpop.f32.mrf.mxu0 }
 0xb45   :  { %v9659_v27 = vmax.f32 %v4610_v55, 0.0  ;;  %v4609_v12 = vadd.f32 %v7210_v21, %v4593_v20  ;;  %v4596_v58 = vadd.f32 %v8229_v59, %v4588_v31  ;;  %v4587_v41 = vadd.f32 %v4557_v15, %v4428_v32 }
 0xb46   :  { %v4572_v36 = vadd.f32 %v8272_v16, %v8212_v40  ;;  %v4566_v18 = vpop.f32.mrf.mxu0 }
 0xb47   :  { %v9661_v13 = vmax.f32 %v4609_v12, 0.0  ;;  %v4612_v61 = vadd.f32 %v7210_v21, %v4596_v58  ;;  %v4595_v23 = vadd.f32 %v4587_v41, %v4298_v50  ;;  %v4567_v10 = vadd.f32 %v4566_v18, %v4166_v7 }
 0xb48   :  { %v4590_v48 = vadd.f32 %v4572_v36, %v4443_v11  ;;  %v8275_v17 = vpop.f32.mrf.mxu0  ;;  %v4626_v57 = vmul.f32 %v9659_v27, %v9659_v27 }
 0xb49   :  { %v9665_v14 = vmax.f32 %v4612_v61, 0.0  ;;  %v4611_v59 = vadd.f32 %v7210_v21, %v4595_v23  ;;  %v4589_v8 = vadd.f32 %v4567_v10, %v4438_v38  ;;  %v4582_v2 = vadd.f32 %v8275_v17, %v8215_v60 }
 0xb4a   :  { %v4598_v40 = vadd.f32 %v8232_v37, %v4590_v48  ;;  %4643 = vrot.lane.b32.xlu0 %v4626_v57, %s8716_s16  ;;  %v4576_v6 = vpop.f32.mrf.mxu0  ;;  %v4625_v50 = vmul.f32 %v9661_v13, %v9661_v13 }
 0xb4b   :  { %v9670_v7 = vmax.f32 %v4611_v59, 0.0  ;;  %v4597_v30 = vadd.f32 %v4589_v8, %v4308_v19  ;;  %v4592_v28 = vadd.f32 %v4582_v2, %v4453_v43  ;;  %v4577_v39 = vadd.f32 %v4576_v6, %v9652_v47 }
 0xb4c   :  { %v4614_v56 = vadd.f32 %v7210_v21, %v4598_v40  ;;  %4641 = vrot.lane.b32.xlu1 %v4625_v50, %s8716_s16  ;;  %v4628_v60 = vmul.f32 %v9665_v14, %v9665_v14 }
 0xb4d   :  { %v4613_v29 = vadd.f32 %v7210_v21, %v4597_v30  ;;  %v4600_v37 = vadd.f32 %v8235_v45, %v4592_v28  ;;  %v4591_v34 = vadd.f32 %v4577_v39, %v4448_v35  ;;  %v4627_v44 = vmul.f32 %v9670_v7, %v9670_v7 }
 0xb4e   :  { %v9678_v42 = vmax.f32 %v4614_v56, 0.0  ;;  %4647 = vrot.lane.b32.xlu0 %v4628_v60, %s8716_s16 }
 0xb4f   :  { %v9681_v19 = vmax.f32 %v4613_v29, 0.0  ;;  %v4616_v52 = vadd.f32 %v7210_v21, %v4600_v37  ;;  %v4599_v47 = vadd.f32 %v4591_v34, %v9654_v54 }
 0xb50   :  { %4645 = vrot.lane.b32.xlu1 %v4627_v44, %s8716_s16  ;;  %v4630_v33 = vmul.f32 %v9678_v42, %v9678_v42 }
 0xb51   :  { %v9687_v63 = vmax.f32 %v4616_v52, 0.0  ;;  %v4615_v45 = vadd.f32 %v7210_v21, %v4599_v47  ;;  %v4629_v4 = vmul.f32 %v9681_v19, %v9681_v19 }
 0xb52   :  { %4651 = vrot.lane.b32.xlu0 %v4630_v33, %s8716_s16 }
 0xb53   :  { %v9692_v32 = vmax.f32 %v4615_v45, 0.0  ;;  %v4632_v25 = vmul.f32 %v9687_v63, %v9687_v63 }
 0xb54   :  { %4649 = vrot.lane.b32.xlu1 %v4629_v4, %s8716_s16 }
 0xb55   :  { %v4631_v54 = vmul.f32 %v9692_v32, %v9692_v32 }
 0xb56   :  { %4655 = vrot.lane.b32.xlu0 %v4632_v25, %s8716_s16  ;;  %v7211_v25 = vld [vmem:[%s10781_s3 + $0x80] sm:$0xff] }
 0xb58   :  { %4653 = vrot.lane.b32.xlu1 %v4631_v54, %s8716_s16 }
 0xbbc   :  { %v4644_v21 = vpop.permute.xlu0 %4643 }
 0xbbd   :  { %v4666_v55 = vsel %vm49_vm0, %v9659_v27, %v4644_v21 }
 0xbbe   :  { %v4642_v53 = vpop.permute.xlu1 %4641  ;;  %v4674_v16 = vsel %vm874_vm3, %v4666_v55, 0.0  ;;  %v7215_v55 = vld [vmem:[%s10782_s4 + $0x80] sm:$0xff] }
 0xbbf   :  { %v4665_v20 = vsel %vm49_vm0, %v9661_v13, %v4642_v53 }
 0xbc0   :  { %v4673_v31 = vsel %vm874_vm3, %v4665_v20, 0.0  ;;  %v4648_v15 = vpop.permute.xlu0 %4647  ;;  %v7212_v20 = vld [vmem:[%s10781_s3 + $0x88] sm:$0xff] }
 0xbc1   :  { %v4675_v58 = vadd.f32 %v4674_v16, %v4673_v31  ;;  %v4668_v41 = vsel %vm49_vm0, %v9665_v14, %v4648_v15  ;;  %v7213_v31 = vld [vmem:[%s10781_s3 + $0x90] sm:$0xff]  ;;  %v4830_v15 = vld [vmem:[%s10783_s5 + $0x38] sm:$0xff] }
 0xbc2   :  { %v4646_v12 = vpop.permute.xlu1 %4645  ;;  %v4678_v1 = vsel %vm874_vm3, %v4668_v41, 0.0  ;;  %v4829_v16 = vld [vmem:[%s10783_s5 + $0x30] sm:$0xff]  ;;  %4891 = vmatprep.subr.mxu1 %v4830_v15 }
 0xbc3   :  { %v4667_v11 = vsel %vm49_vm0, %v9670_v7, %v4646_v12  ;;  %v7214_v12 = vld [vmem:[%s10781_s3 + $0x98] sm:$0xff]  ;;  %4892 = vmatpush1.msra.mxu1 %v4829_v16 }
 0xbc4   :  { %v4676_v38 = vsel %vm874_vm3, %v4667_v11, 0.0  ;;  %v4652_v36 = vpop.permute.xlu0 %4651 }
 0xbc5   :  { %v4677_v18 = vadd.f32 %v4676_v38, %v4675_v58  ;;  %v4670_v10 = vsel %vm49_vm0, %v9678_v42, %v4652_v36 }
 0xbc6   :  { %v4650_v61 = vpop.permute.xlu1 %4649  ;;  %v4687_v59 = vsel %vm874_vm3, %v4670_v10, 0.0  ;;  %v4825_v10 = vld [vmem:[%s10783_s5 + $0x10] sm:$0xff] }
 0xbc7   :  { %v4679_v23 = vadd.f32 %v4678_v1, %v4677_v18  ;;  %v4669_v43 = vsel %vm49_vm0, %v9681_v19, %v4650_v61  ;;  %v4828_v1 = vld [vmem:[%s10783_s5 + $0x28] sm:$0xff]  ;;  %v4827_v61 = vld [vmem:[%s10783_s5 + $0x20] sm:$0xff] }
 0xbc8   :  { %v4686_v48 = vsel %vm874_vm3, %v4669_v43, 0.0  ;;  %v4656_v17 = vpop.permute.xlu0 %4655  ;;  %4893 = vmatprep.subr.mxu1 %v4828_v1  ;;  %v4824_v43 = vld [vmem:[%s10783_s5 + $0x8] sm:$0xff] }
 0xbc9   :  { %v4680_v57 = vrot.slane %v4679_v23, 4  ;;  %v4688_v35 = vadd.f32 %v4687_v59, %v4686_v48  ;;  %v4672_v40 = vsel %vm49_vm0, %v9687_v63, %v4656_v17  ;;  %4894 = vmatpush1.msra.mxu1 %v4827_v61  ;;  %v4823_v48 = vld [vmem:[%s10783_s5] sm:$0xff]  ;;  %v7216_v59 = vld [vmem:[%s10782_s4 + $0x88] sm:$0xff] }
 0xbca   :  { %v4654_v8 = vpop.permute.xlu1 %4653  ;;  %v4691_v39 = vsel %vm874_vm3, %v4672_v40, 0.0  ;;  %v7218_v40 = vld [vmem:[%s10782_s4 + $0x98] sm:$0xff] }
 0xbcb   :  { %v4681_v2 = vadd.f32 %v4680_v57, %v4679_v23  ;;  %v4671_v6 = vsel %vm49_vm0, %v9692_v32, %v4654_v8  ;;  %v4826_v23 = vld [vmem:[%s10783_s5 + $0x18] sm:$0xff] }
 0xbcc   :  { %v4689_v50 = vsel %vm874_vm3, %v4671_v6, 0.0  ;;  %4895 = vmatprep.subr.mxu1 %v4826_v23 }
 0xbcd   :  { %v4682_v30 = vrot.slane %v4681_v2, 2  ;;  %v4690_v28 = vadd.f32 %v4689_v50, %v4688_v35  ;;  %4896 = vmatpush1.msra.mxu1 %v4825_v10 }
 0xbce   :  { %4897 = vmatprep.subr.mxu1 %v4824_v43 }
 0xbcf   :  { %v4683_v56 = vadd.f32 %v4682_v30, %v4681_v2  ;;  %v4692_v60 = vadd.f32 %v4691_v39, %v4690_v28  ;;  %4898 = vmatpush1.msra.mxu1 %v4823_v48  ;;  %v7217_v2 = vld [vmem:[%s10782_s4 + $0x90] sm:$0xff] }
 0xbd1   :  { %v4684_v29 = vrot.slane %v4683_v56, 1  ;;  %v4693_v37 = vrot.slane %v4692_v60, 4 }
 0xbd3   :  { %v4685_v34 = vadd.f32 %v4684_v29, %v4683_v56  ;;  %v4694_v44 = vadd.f32 %v4693_v37, %v4692_v60 }
 0xbd5   :  { %v9725_v52 = vmul.f32 0.03125, %v4685_v34  ;;  %v4695_v47 = vrot.slane %v4694_v44, 2 }
 0xbd7   :  { %v4696_v33 = vadd.f32 %v4695_v47, %v4694_v44  ;;  %v4701_v45 = vmul.f32 %v9725_v52, %v9725_v52  ;;  %v4713_v28 = vsub.f32 %v9661_v13, %v9725_v52  ;;  %v4714_v34 = vsub.f32 %v9659_v27, %v9725_v52 }
 0xbd9   :  { %v4697_v4 = vrot.slane %v4696_v33, 1  ;;  %4705 = vrot.lane.b32.xlu1 %v4701_v45, %s8716_s16  ;;  %v4715_v45 = vsub.f32 %v9670_v7, %v9725_v52 }
 0xbdb   :  { %v4698_v54 = vadd.f32 %v4697_v4, %v4696_v33 }
 0xbdd   :  { %v9733_v21 = vmul.f32 0.03125, %v4698_v54  ;;  %4756 = vperm.xlu1 %8541, %v7211_v25  }
 0xbdf   :  { %v4702_v53 = vmul.f32 %v9733_v21, %v9733_v21  ;;  %v4718_v7 = vsub.f32 %v9678_v42, %v9733_v21  ;;  %v4719_v42 = vsub.f32 %v9692_v32, %v9733_v21  ;;  %v4720_v1 = vsub.f32 %v9687_v63, %v9733_v21 }
 0xbe1   :  { %4707 = vrot.lane.b32.xlu0 %v4702_v53, %s8716_s16  ;;  %v4717_v53 = vsub.f32 %v9681_v19, %v9733_v21 }
 0xbe5   :  { %4789 = vperm.xlu0 %8540, %v7215_v55  }
 0xbe9   :  { %4761 = vperm.xlu0 %8540, %v7212_v20  }
 0xbed   :  { %4766 = vperm.xlu0 %8540, %v7213_v31  }
 0xbf1   :  { %4771 = vperm.xlu0 %8540, %v7214_v12  }
 0xc4b   :  { %v4706_v58 = vpop.permute.xlu1 %4705 }
 0xc4c   :  { %v4711_v41 = vsub.f32 %v9725_v52, %v4706_v58 }
 0xc4e   :  { %v4721_v11 = vadd.f32 1e-05, %v4711_v41 }
 0xc50   :  { %8558 = vrsqrt.f32 %v4721_v11 }
 0xc53   :  { %v4708_v38 = vpop.permute.xlu0 %4707 }
 0xc54   :  { %v4712_v36 = vsub.f32 %v9733_v21, %v4708_v38 }
 0xc56   :  { %v4722_v18 = vadd.f32 1e-05, %v4712_v36 }
 0xc58   :  { %8560 = vrsqrt.f32 %v4722_v18  ;;  %v4757_v50 = vpop.permute.xlu1 %4756 }
 0xc5d   :  { %v8559_v17 = vpop.eup %8558 }
 0xc5e   :  { %v4728_v57 = vrot.slane %v8559_v17, %v8975_v49 }
 0xc60   :  { %4735 = vrot.lane.b32.xlu1 %v4728_v57, %s8718_s30  ;;  %v4790_v6 = vpop.permute.xlu0 %4789 }
 0xc64   :  { %4794 = vperm.xlu1 %8541, %v7216_v59   ;;  %v4762_v30 = vpop.permute.xlu0 %4761 }
 0xc65   :  { %v8561_v8 = vpop.eup %8560 }
 0xc66   :  { %v4732_v35 = vrot.slane %v8561_v8, %v8975_v49 }
 0xc68   :  { %4737 = vrot.lane.b32.xlu0 %v4732_v35, %s8718_s30  ;;  %4799 = vperm.xlu1 %8541, %v7217_v2   ;;  %v4767_v60 = vpop.permute.xlu0 %4766 }
 0xc6c   :  { %4804 = vperm.xlu1 %8541, %v7218_v40   ;;  %v4772_v33 = vpop.permute.xlu0 %4771 }
 0xcd2   :  { %v4736_v39 = vpop.permute.xlu1 %4735 }
 0xcd3   :  { %v4741_v56 = vmul.f32 %v4736_v39, %v4713_v28  ;;  %v4742_v47 = vmul.f32 %v4736_v39, %v4714_v34  ;;  %v4743_v4 = vmul.f32 %v4736_v39, %v4715_v45 }
 0xcd5   :  { %v4774_v29 = vmul.f32 %v4757_v50, %v4741_v56  ;;  %v4775_v13 = vmul.f32 %v4762_v30, %v4742_v47  ;;  %v4776_v31 = vmul.f32 %v4767_v60, %v4743_v4 }
 0xcd7   :  { %v4807_v37 = vadd.f32 %v4790_v6, %v4774_v29 }
 0xcd9   :  { %v4815_v44 = vadd.f32 %v4807_v37, %v9382_v62  ;;  %v4716_v62 = vsub.f32 %v9665_v14, %v9725_v52 }
 0xcda   :  { %v4738_v25 = vpop.permute.xlu0 %4737 }
 0xcdb   :  { %7219 = vmatmul.mubr.msk.f32.vlgmr.msra.gmra.mxu1 %vm49_vm0, %v4815_v44  ;;  %v4745_v27 = vmul.f32 %v4738_v25, %v4717_v53  ;;  %v4744_v15 = vmul.f32 %v4736_v39, %v4716_v62  ;;  %v4746_v19 = vmul.f32 %v4738_v25, %v4718_v7  ;;  %v4747_v18 = vmul.f32 %v4738_v25, %v4719_v42 }
 0xcdc   :  { %4937 = vmatprep.mubr.f32.mxu1 %v8715_v0  ;;  %v4748_v10 = vmul.f32 %v4738_v25, %v4720_v1 }
 0xcdd   :  { %v4778_v58 = vmul.f32 %v4757_v50, %v4745_v27  ;;  %v4777_v11 = vmul.f32 %v4772_v33, %v4744_v15  ;;  %v4780_v23 = vmul.f32 %v4767_v60, %v4747_v18 }
 0xcde   :  { %v4781_v43 = vmul.f32 %v4772_v33, %v4748_v10 }
 0xcdf   :  { %v4795_v54 = vpop.permute.xlu1 %4794  ;;  %v4811_v36 = vadd.f32 %v4790_v6, %v4778_v58 }
 0xce0   :  { %v4808_v55 = vadd.f32 %v4795_v54, %v4775_v13 }
 0xce1   :  { %v4819_v61 = vadd.f32 %v4811_v36, %v9413_v26 }
 0xce2   :  { %v4816_v20 = vadd.f32 %v4808_v55, %v9385_v3  ;;  %v4779_v3 = vmul.f32 %v4762_v30, %v4746_v19 }
 0xce3   :  { %v4800_v16 = vpop.permute.xlu1 %4799 }
 0xce4   :  { %v4809_v12 = vadd.f32 %v4800_v16, %v4776_v31  ;;  %7220 = vmatmul.mubr.msk.f32.gmra.mxu1 %vm49_vm0, %v4816_v20  ;;  %v4813_v32 = vadd.f32 %v4800_v16, %v4780_v23 }
 0xce5   :  { %4943 = vmatprep.mubr.f32.mxu1 %v8715_v0 }
 0xce6   :  { %v4817_v41 = vadd.f32 %v4809_v12, %v9399_v9  ;;  %v4812_v9 = vadd.f32 %v4795_v54, %v4779_v3  ;;  %v4821_v48 = vadd.f32 %v4813_v32, %v9419_v22 }
 0xce7   :  { %v4805_v14 = vpop.permute.xlu1 %4804 }
 0xce8   :  { %v4810_v52 = vadd.f32 %v4805_v14, %v4777_v11  ;;  %7221 = vmatmul.mubr.msk.f32.gmra.mxu1 %vm49_vm0, %v4817_v41  ;;  %v4814_v17 = vadd.f32 %v4805_v14, %v4781_v43 }
 0xce9   :  { %4949 = vmatprep.mubr.f32.mxu1 %v8715_v0 }
 0xcea   :  { %v4818_v38 = vadd.f32 %v4810_v52, %v9388_v24  ;;  %v4820_v24 = vadd.f32 %v4812_v9, %v9416_v51  ;;  %v4822_v26 = vadd.f32 %v4814_v17, %v9422_v5  ;;  %v4831_v51 = vld [vmem:[%s10784_s6] sm:$0x3]  ;;  %s8719_s6 = smov 64  }
 0xceb   :  { %v4836_v63 = vrot.slane %v4831_v51, %v8975_v49  ;;  %v4839_v49 = vsub.s32 1, %v8972_v46 }
 0xcec   :  { %7222 = vmatmul.mubr.msk.f32.gmra.mxu1 %vm49_vm0, %v4818_v38 }
 0xced   :  { %4955 = vmatprep.mubr.f32.mxu1 %v8715_v0  ;;  %v4840_v29 = vrot.slane %v4831_v51, %v4839_v49  ;;  %v10044_v49 = vld [vmem:[%s10787_s9 + $0x28] sm:$0xff] }
 0xcf0   :  { %7223 = vmatmul.mubr.msk.f32.gmra.mxu1 %vm49_vm0, %v4819_v61 }
 0xcf1   :  { %4961 = vmatprep.mubr.f32.mxu1 %v8715_v0 }
 0xcf4   :  { %7224 = vmatmul.mubr.msk.f32.gmra.mxu1 %vm49_vm0, %v4820_v24 }
 0xcf5   :  { %4967 = vmatprep.mubr.f32.mxu1 %v8715_v0 }
 0xcf8   :  { %7225 = vmatmul.mubr.msk.f32.gmra.mxu1 %vm49_vm0, %v4821_v48 }
 0xcf9   :  { %4973 = vmatprep.mubr.f32.mxu1 %v8715_v0 }
 0xcfc   :  { %7226 = vmatmul.mubr.msk.f32.gmra.mxu1 %vm49_vm0, %v4822_v26 }
 0xd9b   :  { %v4933_v21 = vpop.f32.mrf.mxu1 }
 0xd9c   :  { %v9832_v57 = vadd.f32 %v4933_v21, %v4836_v63  ;;  %v10011_v21 = vld [vmem:[%s10787_s9 + $0x8] sm:$0xff] }
 0xd9d   :  { %v4935_v22 = vpop.f32.mrf.mxu1 }
 0xd9e   :  { %8292 = vmatprep.mubr.msk.f32.mxu0 %vm69_vm2, %v9832_v57  ;;  %v9895_v27 = vadd.f32 %v4935_v22, %v4840_v29 }
 0xda4   :  { %v4939_v59 = vpop.f32.mrf.mxu1 }
 0xda5   :  { %v9881_v53 = vadd.f32 %v4939_v59, %v4836_v63  ;;  %v10016_v59 = vld [vmem:[%s10787_s9] sm:$0xff] }
 0xda6   :  { %v4941_v8 = vpop.f32.mrf.mxu1 }
 0xda7   :  { %v9887_v62 = vadd.f32 %v4941_v8, %v4840_v29 }
 0xda8   :  { %v4945_v0 = vpop.f32.mrf.mxu1 }
 0xda9   :  { %v9856_v45 = vadd.f32 %v4945_v0, %v4836_v63 }
 0xdaa   :  { %v4947_v2 = vpop.f32.mrf.mxu1 }
 0xdab   :  { %v9883_v55 = vadd.f32 %v4947_v2, %v4840_v29  ;;  %v10024_v2 = vld [vmem:[%s10787_s9 + $0x18] sm:$0xff] }
 0xdac   :  { %v4951_v5 = vpop.f32.mrf.mxu1 }
 0xdad   :  { %v9867_v4 = vadd.f32 %v4951_v5, %v4836_v63 }
 0xdae   :  { %v4953_v35 = vpop.f32.mrf.mxu1 }
 0xdaf   :  { %v9873_v54 = vadd.f32 %v4953_v35, %v4840_v29 }
 0xdb0   :  { %v4957_v40 = vpop.f32.mrf.mxu1 }
 0xdb1   :  { %v9841_v37 = vadd.f32 %v4957_v40, %v4836_v63 }
 0xdb2   :  { %v4959_v6 = vpop.f32.mrf.mxu1 }
 0xdb3   :  { %v9869_v25 = vadd.f32 %v4959_v6, %v4840_v29  ;;  %v10034_v6 = vld [vmem:[%s10787_s9 + $0x10] sm:$0xff] }
 0xdb4   :  { %v4963_v50 = vpop.f32.mrf.mxu1 }
 0xdb5   :  { %v9851_v46 = vadd.f32 %v4963_v50, %v4836_v63 }
 0xdb6   :  { %v4965_v30 = vpop.f32.mrf.mxu1 }
 0xdb7   :  { %v9859_v13 = vadd.f32 %v4965_v30, %v4840_v29 }
 0xdb8   :  { %v4969_v28 = vpop.f32.mrf.mxu1 }
 0xdb9   :  { %v9837_v39 = vadd.f32 %v4969_v28, %v4836_v63 }
 0xdba   :  { %v4971_v56 = vpop.f32.mrf.mxu1 }
 0xdbb   :  { %5008 = vrot.lane.b32.xlu0 %v9837_v39, %s8719_s6  ;;  %v9853_v33 = vadd.f32 %v4971_v56, %v4840_v29 }
 0xdbc   :  { %v4975_v60 = vpop.f32.mrf.mxu1 }
 0xdbd   :  { %v9843_v34 = vadd.f32 %v4975_v60, %v4836_v63 }
 0xdbe   :  { %v4977_v44 = vpop.f32.mrf.mxu1 }
 0xdbf   :  { %v9845_v47 = vadd.f32 %v4977_v44, %v4840_v29  ;;  %5010 = vrot.lane.b32.xlu1 %v9843_v34, %s8719_s6  ;;  %5004 = vrot.lane.b32.xlu0 %v9841_v37, %s8719_s6  ;;  %v10052_v29 = vld [vmem:[%s10787_s9 + $0x20] sm:$0xff] }
 0xdc1   :  { %8304 = vmatprep.subr.mxu1 %v9845_v47 }
 0xdc2   :  { %8305 = vmatpush3.msra.mxu1 %v9845_v47 }
 0xdc3   :  { %8306 = vmatprep.subr.mxu1 %v9853_v33  ;;  %5006 = vrot.lane.b32.xlu1 %v9851_v46, %s8719_s6 }
 0xdc4   :  { %5000 = vrot.lane.b32.xlu0 %v9856_v45, %s8719_s6  ;;  %8307 = vmatpush3.msra.mxu1 %v9853_v33 }
 0xdc5   :  { %8308 = vmatprep.subr.mxu1 %v9859_v13 }
 0xdc6   :  { %8309 = vmatpush3.msra.mxu1 %v9859_v13 }
 0xdc7   :  { %8310 = vmatprep.subr.mxu1 %v9869_v25  ;;  %5002 = vrot.lane.b32.xlu1 %v9867_v4, %s8719_s6 }
 0xdc8   :  { %4996 = vrot.lane.b32.xlu0 %v9832_v57, %s8719_s6  ;;  %8311 = vmatpush3.msra.mxu1 %v9869_v25 }
 0xdc9   :  { %8312 = vmatprep.subr.mxu1 %v9873_v54 }
 0xdca   :  { %8313 = vmatpush3.msra.mxu1 %v9873_v54 }
 0xdcb   :  { %8314 = vmatprep.subr.mxu1 %v9883_v55  ;;  %4998 = vrot.lane.b32.xlu1 %v9881_v53, %s8719_s6 }
 0xdcc   :  { %5418 = vrot.lane.b32.xlu0 %v9837_v39, %s8720_s18  ;;  %8315 = vmatpush3.msra.mxu1 %v9883_v55 }
 0xdcd   :  { %8316 = vmatprep.subr.mxu1 %v9887_v62 }
 0xdce   :  { %8317 = vmatpush3.msra.mxu1 %v9887_v62 }
 0xdcf   :  { %8318 = vmatprep.subr.mxu1 %v9895_v27  ;;  %5420 = vrot.lane.b32.xlu1 %v9843_v34, %s8720_s18 }
 0xdd0   :  { %5414 = vrot.lane.b32.xlu0 %v9841_v37, %s8720_s18  ;;  %8319 = vmatpush3.msra.mxu1 %v9895_v27 }
 0xdd3   :  { %5416 = vrot.lane.b32.xlu1 %v9851_v46, %s8720_s18 }
 0xdd4   :  { %5410 = vrot.lane.b32.xlu0 %v9856_v45, %s8720_s18 }
 0xdd7   :  { %5412 = vrot.lane.b32.xlu1 %v9867_v4, %s8720_s18 }
 0xdd8   :  { %5406 = vrot.lane.b32.xlu0 %v9832_v57, %s8720_s18 }
 0xddb   :  { %5408 = vrot.lane.b32.xlu1 %v9881_v53, %s8720_s18 }
 0xddc   :  { %5392 = vrot.lane.b32.xlu0 %v9881_v53, %s8721_s19 }
 0xddf   :  { %5390 = vrot.lane.b32.xlu1 %v9832_v57, %s8721_s19 }
 0xde0   :  { %5396 = vrot.lane.b32.xlu0 %v9867_v4, %s8721_s19 }
 0xde3   :  { %5394 = vrot.lane.b32.xlu1 %v9856_v45, %s8721_s19 }
 0xde4   :  { %5400 = vrot.lane.b32.xlu0 %v9851_v46, %s8721_s19 }
 0xde7   :  { %5398 = vrot.lane.b32.xlu1 %v9841_v37, %s8721_s19 }
 0xde8   :  { %5404 = vrot.lane.b32.xlu0 %v9843_v34, %s8721_s19 }
 0xdeb   :  { %5402 = vrot.lane.b32.xlu1 %v9837_v39, %s8721_s19 }
 0xdec   :  { %5647 = vrot.lane.b32.xlu0 %v9869_v25, %s8721_s19 }
 0xdef   :  { %5651 = vrot.lane.b32.xlu1 %v9853_v33, %s8721_s19 }
 0xdf0   :  { %5643 = vrot.lane.b32.xlu0 %v9883_v55, %s8721_s19 }
 0xdf3   :  { %5649 = vrot.lane.b32.xlu1 %v9859_v13, %s8721_s19 }
 0xdf4   :  { %5639 = vrot.lane.b32.xlu0 %v9895_v27, %s8721_s19 }
 0xdf7   :  { %5645 = vrot.lane.b32.xlu1 %v9873_v54, %s8721_s19 }
 0xdf8   :  { %5860 = vrot.lane.b32.xlu0 %v9837_v39, %s8716_s16 }
 0xdfb   :  { %5641 = vrot.lane.b32.xlu1 %v9887_v62, %s8721_s19 }
 0xdfc   :  { %5856 = vrot.lane.b32.xlu0 %v9841_v37, %s8716_s16 }
 0xdff   :  { %5858 = vrot.lane.b32.xlu1 %v9851_v46, %s8716_s16 }
 0xe00   :  { %5653 = vrot.lane.b32.xlu0 %v9845_v47, %s8721_s19 }
 0xe03   :  { %5854 = vrot.lane.b32.xlu1 %v9867_v4, %s8716_s16 }
 0xe07   :  { %5862 = vrot.lane.b32.xlu1 %v9843_v34, %s8716_s16 }
 0xe2d   :  { %v5009_v20 = vpop.permute.xlu0 %5008 }
 0xe31   :  { %v5011_v31 = vpop.permute.xlu1 %5010  ;;  %v5005_v15 = vpop.permute.xlu0 %5004 }
 0xe32   :  { %8276 = vmatprep.subr.msk.mxu0 %vm69_vm2, %v5011_v31 }
 0xe33   :  { %8277 = vmatpush3.xpose.msk.msra.mxu0 %vm69_vm2, %v5011_v31 }
 0xe34   :  { %8278 = vmatprep.subr.msk.mxu0 %vm69_vm2, %v5009_v20 }
 0xe35   :  { %v5007_v16 = vpop.permute.xlu1 %5006 }
 0xe36   :  { %v5001_v7 = vpop.permute.xlu0 %5000 }
 0xe37   :  { %8279 = vmatpush3.xpose.msk.msra.mxu0 %vm69_vm2, %v5009_v20 }
 0xe38   :  { %8280 = vmatprep.subr.msk.mxu0 %vm69_vm2, %v5007_v16 }
 0xe39   :  { %v5003_v58 = vpop.permute.xlu1 %5002 }
 0xe3a   :  { %v4997_v12 = vpop.permute.xlu0 %4996 }
 0xe3b   :  { %8281 = vmatpush3.xpose.msk.msra.mxu0 %vm69_vm2, %v5007_v16  ;;  %v10064_v16 = vld [vmem:[%s10787_s9 + $0x38] sm:$0xff] }
 0xe3c   :  { %8282 = vmatprep.subr.msk.mxu0 %vm69_vm2, %v5005_v15 }
 0xe3d   :  { %v4999_v41 = vpop.permute.xlu1 %4998 }
 0xe3e   :  { %v5419_v19 = vpop.permute.xlu0 %5418 }
 0xe3f   :  { %8283 = vmatpush3.xpose.msk.msra.mxu0 %vm69_vm2, %v5005_v15 }
 0xe40   :  { %8284 = vmatprep.subr.msk.mxu0 %vm69_vm2, %v5003_v58 }
 0xe41   :  { %v5421_v14 = vpop.permute.xlu1 %5420 }
 0xe42   :  { %v5415_v11 = vpop.permute.xlu0 %5414 }
 0xe43   :  { %8285 = vmatpush3.xpose.msk.msra.mxu0 %vm69_vm2, %v5003_v58  ;;  %v10072_v58 = vld [vmem:[%s10787_s9 + $0x30] sm:$0xff]  ;;  %s8722_s9 = smov 16  }
 0xe44   :  { %8286 = vmatprep.subr.msk.mxu0 %vm69_vm2, %v5001_v7 }
 0xe45   :  { %v5417_v42 = vpop.permute.xlu1 %5416 }
 0xe46   :  { %v5411_v52 = vpop.permute.xlu0 %5410 }
 0xe47   :  { %8287 = vmatpush3.xpose.msk.msra.mxu0 %vm69_vm2, %v5001_v7 }
 0xe48   :  { %8288 = vmatprep.subr.msk.mxu0 %vm69_vm2, %v4999_v41 }
 0xe49   :  { %v5413_v36 = vpop.permute.xlu1 %5412 }
 0xe4a   :  { %v5407_v3 = vpop.permute.xlu0 %5406 }
 0xe4b   :  { %8289 = vmatpush3.xpose.msk.msra.mxu0 %vm69_vm2, %v4999_v41 }
 0xe4c   :  { %8290 = vmatprep.subr.msk.mxu0 %vm69_vm2, %v4997_v12 }
 0xe4d   :  { %v5409_v1 = vpop.permute.xlu1 %5408 }
 0xe4e   :  { %v5393_v38 = vpop.permute.xlu0 %5392 }
 0xe4f   :  { %8291 = vmatpush3.xpose.msk.msra.mxu0 %vm69_vm2, %v4997_v12 }
 0xe50   :  { %8332 = vmatprep.subr.msk.mxu0 %vm69_vm2, %v5421_v14 }
 0xe51   :  { %v5391_v23 = vpop.permute.xlu1 %5390 }
 0xe52   :  { %v5397_v18 = vpop.permute.xlu0 %5396  ;;  %8293 = vmatmul.mubr.msk.f32.vlgmr.msra.gmra.mxu0 %vm69_vm2, %v9881_v53 }
 0xe53   :  { %8295 = vmatprep.mubr.msk.f32.mxu0 %vm69_vm2, %v9856_v45  ;;  %8333 = vmatpush3.xpose.msk.msra.mxu0 %vm69_vm2, %v5421_v14 }
 0xe54   :  { %8334 = vmatprep.subr.msk.mxu0 %vm69_vm2, %v5419_v19 }
 0xe55   :  { %v5395_v48 = vpop.permute.xlu1 %5394 }
 0xe56   :  { %v5401_v9 = vpop.permute.xlu0 %5400  ;;  %8296 = vmatmul.mubr.msk.f32.gmra.mxu0 %vm69_vm2, %v9867_v4 }
 0xe57   :  { %8298 = vmatprep.mubr.msk.f32.mxu0 %vm69_vm2, %v9841_v37  ;;  %8335 = vmatpush3.xpose.msk.msra.mxu0 %vm69_vm2, %v5419_v19 }
 0xe58   :  { %8336 = vmatprep.subr.msk.mxu0 %vm69_vm2, %v5417_v42 }
 0xe59   :  { %v5399_v51 = vpop.permute.xlu1 %5398 }
 0xe5a   :  { %v5405_v61 = vpop.permute.xlu0 %5404  ;;  %8299 = vmatmul.mubr.msk.f32.gmra.mxu0 %vm69_vm2, %v9851_v46 }
 0xe5b   :  { %8301 = vmatprep.mubr.msk.f32.mxu0 %vm69_vm2, %v9837_v39  ;;  %8337 = vmatpush3.xpose.msk.msra.mxu0 %vm69_vm2, %v5417_v42 }
 0xe5c   :  { %8338 = vmatprep.subr.msk.mxu0 %vm69_vm2, %v5415_v11 }
 0xe5d   :  { %v5403_v63 = vpop.permute.xlu1 %5402 }
 0xe5e   :  { %v9976_v10 = vpop.permute.xlu0 %5647  ;;  %8302 = vmatmul.mubr.msk.f32.gmra.mxu0 %vm69_vm2, %v9843_v34 }
 0xe5f   :  { %8339 = vmatpush3.xpose.msk.msra.mxu0 %vm69_vm2, %v5415_v11  ;;  %8348 = vmatprep.mubr.msk.f32.mxu0 %vm69_vm2, %v5391_v23 }
 0xe60   :  { %8340 = vmatprep.subr.msk.mxu0 %vm69_vm2, %v5413_v36 }
 0xe62   :  { %v9983_v24 = vpop.permute.xlu0 %5643 }
 0xe63   :  { %8341 = vmatpush3.xpose.msk.msra.mxu0 %vm69_vm2, %v5413_v36 }
 0xe64   :  { %8342 = vmatprep.subr.msk.mxu0 %vm69_vm2, %v5411_v52 }
 0xe66   :  { %v9987_v32 = vpop.permute.xlu0 %5639 }
 0xe67   :  { %8343 = vmatpush3.xpose.msk.msra.mxu0 %vm69_vm2, %v5411_v52 }
 0xe68   :  { %8344 = vmatprep.subr.msk.mxu0 %vm69_vm2, %v5409_v1 }
 0xe6a   :  { %v9991_v43 = vpop.permute.xlu0 %5860 }
 0xe6b   :  { %8345 = vmatpush3.xpose.msk.msra.mxu0 %vm69_vm2, %v5409_v1 }
 0xe6c   :  { %8346 = vmatprep.subr.msk.mxu0 %vm69_vm2, %v5407_v3 }
 0xe6e   :  { %v9995_v17 = vpop.permute.xlu0 %5856 }
 0xe6f   :  { %8347 = vmatpush3.xpose.msk.msra.mxu0 %vm69_vm2, %v5407_v3 }
 0xe72   :  { %v9998_v26 = vpop.permute.xlu0 %5653  ;;  %8349 = vmatmul.mubr.msk.f32.vlgmr.msra.gmra.mxu0 %vm69_vm2, %v5393_v38 }
 0xe73   :  { %8360 = vmatprep.subr.mxu1 %v9998_v26  ;;  %8351 = vmatprep.mubr.msk.f32.mxu0 %vm69_vm2, %v5395_v48 }
 0xe76   :  { %8352 = vmatmul.mubr.msk.f32.gmra.mxu0 %vm69_vm2, %v5397_v18 }
 0xe77   :  { %8354 = vmatprep.mubr.msk.f32.mxu0 %vm69_vm2, %v5399_v51 }
 0xe7a   :  { %8355 = vmatmul.mubr.msk.f32.gmra.mxu0 %vm69_vm2, %v5401_v9 }
 0xe7b   :  { %8357 = vmatprep.mubr.msk.f32.mxu0 %vm69_vm2, %v5403_v63 }
 0xe7e   :  { %8358 = vmatmul.mubr.msk.f32.gmra.mxu0 %vm69_vm2, %v5405_v61 }
 0xf12   :  { %v8294_v22 = vpop.f32.mrf.mxu0 }
 0xf13   :  { %v10019_v8 = vadd.f32 %v8294_v22, %v10011_v21 }
 0xf14   :  { %v5110_v0 = vpop.f32.mrf.mxu0 }
 0xf15   :  { %v10027_v5 = vadd.f32 %v5110_v0, %v10016_v59  ;;  %v5152_v35 = vsel %vm874_vm3, %v10019_v8, -inf }
 0xf16   :  { %5153 = vmax.xlane.f32.xlu0 %v5152_v35  ;;  %v8297_v40 = vpop.f32.mrf.mxu0 }
 0xf17   :  { %v10037_v50 = vadd.f32 %v8297_v40, %v10024_v2  ;;  %v5149_v30 = vsel %vm874_vm3, %v10027_v5, -inf }
 0xf18   :  { %v5120_v28 = vpop.f32.mrf.mxu0  ;;  %5150 = vmax.xlane.f32.xlu1 %v5149_v30 }
 0xf19   :  { %v10047_v56 = vadd.f32 %v5120_v28, %v10034_v6  ;;  %v5158_v31 = vsel %vm874_vm3, %v10037_v50, -inf }
 0xf1a   :  { %v8300_v60 = vpop.f32.mrf.mxu0 }
 0xf1b   :  { %v10055_v44 = vadd.f32 %v8300_v60, %v10044_v49  ;;  %v5155_v20 = vsel %vm874_vm3, %v10047_v56, -inf }
 0xf1c   :  { %v5130_v15 = vpop.f32.mrf.mxu0  ;;  %5156 = vmax.xlane.f32.xlu0 %v5155_v20  ;;  %5159 = vmax.xlane.f32.xlu1 %v5158_v31 }
 0xf1d   :  { %v10067_v7 = vadd.f32 %v5130_v15, %v10052_v29  ;;  %v5164_v11 = vsel %vm874_vm3, %v10055_v44, -inf }
 0xf1e   :  { %v8303_v12 = vpop.f32.mrf.mxu0 }
 0xf1f   :  { %v10075_v19 = vadd.f32 %v8303_v12, %v10064_v16  ;;  %v5161_v41 = vsel %vm874_vm3, %v10067_v7, -inf }
 0xf20   :  { %v5140_v14 = vpop.f32.mrf.mxu0  ;;  %5162 = vmax.xlane.f32.xlu0 %v5161_v41  ;;  %5165 = vmax.xlane.f32.xlu1 %v5164_v11 }
 0xf21   :  { %v10082_v52 = vadd.f32 %v5140_v14, %v10072_v58  ;;  %v5170_v42 = vsel %vm874_vm3, %v10075_v19, -inf }
 0xf23   :  { %v5167_v3 = vsel %vm874_vm3, %v10082_v52, -inf }
 0xf24   :  { %5168 = vmax.xlane.f32.xlu0 %v5167_v3  ;;  %5171 = vmax.xlane.f32.xlu1 %v5170_v42  ;;  %v10132_v3 = vpop.permute.xlu1 %5651 }
 0xf28   :  { %v10134_v42 = vpop.permute.xlu1 %5649 }
 0xf32   :  { %v8350_v38 = vpop.f32.mrf.mxu0 }
 0xf33   :  { %v10089_v36 = vadd.f32 %v8350_v38, %v10011_v21  ;;  %v10138_v38 = vpop.permute.xlu1 %5645 }
 0xf34   :  { %v5520_v18 = vpop.f32.mrf.mxu0 }
 0xf35   :  { %v10092_v9 = vadd.f32 %v5520_v18, %v10016_v59  ;;  %v5562_v1 = vsel %vm874_vm3, %v10089_v36, -inf }
 0xf36   :  { %5563 = vmax.xlane.f32.xlu1 %v5562_v1  ;;  %v8353_v23 = vpop.f32.mrf.mxu0 }
 0xf37   :  { %v5559_v61 = vsel %vm874_vm3, %v10092_v9, -inf  ;;  %v10103_v22 = vadd.f32 %v8353_v23, %v10024_v2  ;;  %v10142_v18 = vpop.permute.xlu1 %5641 }
 0xf38   :  { %5560 = vmax.xlane.f32.xlu0 %v5559_v61  ;;  %v5530_v48 = vpop.f32.mrf.mxu0 }
 0xf39   :  { %v10106_v0 = vadd.f32 %v5530_v48, %v10034_v6  ;;  %v5568_v30 = vsel %vm874_vm3, %v10103_v22, -inf }
 0xf3a   :  { %v8356_v51 = vpop.f32.mrf.mxu0 }
 0xf3b   :  { %v10109_v40 = vadd.f32 %v8356_v51, %v10044_v49  ;;  %v5565_v60 = vsel %vm874_vm3, %v10106_v0, -inf  ;;  %v10152_v1 = vpop.permute.xlu1 %5858 }
 0xf3c   :  { %v5540_v63 = vpop.f32.mrf.mxu0 }
 0xf3d   :  { %v10114_v28 = vadd.f32 %v5540_v63, %v10052_v29  ;;  %v5574_v15 = vsel %vm874_vm3, %v10109_v40, -inf }
 0xf3e   :  { %v8359_v35 = vpop.f32.mrf.mxu0 }
 0xf3f   :  { %v10119_v31 = vadd.f32 %v8359_v35, %v10064_v16  ;;  %v5571_v41 = vsel %vm874_vm3, %v10114_v28, -inf  ;;  %v10158_v61 = vpop.permute.xlu1 %5854 }
 0xf40   :  { %v5550_v20 = vpop.f32.mrf.mxu0 }
 0xf41   :  { %v10124_v12 = vadd.f32 %v5550_v20, %v10072_v58  ;;  %v5580_v11 = vsel %vm874_vm3, %v10119_v31, -inf }
 0xf43   :  { %v5577_v14 = vsel %vm874_vm3, %v10124_v12, -inf  ;;  %v10168_v23 = vpop.permute.xlu1 %5862 }
 0xf47   :  { %5850 = vrot.lane.b32.xlu1 %v9881_v53, %s8716_s16 }
 0xf4e   :  { %5852 = vrot.lane.b32.xlu0 %v9856_v45, %s8716_s16 }
 0xf6b   :  { %5569 = vmax.xlane.f32.xlu1 %v5568_v30 }
 0xf6d   :  { %5566 = vmax.xlane.f32.xlu0 %v5565_v60 }
 0xf6f   :  { %5575 = vmax.xlane.f32.xlu1 %v5574_v15 }
 0xf71   :  { %5572 = vmax.xlane.f32.xlu0 %v5571_v41 }
 0xf73   :  { %5581 = vmax.xlane.f32.xlu1 %v5580_v11 }
 0xf75   :  { %5578 = vmax.xlane.f32.xlu0 %v5577_v14 }
 0xf84   :  { %5832 = vrot.lane.b32.xlu1 %v9832_v57, %s8718_s30 }
 0xf88   :  { %5836 = vrot.lane.b32.xlu1 %v9856_v45, %s8718_s30 }
 0xf8b   :  { %5848 = vrot.lane.b32.xlu0 %v9832_v57, %s8716_s16 }
 0xf8c   :  { %5840 = vrot.lane.b32.xlu1 %v9841_v37, %s8718_s30 }
 0xf8f   :  { %5834 = vrot.lane.b32.xlu0 %v9881_v53, %s8718_s30 }
 0xf90   :  { %5844 = vrot.lane.b32.xlu1 %v9837_v39, %s8718_s30 }
 0xf93   :  { %5838 = vrot.lane.b32.xlu0 %v9867_v4, %s8718_s30 }
 0xf94   :  { %6085 = vrot.lane.b32.xlu1 %v9853_v33, %s8718_s30 }
 0xf97   :  { %5842 = vrot.lane.b32.xlu0 %v9851_v46, %s8718_s30 }
 0xf98   :  { %6083 = vrot.lane.b32.xlu1 %v9859_v13, %s8718_s30 }
 0xf9b   :  { %5846 = vrot.lane.b32.xlu0 %v9843_v34, %s8718_s30 }
 0xf9c   :  { %6079 = vrot.lane.b32.xlu1 %v9873_v54, %s8718_s30 }
 0xf9f   :  { %v5154_v48 = vpop.xlane.xlu0 %5153  ;;  %6087 = vrot.lane.b32.xlu0 %v9845_v47, %s8718_s30 }
 0xfa0   :  { %v5174_v51 = vsub.f32 %v10019_v8, %v5154_v48  ;;  %6075 = vrot.lane.b32.xlu1 %v9887_v62, %s8718_s30 }
 0xfa1   :  { %v5151_v63 = vpop.xlane.xlu1 %5150 }
 0xfa2   :  { %v5173_v35 = vsub.f32 %v10027_v5, %v5151_v63  ;;  %v5183_v30 = vmul.f32 1.442695, %v5174_v51 }
 0xfa3   :  { %6081 = vrot.lane.b32.xlu0 %v9869_v25, %s8718_s30 }
 0xfa4   :  { %v5181_v60 = vmul.f32 1.442695, %v5173_v35  ;;  %6296 = vrot.lane.b32.xlu1 %v9843_v34, %s8722_s9 }
 0xfa5   :  { %v5157_v20 = vpop.xlane.xlu0 %5156  ;;  %v5160_v15 = vpop.xlane.xlu1 %5159 }
 0xfa6   :  { %8562 = vpow2.f32 %v5181_v60  ;;  %v5175_v8 = vsub.f32 %v10047_v56, %v5157_v20  ;;  %v5176_v41 = vsub.f32 %v10037_v50, %v5160_v15 }
 0xfa7   :  { %8564 = vpow2.f32 %v5183_v30  ;;  %6077 = vrot.lane.b32.xlu0 %v9883_v55, %s8718_s30 }
 0xfa8   :  { %v5185_v5 = vmul.f32 1.442695, %v5175_v8  ;;  %v5187_v11 = vmul.f32 1.442695, %v5176_v41  ;;  %6292 = vrot.lane.b32.xlu1 %v9851_v46, %s8722_s9 }
 0xfa9   :  { %v5163_v14 = vpop.xlane.xlu0 %5162  ;;  %v5166_v48 = vpop.xlane.xlu1 %5165 }
 0xfaa   :  { %8566 = vpow2.f32 %v5185_v5  ;;  %v5177_v51 = vsub.f32 %v10067_v7, %v5163_v14  ;;  %v5178_v63 = vsub.f32 %v10055_v44, %v5166_v48 }
 0xfab   :  { %8568 = vpow2.f32 %v5187_v11  ;;  %6073 = vrot.lane.b32.xlu0 %v9895_v27, %s8718_s30  ;;  %s8723_s30 = smov 80  }
 0xfac   :  { %v5189_v50 = vmul.f32 1.442695, %v5177_v51  ;;  %v5191_v56 = vmul.f32 1.442695, %v5178_v63  ;;  %6288 = vrot.lane.b32.xlu1 %v9867_v4, %s8722_s9 }
 0xfad   :  { %v5169_v35 = vpop.xlane.xlu0 %5168  ;;  %v5172_v30 = vpop.xlane.xlu1 %5171 }
 0xfae   :  { %8570 = vpow2.f32 %v5189_v50  ;;  %v5179_v60 = vsub.f32 %v10082_v52, %v5169_v35  ;;  %v5180_v20 = vsub.f32 %v10075_v19, %v5172_v30 }
 0xfaf   :  { %8572 = vpow2.f32 %v5191_v56  ;;  %6294 = vrot.lane.b32.xlu0 %v9837_v39, %s8722_s9 }
 0xfb0   :  { %v5193_v44 = vmul.f32 1.442695, %v5179_v60  ;;  %v5195_v7 = vmul.f32 1.442695, %v5180_v20 }
 0xfb2   :  { %8574 = vpow2.f32 %v5193_v44 }
 0xfb3   :  { %v10196_v15 = vpop.eup %8562  ;;  %8576 = vpow2.f32 %v5195_v7  ;;  %6290 = vrot.lane.b32.xlu0 %v9841_v37, %s8722_s9 }
 0xfb4   :  { %v10200_v8 = vpop.eup %8564  ;;  %8320 = vmatprep.mubr.msk.f32.mxu1 %vm874_vm3, %v10196_v15 }
 0xfb5   :  { %8321 = vmatmul.mubr.msk.f32.vlgmr.msra.gmra.mxu1 %vm874_vm3, %v10200_v8 }
 0xfb6   :  { %8361 = vmatpush3.msra.mxu1 %v9998_v26 }
 0xfb7   :  { %v10207_v19 = vpop.eup %8566  ;;  %8362 = vmatprep.subr.mxu1 %v10132_v3 }
 0xfb8   :  { %v10210_v52 = vpop.eup %8568  ;;  %8363 = vmatpush3.msra.mxu1 %v10132_v3  ;;  %8323 = vmatprep.mubr.msk.f32.mxu1 %vm874_vm3, %v10207_v19 }
 0xfb9   :  { %8364 = vmatprep.subr.mxu1 %v10134_v42  ;;  %8324 = vmatmul.mubr.msk.f32.gmra.mxu1 %vm874_vm3, %v10210_v52 }
 0xfba   :  { %8365 = vmatpush3.msra.mxu1 %v10134_v42 }
 0xfbb   :  { %v10219_v41 = vpop.eup %8570  ;;  %8366 = vmatprep.subr.mxu1 %v9976_v10 }
 0xfbc   :  { %v10222_v26 = vpop.eup %8572  ;;  %8367 = vmatpush3.msra.mxu1 %v9976_v10  ;;  %8326 = vmatprep.mubr.msk.f32.mxu1 %vm874_vm3, %v10219_v41 }
 0xfbd   :  { %8368 = vmatprep.subr.mxu1 %v10138_v38  ;;  %8327 = vmatmul.mubr.msk.f32.gmra.mxu1 %vm874_vm3, %v10222_v26 }
 0xfbe   :  { %8369 = vmatpush3.msra.mxu1 %v10138_v38 }
 0xfbf   :  { %v10231_v3 = vpop.eup %8574  ;;  %8370 = vmatprep.subr.mxu1 %v9983_v24  ;;  %v5564_v42 = vpop.xlane.xlu1 %5563 }
 0xfc0   :  { %v10234_v5 = vpop.eup %8576  ;;  %8371 = vmatpush3.msra.mxu1 %v9983_v24  ;;  %v5584_v10 = vsub.f32 %v10089_v36, %v5564_v42  ;;  %8329 = vmatprep.mubr.msk.f32.mxu1 %vm874_vm3, %v10231_v3 }
 0xfc1   :  { %8372 = vmatprep.subr.mxu1 %v10142_v18  ;;  %v5561_v11 = vpop.xlane.xlu0 %5560  ;;  %8330 = vmatmul.mubr.msk.f32.gmra.mxu1 %vm874_vm3, %v10234_v5 }
 0xfc2   :  { %v5583_v38 = vsub.f32 %v10092_v9, %v5561_v11  ;;  %8373 = vmatpush3.msra.mxu1 %v10142_v18  ;;  %v5593_v14 = vmul.f32 1.442695, %v5584_v10 }
 0xfc3   :  { %8374 = vmatprep.subr.mxu1 %v9987_v32 }
 0xfc4   :  { %v5591_v48 = vmul.f32 1.442695, %v5583_v38  ;;  %8375 = vmatpush3.msra.mxu1 %v9987_v32 }
 0xfc5   :  { %8388 = vmatprep.subr.msk.mxu1 %vm69_vm2, %v10168_v23  ;;  %v5853_v32 = vpop.permute.xlu0 %5852 }
 0xfc6   :  { %8578 = vpow2.f32 %v5591_v48 }
 0xfc7   :  { %8580 = vpow2.f32 %v5593_v14 }
 0xfd3   :  { %v10249_v24 = vpop.eup %8578 }
 0xfd4   :  { %v10251_v36 = vpop.eup %8580  ;;  %8376 = vmatprep.mubr.msk.f32.mxu1 %vm874_vm3, %v10249_v24 }
 0xfd5   :  { %8377 = vmatmul.mubr.msk.f32.vlgmr.msra.gmra.mxu1 %vm874_vm3, %v10251_v36 }
 0xfd6   :  { %8389 = vmatpush3.xpose.msk.msra.mxu1 %vm69_vm2, %v10168_v23 }
 0xfd7   :  { %8390 = vmatprep.subr.msk.mxu1 %vm69_vm2, %v9991_v43 }
 0xfda   :  { %8391 = vmatpush3.xpose.msk.msra.mxu1 %vm69_vm2, %v9991_v43  ;;  %v5851_v43 = vpop.permute.xlu1 %5850 }
 0xfdb   :  { %8392 = vmatprep.subr.msk.mxu1 %vm69_vm2, %v10152_v1 }
 0xfde   :  { %8393 = vmatpush3.xpose.msk.msra.mxu1 %vm69_vm2, %v10152_v1 }
 0xfdf   :  { %8394 = vmatprep.subr.msk.mxu1 %vm69_vm2, %v9995_v17 }
 0xfe2   :  { %8395 = vmatpush3.xpose.msk.msra.mxu1 %vm69_vm2, %v9995_v17 }
 0xfe3   :  { %8396 = vmatprep.subr.msk.mxu1 %vm69_vm2, %v10158_v61 }
 0xfe6   :  { %8397 = vmatpush3.xpose.msk.msra.mxu1 %vm69_vm2, %v10158_v61 }
 0xfe7   :  { %8398 = vmatprep.subr.msk.mxu1 %vm69_vm2, %v5853_v32 }
 0xfea   :  { %8399 = vmatpush3.xpose.msk.msra.mxu1 %vm69_vm2, %v5853_v32 }
 0xfeb   :  { %8400 = vmatprep.subr.msk.mxu1 %vm69_vm2, %v5851_v43 }
 0xfee   :  { %8401 = vmatpush3.xpose.msk.msra.mxu1 %vm69_vm2, %v5851_v43 }
 0xff4   :  { %v5570_v9 = vpop.xlane.xlu1 %5569 }
 0xff5   :  { %v5586_v18 = vsub.f32 %v10103_v22, %v5570_v9 }
 0xff6   :  { %v5567_v17 = vpop.xlane.xlu0 %5566 }
 0xff7   :  { %v5585_v1 = vsub.f32 %v10106_v0, %v5567_v17  ;;  %v5597_v23 = vmul.f32 1.442695, %v5586_v18 }
 0xff8   :  { %v5576_v51 = vpop.xlane.xlu1 %5575 }
 0xff9   :  { %v5595_v63 = vmul.f32 1.442695, %v5585_v1  ;;  %v5588_v61 = vsub.f32 %v10109_v40, %v5576_v51 }
 0xffa   :  { %v5573_v50 = vpop.xlane.xlu0 %5572 }
 0xffb   :  { %8582 = vpow2.f32 %v5595_v63  ;;  %v5587_v56 = vsub.f32 %v10114_v28, %v5573_v50  ;;  %v5601_v35 = vmul.f32 1.442695, %v5588_v61 }
 0xffc   :  { %8584 = vpow2.f32 %v5597_v23  ;;  %v5582_v30 = vpop.xlane.xlu1 %5581 }
 0xffd   :  { %v5599_v60 = vmul.f32 1.442695, %v5587_v56  ;;  %v5590_v20 = vsub.f32 %v10119_v31, %v5582_v30 }
 0xffe   :  { %v5579_v44 = vpop.xlane.xlu0 %5578 }
 0xfff   :  { %8586 = vpow2.f32 %v5599_v60  ;;  %v5589_v22 = vsub.f32 %v10124_v12, %v5579_v44  ;;  %v5605_v0 = vmul.f32 1.442695, %v5590_v20 }
0x1000   :  { %8588 = vpow2.f32 %v5601_v35  ;;  %v5833_v7 = vpop.permute.xlu1 %5832 }
0x1001   :  { %v5603_v42 = vmul.f32 1.442695, %v5589_v22 }
0x1002   :  { %v5849_v10 = vpop.permute.xlu0 %5848 }
0x1003   :  { %8590 = vpow2.f32 %v5603_v42  ;;  %8402 = vmatprep.subr.msk.mxu1 %vm69_vm2, %v5849_v10 }
0x1004   :  { %8592 = vpow2.f32 %v5605_v0  ;;  %8403 = vmatpush3.xpose.msk.msra.mxu1 %vm69_vm2, %v5849_v10  ;;  %v5837_v40 = vpop.permute.xlu1 %5836 }
0x1006   :  { %v5835_v28 = vpop.permute.xlu0 %5834 }
0x1008   :  { %v10287_v11 = vpop.eup %8582  ;;  %v5841_v31 = vpop.permute.xlu1 %5840 }
0x1009   :  { %v10289_v38 = vpop.eup %8584  ;;  %8379 = vmatprep.mubr.msk.f32.mxu1 %vm874_vm3, %v10287_v11 }
0x100a   :  { %v5839_v12 = vpop.permute.xlu0 %5838  ;;  %8380 = vmatmul.mubr.msk.f32.gmra.mxu1 %vm874_vm3, %v10289_v38 }
0x100c   :  { %v10295_v14 = vpop.eup %8586  ;;  %v5845_v48 = vpop.permute.xlu1 %5844 }
0x100d   :  { %v10297_v32 = vpop.eup %8588  ;;  %8382 = vmatprep.mubr.msk.f32.mxu1 %vm874_vm3, %v10295_v14 }
0x100e   :  { %v5843_v43 = vpop.permute.xlu0 %5842  ;;  %8383 = vmatmul.mubr.msk.f32.gmra.mxu1 %vm874_vm3, %v10297_v32 }
0x1010   :  { %v10303_v9 = vpop.eup %8590  ;;  %v6086_v18 = vpop.permute.xlu1 %6085 }
0x1011   :  { %v10305_v17 = vpop.eup %8592  ;;  %8385 = vmatprep.mubr.msk.f32.mxu1 %vm874_vm3, %v10303_v9 }
0x1012   :  { %v5847_v1 = vpop.permute.xlu0 %5846  ;;  %8386 = vmatmul.mubr.msk.f32.gmra.mxu1 %vm874_vm3, %v10305_v17 }
0x1013   :  { %8404 = vmatprep.mubr.msk.f32.mxu1 %vm69_vm2, %v5833_v7 }
0x1014   :  { %v6084_v23 = vpop.permute.xlu1 %6083 }
0x1016   :  { %v6088_v51 = vpop.permute.xlu0 %6087  ;;  %8405 = vmatmul.mubr.msk.f32.vlgmr.msra.gmra.mxu1 %vm69_vm2, %v5835_v28 }
0x1017   :  { %8407 = vmatprep.mubr.msk.f32.mxu1 %vm69_vm2, %v5837_v40  ;;  %8416 = vmatprep.subr.mxu0 %v6088_v51 }
0x1018   :  { %8417 = vmatpush3.msra.mxu0 %v6088_v51  ;;  %v6080_v63 = vpop.permute.xlu1 %6079 }
0x1019   :  { %8418 = vmatprep.subr.mxu0 %v6086_v18 }
0x101a   :  { %v6082_v61 = vpop.permute.xlu0 %6081  ;;  %8408 = vmatmul.mubr.msk.f32.gmra.mxu1 %vm69_vm2, %v5839_v12  ;;  %8419 = vmatpush3.msra.mxu0 %v6086_v18 }
0x101b   :  { %8410 = vmatprep.mubr.msk.f32.mxu1 %vm69_vm2, %v5841_v31  ;;  %8420 = vmatprep.subr.mxu0 %v6084_v23 }
0x101c   :  { %8421 = vmatpush3.msra.mxu0 %v6084_v23  ;;  %v6076_v56 = vpop.permute.xlu1 %6075 }
0x101d   :  { %8422 = vmatprep.subr.mxu0 %v6082_v61 }
0x101e   :  { %v6078_v50 = vpop.permute.xlu0 %6077  ;;  %8411 = vmatmul.mubr.msk.f32.gmra.mxu1 %vm69_vm2, %v5843_v43  ;;  %8423 = vmatpush3.msra.mxu0 %v6082_v61 }
0x101f   :  { %8413 = vmatprep.mubr.msk.f32.mxu1 %vm69_vm2, %v5845_v48  ;;  %8424 = vmatprep.subr.mxu0 %v6080_v63 }
0x1020   :  { %8425 = vmatpush3.msra.mxu0 %v6080_v63  ;;  %v10319_v30 = vpop.permute.xlu1 %6296 }
0x1021   :  { %8426 = vmatprep.subr.mxu0 %v6078_v50 }
0x1022   :  { %8414 = vmatmul.mubr.msk.f32.gmra.mxu1 %vm69_vm2, %v5847_v1  ;;  %8427 = vmatpush3.msra.mxu0 %v6078_v50  ;;  %v6074_v35 = vpop.permute.xlu0 %6073 }
0x1023   :  { %8428 = vmatprep.subr.mxu0 %v6076_v56 }
0x1024   :  { %8429 = vmatpush3.msra.mxu0 %v6076_v56 }
0x1025   :  { %8430 = vmatprep.subr.mxu0 %v6074_v35 }
0x1026   :  { %8431 = vmatpush3.msra.mxu0 %v6074_v35 }
0x1027   :  { %8444 = vmatprep.subr.msk.mxu0 %vm69_vm2, %v10319_v30 }
0x1075   :  { %v10323_v60 = vpop.f32.mrf.mxu1 }
0x1076   :  { %10789 = vst [vmem:[#allocation6_spill] sm:$0xff] %v10323_v60 }
0x1077   :  { %v10325_v20 = vpop.f32.mrf.mxu1 }
0x1079   :  { %v10327_v44 = vpop.f32.mrf.mxu1 }
0x107a   :  { %10790 = vst [vmem:[#allocation7_spill] sm:$0xff] %v10327_v44 }
0x107b   :  { %v10329_v22 = vpop.f32.mrf.mxu1 }
0x107c   :  { %10791 = vst [vmem:[#allocation8_spill] sm:$0xff] %v10329_v22 }
0x107d   :  { %v10331_v0 = vpop.f32.mrf.mxu1 }
0x107e   :  { %10792 = vst [vmem:[#allocation9_spill] sm:$0xff] %v10331_v0 }
0x107f   :  { %v10333_v7 = vpop.f32.mrf.mxu1 }
0x1080   :  { %10793 = vst [vmem:[#allocation10_spill] sm:$0xff] %v10333_v7 }
0x1081   :  { %v10335_v42 = vpop.f32.mrf.mxu1 }
0x1082   :  { %10794 = vst [vmem:[#allocation11_spill] sm:$0xff] %v10335_v42 }
0x1083   :  { %v10337_v10 = vpop.f32.mrf.mxu1 }
0x1084   :  { %10795 = vst [vmem:[#allocation12_spill] sm:$0xff] %v10337_v10 }
0x1095   :  { %v10339_v40 = vpop.f32.mrf.mxu1 }
0x1097   :  { %v10341_v28 = vpop.f32.mrf.mxu1 }
0x10ca   :  { %v10343_v31 = vpop.f32.mrf.mxu1 }
0x10cc   :  { %v10345_v12 = vpop.f32.mrf.mxu1 }
0x10ce   :  { %v10347_v48 = vpop.f32.mrf.mxu1 }
0x10d0   :  { %v10349_v43 = vpop.f32.mrf.mxu1 }
0x10d2   :  { %v10351_v18 = vpop.f32.mrf.mxu1 }
0x10d4   :  { %v10353_v1 = vpop.f32.mrf.mxu1 }
0x10d6   :  { %v8406_v23 = vpop.f32.mrf.mxu1 }
0x10d7   :  { %v5968_v51 = vadd.f32 %v8406_v23, %v10011_v21 }
0x10d8   :  { %v5962_v63 = vpop.f32.mrf.mxu1 }
0x10d9   :  { %v5963_v61 = vadd.f32 %v5962_v63, %v10016_v59  ;;  %v6004_v50 = vsel %vm874_vm3, %v5968_v51, -inf }
0x10da   :  { %6005 = vmax.xlane.f32.xlu0 %v6004_v50  ;;  %v8409_v35 = vpop.f32.mrf.mxu1 }
0x10db   :  { %v6001_v56 = vsel %vm874_vm3, %v5963_v61, -inf  ;;  %v10367_v7 = vadd.f32 %v8409_v35, %v10024_v2 }
0x10dc   :  { %6002 = vmax.xlane.f32.xlu1 %v6001_v56  ;;  %v5972_v42 = vpop.f32.mrf.mxu1 }
0x10dd   :  { %v10364_v23 = vadd.f32 %v5972_v42, %v10034_v6  ;;  %v6010_v60 = vsel %vm874_vm3, %v10367_v7, -inf }
0x10de   :  { %v8412_v10 = vpop.f32.mrf.mxu1 }
0x10df   :  { %v6007_v56 = vsel %vm874_vm3, %v10364_v23, -inf  ;;  %v10375_v22 = vadd.f32 %v8412_v10, %v10044_v49 }
0x10e0   :  { %v5982_v0 = vpop.f32.mrf.mxu1 }
0x10e1   :  { %v10370_v50 = vadd.f32 %v5982_v0, %v10052_v29 }
0x10e2   :  { %v8415_v63 = vpop.f32.mrf.mxu1 }
0x10e3   :  { %v6013_v35 = vsel %vm874_vm3, %v10370_v50, -inf  ;;  %v10385_v0 = vadd.f32 %v8415_v63, %v10064_v16 }
0x10e4   :  { %v5992_v44 = vpop.f32.mrf.mxu1 }
0x10e5   :  { %v10380_v42 = vadd.f32 %v5992_v44, %v10072_v58 }
0x10e7   :  { %v6019_v10 = vsel %vm874_vm3, %v10380_v42, -inf }
0x10ed   :  { %6284 = vrot.lane.b32.xlu1 %v9881_v53, %s8722_s9 }
0x10f0   :  { %6286 = vrot.lane.b32.xlu0 %v9856_v45, %s8722_s9 }
0x110f   :  { %6008 = vmax.xlane.f32.xlu0 %v6007_v56  ;;  %v6016_v56 = vsel %vm874_vm3, %v10375_v22, -inf }
0x1111   :  { %6011 = vmax.xlane.f32.xlu1 %v6010_v60  ;;  %v6022_v60 = vsel %vm874_vm3, %v10385_v0, -inf }
0x1113   :  { %6014 = vmax.xlane.f32.xlu0 %v6013_v35 }
0x1115   :  { %6017 = vmax.xlane.f32.xlu1 %v6016_v56 }
0x1117   :  { %6020 = vmax.xlane.f32.xlu0 %v6019_v10 }
0x1119   :  { %6023 = vmax.xlane.f32.xlu1 %v6022_v60 }
0x112a   :  { %6266 = vrot.lane.b32.xlu1 %v9832_v57, %s8723_s30 }
0x112d   :  { %6282 = vrot.lane.b32.xlu0 %v9832_v57, %s8722_s9  ;;  %v6295_v57 = vpop.permute.xlu0 %6294 }
0x112e   :  { %6270 = vrot.lane.b32.xlu1 %v9856_v45, %s8723_s30 }
0x1131   :  { %6268 = vrot.lane.b32.xlu0 %v9881_v53, %s8723_s30 }
0x1132   :  { %6274 = vrot.lane.b32.xlu1 %v9841_v37, %s8723_s30  ;;  %v6291_v37 = vpop.permute.xlu0 %6290 }
0x1135   :  { %6272 = vrot.lane.b32.xlu0 %v9867_v4, %s8723_s30 }
0x1136   :  { %6278 = vrot.lane.b32.xlu1 %v9837_v39, %s8723_s30  ;;  %v6293_v39 = vpop.permute.xlu1 %6292 }
0x1139   :  { %6276 = vrot.lane.b32.xlu0 %v9851_v46, %s8723_s30 }
0x113a   :  { %6519 = vrot.lane.b32.xlu1 %v9853_v33, %s8723_s30  ;;  %v6289_v46 = vpop.permute.xlu1 %6288 }
0x113d   :  { %6280 = vrot.lane.b32.xlu0 %v9843_v34, %s8723_s30 }
0x113e   :  { %6517 = vrot.lane.b32.xlu1 %v9859_v13, %s8723_s30 }
0x1141   :  { %6521 = vrot.lane.b32.xlu0 %v9845_v47, %s8723_s30 }
0x1142   :  { %6513 = vrot.lane.b32.xlu1 %v9873_v54, %s8723_s30 }
0x1145   :  { %6515 = vrot.lane.b32.xlu0 %v9869_v25, %s8723_s30 }
0x1149   :  { %6511 = vrot.lane.b32.xlu0 %v9883_v55, %s8723_s30 }
0x1163   :  { %v6006_v34 = vpop.xlane.xlu0 %6005 }
0x1164   :  { %v6026_v33 = vsub.f32 %v5968_v51, %v6006_v34 }
0x1165   :  { %v6003_v45 = vpop.xlane.xlu1 %6002 }
0x1166   :  { %v6025_v13 = vsub.f32 %v5963_v61, %v6003_v45  ;;  %v6035_v4 = vmul.f32 1.442695, %v6026_v33 }
0x1167   :  { %v6287_v25 = vpop.permute.xlu0 %6286 }
0x1168   :  { %v6033_v53 = vmul.f32 1.442695, %v6025_v13 }
0x1169   :  { %v6285_v55 = vpop.permute.xlu1 %6284 }
0x116a   :  { %8594 = vpow2.f32 %v6033_v53 }
0x116b   :  { %8596 = vpow2.f32 %v6035_v4 }
0x1177   :  { %v10423_v47 = vpop.eup %8594 }
0x1178   :  { %v10425_v54 = vpop.eup %8596  ;;  %8432 = vmatprep.mubr.msk.f32.mxu0 %vm874_vm3, %v10423_v47 }
0x1179   :  { %8433 = vmatmul.mubr.msk.f32.vlgmr.msra.gmra.mxu0 %vm874_vm3, %v10425_v54 }
0x117a   :  { %8445 = vmatpush3.xpose.msk.msra.mxu0 %vm69_vm2, %v10319_v30 }
0x117b   :  { %8446 = vmatprep.subr.msk.mxu0 %vm69_vm2, %v6295_v57 }
0x117e   :  { %8447 = vmatpush3.xpose.msk.msra.mxu0 %vm69_vm2, %v6295_v57 }
0x117f   :  { %8448 = vmatprep.subr.msk.mxu0 %vm69_vm2, %v6293_v39 }
0x1182   :  { %8449 = vmatpush3.xpose.msk.msra.mxu0 %vm69_vm2, %v6293_v39 }
0x1183   :  { %8450 = vmatprep.subr.msk.mxu0 %vm69_vm2, %v6291_v37 }
0x1186   :  { %8451 = vmatpush3.xpose.msk.msra.mxu0 %vm69_vm2, %v6291_v37 }
0x1187   :  { %8452 = vmatprep.subr.msk.mxu0 %vm69_vm2, %v6289_v46 }
0x118a   :  { %8453 = vmatpush3.xpose.msk.msra.mxu0 %vm69_vm2, %v6289_v46 }
0x118b   :  { %8454 = vmatprep.subr.msk.mxu0 %vm69_vm2, %v6287_v25 }
0x118e   :  { %8455 = vmatpush3.xpose.msk.msra.mxu0 %vm69_vm2, %v6287_v25 }
0x118f   :  { %8456 = vmatprep.subr.msk.mxu0 %vm69_vm2, %v6285_v55 }
0x1192   :  { %8457 = vmatpush3.xpose.msk.msra.mxu0 %vm69_vm2, %v6285_v55 }
0x1198   :  { %v6009_v30 = vpop.xlane.xlu0 %6008 }
0x1199   :  { %v6027_v44 = vsub.f32 %v10364_v23, %v6009_v30 }
0x119a   :  { %v6012_v51 = vpop.xlane.xlu1 %6011 }
0x119b   :  { %v6037_v61 = vmul.f32 1.442695, %v6027_v44  ;;  %v6028_v63 = vsub.f32 %v10367_v7, %v6012_v51 }
0x119c   :  { %v6015_v35 = vpop.xlane.xlu0 %6014 }
0x119d   :  { %8598 = vpow2.f32 %v6037_v61  ;;  %v6039_v56 = vmul.f32 1.442695, %v6028_v63  ;;  %v6029_v10 = vsub.f32 %v10370_v50, %v6015_v35 }
0x119e   :  { %v6018_v60 = vpop.xlane.xlu1 %6017 }
0x119f   :  { %8600 = vpow2.f32 %v6039_v56  ;;  %v6041_v57 = vmul.f32 1.442695, %v6029_v10  ;;  %v6030_v39 = vsub.f32 %v10375_v22, %v6018_v60 }
0x11a0   :  { %v6021_v37 = vpop.xlane.xlu0 %6020 }
0x11a1   :  { %8602 = vpow2.f32 %v6041_v57  ;;  %v6043_v46 = vmul.f32 1.442695, %v6030_v39  ;;  %v6031_v34 = vsub.f32 %v10380_v42, %v6021_v37 }
0x11a2   :  { %v6024_v23 = vpop.xlane.xlu1 %6023 }
0x11a3   :  { %8604 = vpow2.f32 %v6043_v46  ;;  %v6045_v33 = vmul.f32 1.442695, %v6031_v34  ;;  %v6032_v7 = vsub.f32 %v10385_v0, %v6024_v23 }
0x11a4   :  { %v6283_v45 = vpop.permute.xlu0 %6282 }
0x11a5   :  { %8606 = vpow2.f32 %v6045_v33  ;;  %v6047_v13 = vmul.f32 1.442695, %v6032_v7  ;;  %8458 = vmatprep.subr.msk.mxu0 %vm69_vm2, %v6283_v45 }
0x11a6   :  { %8459 = vmatpush3.xpose.msk.msra.mxu0 %vm69_vm2, %v6283_v45  ;;  %v6267_v50 = vpop.permute.xlu1 %6266 }
0x11a7   :  { %8608 = vpow2.f32 %v6047_v13 }
0x11a8   :  { %v6269_v22 = vpop.permute.xlu0 %6268 }
0x11aa   :  { %v10453_v4 = vpop.eup %8598  ;;  %v6271_v53 = vpop.permute.xlu1 %6270 }
0x11ab   :  { %8435 = vmatprep.mubr.msk.f32.mxu0 %vm874_vm3, %v10453_v4 }
0x11ac   :  { %v10457_v42 = vpop.eup %8600  ;;  %v6273_v25 = vpop.permute.xlu0 %6272 }
0x11ad   :  { %8436 = vmatmul.mubr.msk.f32.gmra.mxu0 %vm874_vm3, %v10457_v42 }
0x11ae   :  { %v10461_v0 = vpop.eup %8602  ;;  %v6275_v55 = vpop.permute.xlu1 %6274 }
0x11af   :  { %8438 = vmatprep.mubr.msk.f32.mxu0 %vm874_vm3, %v10461_v0 }
0x11b0   :  { %v10465_v30 = vpop.eup %8604  ;;  %v6277_v44 = vpop.permute.xlu0 %6276 }
0x11b1   :  { %8439 = vmatmul.mubr.msk.f32.gmra.mxu0 %vm874_vm3, %v10465_v30 }
0x11b2   :  { %v10469_v51 = vpop.eup %8606  ;;  %v6279_v61 = vpop.permute.xlu1 %6278 }
0x11b3   :  { %8441 = vmatprep.mubr.msk.f32.mxu0 %vm874_vm3, %v10469_v51 }
0x11b4   :  { %v10473_v63 = vpop.eup %8608  ;;  %v6281_v35 = vpop.permute.xlu0 %6280 }
0x11b5   :  { %8442 = vmatmul.mubr.msk.f32.gmra.mxu0 %vm874_vm3, %v10473_v63 }
0x11b6   :  { %8460 = vmatprep.mubr.msk.f32.mxu0 %vm69_vm2, %v6267_v50  ;;  %v6520_v56 = vpop.permute.xlu1 %6519 }
0x11b8   :  { %v6522_v10 = vpop.permute.xlu0 %6521 }
0x11b9   :  { %8461 = vmatmul.mubr.msk.f32.vlgmr.msra.gmra.mxu0 %vm69_vm2, %v6269_v22  ;;  %8472 = vmatprep.subr.mxu1 %v6522_v10 }
0x11ba   :  { %8463 = vmatprep.mubr.msk.f32.mxu0 %vm69_vm2, %v6271_v53  ;;  %8473 = vmatpush3.msra.mxu1 %v6522_v10  ;;  %v6518_v60 = vpop.permute.xlu1 %6517 }
0x11bb   :  { %8474 = vmatprep.subr.mxu1 %v6520_v56 }
0x11bc   :  { %v6516_v57 = vpop.permute.xlu0 %6515  ;;  %8475 = vmatpush3.msra.mxu1 %v6520_v56 }
0x11bd   :  { %8464 = vmatmul.mubr.msk.f32.gmra.mxu0 %vm69_vm2, %v6273_v25  ;;  %8476 = vmatprep.subr.mxu1 %v6518_v60 }
0x11be   :  { %8466 = vmatprep.mubr.msk.f32.mxu0 %vm69_vm2, %v6275_v55  ;;  %8477 = vmatpush3.msra.mxu1 %v6518_v60  ;;  %v6514_v39 = vpop.permute.xlu1 %6513 }
0x11bf   :  { %8478 = vmatprep.subr.mxu1 %v6516_v57 }
0x11c0   :  { %8479 = vmatpush3.msra.mxu1 %v6516_v57  ;;  %v6512_v37 = vpop.permute.xlu0 %6511 }
0x11c1   :  { %8467 = vmatmul.mubr.msk.f32.gmra.mxu0 %vm69_vm2, %v6277_v44  ;;  %8480 = vmatprep.subr.mxu1 %v6514_v39 }
0x11c2   :  { %8469 = vmatprep.mubr.msk.f32.mxu0 %vm69_vm2, %v6279_v61  ;;  %8481 = vmatpush3.msra.mxu1 %v6514_v39 }
0x11c3   :  { %8482 = vmatprep.subr.mxu1 %v6512_v37 }
0x11c4   :  { %8483 = vmatpush3.msra.mxu1 %v6512_v37 }
0x11c5   :  { %8470 = vmatmul.mubr.msk.f32.gmra.mxu0 %vm69_vm2, %v6281_v35 }
0x1239   :  { %v10485_v46 = vpop.f32.mrf.mxu0 }
0x123b   :  { %v10487_v34 = vpop.f32.mrf.mxu0 }
0x126d   :  { %v10489_v23 = vpop.f32.mrf.mxu0 }
0x126f   :  { %v10491_v33 = vpop.f32.mrf.mxu0 }
0x1271   :  { %v10493_v7 = vpop.f32.mrf.mxu0 }
0x1273   :  { %v10495_v45 = vpop.f32.mrf.mxu0 }
0x1275   :  { %v10497_v13 = vpop.f32.mrf.mxu0 }
0x1277   :  { %v10499_v50 = vpop.f32.mrf.mxu0 }
0x1279   :  { %v8462_v22 = vpop.f32.mrf.mxu0 }
0x127a   :  { %v10502_v53 = vadd.f32 %v8462_v22, %v10011_v21 }
0x127b   :  { %v6396_v25 = vpop.f32.mrf.mxu0 }
0x127c   :  { %v10505_v55 = vadd.f32 %v6396_v25, %v10016_v59  ;;  %v6438_v44 = vsel %vm874_vm3, %v10502_v53, -inf }
0x127d   :  { %6439 = vmax.xlane.f32.xlu0 %v6438_v44  ;;  %v8465_v61 = vpop.f32.mrf.mxu0 }
0x127e   :  { %v10510_v35 = vadd.f32 %v8465_v61, %v10024_v2  ;;  %v6435_v56 = vsel %vm874_vm3, %v10505_v55, -inf }
0x127f   :  { %6436 = vmax.xlane.f32.xlu1 %v6435_v56  ;;  %v6406_v10 = vpop.f32.mrf.mxu0 }
0x1280   :  { %v10515_v21 = vadd.f32 %v6406_v10, %v10034_v6  ;;  %v6444_v57 = vsel %vm874_vm3, %v10510_v35, -inf  ;;  %v6052_v10 = vsel %vm874_vm3, %v10425_v54, 0.0  ;;  %v5619_v54 = vsel %vm874_vm3, %v10295_v14, 0.0 }
0x1281   :  { %v8468_v60 = vpop.f32.mrf.mxu0  ;;  %v6070_v14 = vsel %vm874_vm3, %v10473_v63, 0.0 }
0x1282   :  { %v10518_v59 = vadd.f32 %v8468_v60, %v10044_v49  ;;  %v6441_v39 = vsel %vm874_vm3, %v10515_v21, -inf  ;;  %v6049_v60 = vsel %vm874_vm3, %v10423_v47, 0.0  ;;  %v5622_v47 = vsel %vm874_vm3, %v10297_v32, 0.0 }
0x1283   :  { %6445 = vmax.xlane.f32.xlu1 %v6444_v57  ;;  %6442 = vmax.xlane.f32.xlu0 %v6441_v39  ;;  %v6416_v2 = vpop.f32.mrf.mxu0  ;;  %v6067_v32 = vsel %vm874_vm3, %v10469_v51, 0.0 }
0x1284   :  { %v10525_v37 = vadd.f32 %v6416_v2, %v10052_v29  ;;  %v6450_v49 = vsel %vm874_vm3, %v10518_v59, -inf }
0x1285   :  { %v8471_v22 = vpop.f32.mrf.mxu0 }
0x1286   :  { %v10528_v6 = vadd.f32 %v8471_v22, %v10064_v16  ;;  %v6447_v25 = vsel %vm874_vm3, %v10525_v37, -inf  ;;  %v5607_v16 = vsel %vm874_vm3, %v10249_v24, 0.0  ;;  %v6058_v24 = vsel %vm874_vm3, %v10457_v42, 0.0 }
0x1287   :  { %6451 = vmax.xlane.f32.xlu1 %v6450_v49  ;;  %6448 = vmax.xlane.f32.xlu0 %v6447_v25  ;;  %v6426_v44 = vpop.f32.mrf.mxu0  ;;  %v5625_v42 = vsel %vm874_vm3, %v10303_v9, 0.0 }
0x1288   :  { %v10535_v61 = vadd.f32 %v6426_v44, %v10072_v58  ;;  %v6456_v29 = vsel %vm874_vm3, %v10528_v6, -inf  ;;  %v5610_v58 = vsel %vm874_vm3, %v10251_v36, 0.0  ;;  %v6055_v36 = vsel %vm874_vm3, %v10453_v4, 0.0 }
0x1289   :  { %v5628_v4 = vsel %vm874_vm3, %v10305_v17, 0.0 }
0x128a   :  { %v6453_v56 = vsel %vm874_vm3, %v10535_v61, -inf }
0x128b   :  { %6457 = vmax.xlane.f32.xlu1 %v6456_v29  ;;  %6454 = vmax.xlane.f32.xlu0 %v6453_v56 }
0x129c   :  { %6509 = vrot.lane.b32.xlu1 %v9887_v62, %s8723_s30  ;;  %v5616_v62 = vsel %vm874_vm3, %v10289_v38, 0.0  ;;  %v6061_v38 = vsel %vm874_vm3, %v10461_v0, 0.0 }
0x12a1   :  { %6507 = vrot.lane.b32.xlu0 %v9895_v27, %s8723_s30  ;;  %v5613_v27 = vsel %vm874_vm3, %v10287_v11, 0.0  ;;  %v6064_v11 = vsel %vm874_vm3, %v10465_v30, 0.0 }
0x12c0   :  { %5608 = vadd.xlane.f32.xlu1 %v5607_v16  ;;  %5611 = vadd.xlane.f32.xlu0 %v5610_v58 }
0x12c4   :  { %6053 = vadd.xlane.f32.xlu1 %v6052_v10  ;;  %6050 = vadd.xlane.f32.xlu0 %v6049_v60 }
0x12c8   :  { %5617 = vadd.xlane.f32.xlu1 %v5616_v62  ;;  %5614 = vadd.xlane.f32.xlu0 %v5613_v27 }
0x12cc   :  { %6059 = vadd.xlane.f32.xlu1 %v6058_v24  ;;  %6056 = vadd.xlane.f32.xlu0 %v6055_v36 }
0x12d0   :  { %5623 = vadd.xlane.f32.xlu1 %v5622_v47  ;;  %5620 = vadd.xlane.f32.xlu0 %v5619_v54 }
0x12d4   :  { %6065 = vadd.xlane.f32.xlu1 %v6064_v11  ;;  %6062 = vadd.xlane.f32.xlu0 %v6061_v38 }
0x12d8   :  { %5629 = vadd.xlane.f32.xlu1 %v5628_v4  ;;  %5626 = vadd.xlane.f32.xlu0 %v5625_v42 }
0x12dc   :  { %6071 = vadd.xlane.f32.xlu1 %v6070_v14  ;;  %6068 = vadd.xlane.f32.xlu0 %v6067_v32 }
0x1306   :  { %v6440_v30 = vpop.xlane.xlu0 %6439 }
0x1307   :  { %v6460_v0 = vsub.f32 %v10502_v53, %v6440_v30 }
0x1308   :  { %v6437_v57 = vpop.xlane.xlu1 %6436 }
0x1309   :  { %v6469_v39 = vmul.f32 1.442695, %v6460_v0  ;;  %v6459_v17 = vsub.f32 %v10505_v55, %v6437_v57 }
0x130b   :  { %8610 = vpow2.f32 %v6469_v39  ;;  %v6467_v2 = vmul.f32 1.442695, %v6459_v17  ;;  %v5197_v39 = vsel %vm874_vm3, %v10196_v15, 0.0  ;;  %v5200_v17 = vsel %vm874_vm3, %v10200_v8, 0.0 }
0x130c   :  { %v6443_v9 = vpop.xlane.xlu0 %6442  ;;  %v6446_v22 = vpop.xlane.xlu1 %6445  ;;  %v5212_v15 = vsel %vm874_vm3, %v10222_v26, 0.0  ;;  %v5215_v8 = vsel %vm874_vm3, %v10231_v3, 0.0 }
0x130d   :  { %8612 = vpow2.f32 %v6467_v2  ;;  %v6461_v49 = vsub.f32 %v10515_v21, %v6443_v9  ;;  %v6462_v63 = vsub.f32 %v10510_v35, %v6446_v22  ;;  %v5203_v2 = vsel %vm874_vm3, %v10207_v19, 0.0 }
0x130e   :  { %v5206_v9 = vsel %vm874_vm3, %v10210_v52, 0.0  ;;  %v5209_v22 = vsel %vm874_vm3, %v10219_v41, 0.0  ;;  %v5218_v19 = vsel %vm874_vm3, %v10234_v5, 0.0 }
0x130f   :  { %v6471_v25 = vmul.f32 1.442695, %v6461_v49  ;;  %v6473_v51 = vmul.f32 1.442695, %v6462_v63 }
0x1310   :  { %v6449_v44 = vpop.xlane.xlu0 %6448  ;;  %v6452_v29 = vpop.xlane.xlu1 %6451 }
0x1311   :  { %8614 = vpow2.f32 %v6471_v25  ;;  %v6463_v53 = vsub.f32 %v10525_v37, %v6449_v44  ;;  %v6464_v56 = vsub.f32 %v10518_v59, %v6452_v29 }
0x1312   :  { %8616 = vpow2.f32 %v6473_v51 }
0x1313   :  { %v6475_v55 = vmul.f32 1.442695, %v6463_v53  ;;  %v6477_v16 = vmul.f32 1.442695, %v6464_v56 }
0x1314   :  { %v6455_v58 = vpop.xlane.xlu0 %6454  ;;  %v6458_v10 = vpop.xlane.xlu1 %6457 }
0x1315   :  { %8618 = vpow2.f32 %v6475_v55  ;;  %v6465_v60 = vsub.f32 %v10535_v61, %v6455_v58  ;;  %v6466_v21 = vsub.f32 %v10528_v6, %v6458_v10 }
0x1316   :  { %8620 = vpow2.f32 %v6477_v16 }
0x1317   :  { %v6479_v35 = vmul.f32 1.442695, %v6465_v60  ;;  %v6481_v62 = vmul.f32 1.442695, %v6466_v21 }
0x1318   :  { %v8611_v27 = vpop.eup %8610  ;;  %v6510_v24 = vpop.permute.xlu1 %6509 }
0x1319   :  { %8622 = vpow2.f32 %v6479_v35  ;;  %8484 = vmatprep.subr.mxu1 %v6510_v24  ;;  %v6486_v37 = vsel %vm874_vm3, %v8611_v27, 0.0  ;;  %v6508_v36 = vpop.permute.xlu0 %6507 }
0x131a   :  { %v8613_v59 = vpop.eup %8612  ;;  %8624 = vpow2.f32 %v6481_v62  ;;  %6487 = vadd.xlane.f32.xlu1 %v6486_v37  ;;  %8485 = vmatpush3.msra.mxu1 %v6510_v24 }
0x131b   :  { %8486 = vmatprep.subr.mxu1 %v6508_v36  ;;  %8488 = vmatprep.mubr.msk.f32.mxu1 %vm874_vm3, %v8613_v59  ;;  %v6483_v61 = vsel %vm874_vm3, %v8613_v59, 0.0 }
0x131c   :  { %6484 = vadd.xlane.f32.xlu0 %v6483_v61  ;;  %8487 = vmatpush3.msra.mxu1 %v6508_v36 }
0x131d   :  { %8489 = vmatmul.mubr.msk.f32.vlgmr.msra.gmra.mxu1 %vm874_vm3, %v8611_v27 }
0x131e   :  { %v8615_v6 = vpop.eup %8614 }
0x131f   :  { %v8617_v47 = vpop.eup %8616  ;;  %8491 = vmatprep.mubr.msk.f32.mxu1 %vm874_vm3, %v8615_v6  ;;  %v6489_v54 = vsel %vm874_vm3, %v8615_v6, 0.0 }
0x1320   :  { %6490 = vadd.xlane.f32.xlu0 %v6489_v54  ;;  %v6492_v11 = vsel %vm874_vm3, %v8617_v47, 0.0 }
0x1321   :  { %6493 = vadd.xlane.f32.xlu1 %v6492_v11  ;;  %8492 = vmatmul.mubr.msk.f32.gmra.mxu1 %vm874_vm3, %v8617_v47 }
0x1322   :  { %v8619_v38 = vpop.eup %8618 }
0x1323   :  { %v8621_v4 = vpop.eup %8620  ;;  %8494 = vmatprep.mubr.msk.f32.mxu1 %vm874_vm3, %v8619_v38  ;;  %v6495_v42 = vsel %vm874_vm3, %v8619_v38, 0.0 }
0x1324   :  { %6496 = vadd.xlane.f32.xlu0 %v6495_v42  ;;  %v6498_v14 = vsel %vm874_vm3, %v8621_v4, 0.0 }
0x1325   :  { %6499 = vadd.xlane.f32.xlu1 %v6498_v14  ;;  %8495 = vmatmul.mubr.msk.f32.gmra.mxu1 %vm874_vm3, %v8621_v4 }
0x1326   :  { %v8623_v32 = vpop.eup %8622 }
0x1327   :  { %v8625_v30 = vpop.eup %8624  ;;  %8497 = vmatprep.mubr.msk.f32.mxu1 %vm874_vm3, %v8623_v32  ;;  %v6501_v0 = vsel %vm874_vm3, %v8623_v32, 0.0 }
0x1328   :  { %6502 = vadd.xlane.f32.xlu0 %v6501_v0  ;;  %v6504_v57 = vsel %vm874_vm3, %v8625_v30, 0.0 }
0x1329   :  { %6505 = vadd.xlane.f32.xlu1 %v6504_v57  ;;  %8498 = vmatmul.mubr.msk.f32.gmra.mxu1 %vm874_vm3, %v8625_v30 }
0x132c   :  { %5198 = vadd.xlane.f32.xlu0 %v5197_v39 }
0x132d   :  { %5201 = vadd.xlane.f32.xlu1 %v5200_v17 }
0x1330   :  { %5204 = vadd.xlane.f32.xlu0 %v5203_v2 }
0x1331   :  { %5207 = vadd.xlane.f32.xlu1 %v5206_v9 }
0x1334   :  { %5210 = vadd.xlane.f32.xlu0 %v5209_v22 }
0x1335   :  { %5213 = vadd.xlane.f32.xlu1 %v5212_v15 }
0x1338   :  { %5216 = vadd.xlane.f32.xlu0 %v5215_v8 }
0x1339   :  { %5219 = vadd.xlane.f32.xlu1 %v5218_v19 }
0x1349   :  { %v5612_v49 = vpop.xlane.xlu0 %5611  ;;  %v5609_v63 = vpop.xlane.xlu1 %5608 }
0x134a   :  { %8626 = vrcp.f32 %v5612_v49 }
0x134b   :  { %8628 = vrcp.f32 %v5609_v63 }
0x134d   :  { %v6051_v52 = vpop.xlane.xlu0 %6050  ;;  %v6054_v25 = vpop.xlane.xlu1 %6053 }
0x134e   :  { %8630 = vrcp.f32 %v6051_v52 }
0x134f   :  { %8632 = vrcp.f32 %v6054_v25 }
0x1351   :  { %v5615_v41 = vpop.xlane.xlu0 %5614  ;;  %v5618_v51 = vpop.xlane.xlu1 %5617 }
0x1352   :  { %8634 = vrcp.f32 %v5615_v41 }
0x1353   :  { %8636 = vrcp.f32 %v5618_v51 }
0x1355   :  { %v6057_v26 = vpop.xlane.xlu0 %6056  ;;  %v6060_v44 = vpop.xlane.xlu1 %6059 }
0x1356   :  { %8638 = vrcp.f32 %v6057_v26 }
0x1357   :  { %v8627_v3 = vpop.eup %8626  ;;  %8640 = vrcp.f32 %v6060_v44 }
0x1358   :  { %v8629_v29 = vpop.eup %8628  ;;  %v5801_v5 = vmul.f32 %v8627_v3, %v5612_v49 }
0x1359   :  { %v5800_v53 = vmul.f32 %v8629_v29, %v5609_v63  ;;  %v5621_v56 = vpop.xlane.xlu0 %5620  ;;  %v5624_v55 = vpop.xlane.xlu1 %5623 }
0x135a   :  { %v5809_v16 = vsub.f32 2.0, %v5801_v5  ;;  %8642 = vrcp.f32 %v5621_v56 }
0x135b   :  { %v8631_v58 = vpop.eup %8630  ;;  %v5808_v10 = vsub.f32 2.0, %v5800_v53  ;;  %8644 = vrcp.f32 %v5624_v55 }
0x135c   :  { %v8633_v60 = vpop.eup %8632  ;;  %v5817_v21 = vmul.f32 %v8627_v3, %v5809_v16  ;;  %v6234_v35 = vmul.f32 %v8631_v58, %v6051_v52 }
0x135d   :  { %v5816_v62 = vmul.f32 %v8629_v29, %v5808_v10  ;;  %v6235_v27 = vmul.f32 %v8633_v60, %v6054_v25  ;;  %v6063_v24 = vpop.xlane.xlu0 %6062  ;;  %v6066_v37 = vpop.xlane.xlu1 %6065 }
0x135e   :  { %v5825_v59 = vmul.f32 %v10339_v40, %v5817_v21  ;;  %v6242_v36 = vsub.f32 2.0, %v6234_v35  ;;  %8646 = vrcp.f32 %v6063_v24 }
0x135f   :  { %v8635_v61 = vpop.eup %8634  ;;  %v5824_v6 = vmul.f32 %v5816_v62, %v10341_v28  ;;  %v6243_v47 = vsub.f32 2.0, %v6235_v27  ;;  %8648 = vrcp.f32 %v6066_v37  ;;  %v6828_v27 = vld [vmem:[%s10785_s7 + $0x38] sm:$0xff] }
0x1360   :  { %v8637_v54 = vpop.eup %8636  ;;  %v6250_v11 = vmul.f32 %v8631_v58, %v6242_v36  ;;  %v5802_v38 = vmul.f32 %v8635_v61, %v5615_v41  ;;  %6710 = vrot.lane.b32.xlu1 %v5825_v59, %s8722_s9  ;;  %8500 = vmatprep.subr.mxu1 %v6828_v27  ;;  %v6826_v36 = vld [vmem:[%s10785_s7 + $0x28] sm:$0xff] }
0x1361   :  { %v6251_v4 = vmul.f32 %v8633_v60, %v6243_v47  ;;  %v5803_v42 = vmul.f32 %v8637_v54, %v5618_v51  ;;  %6708 = vrot.lane.b32.xlu0 %v5824_v6, %s8722_s9  ;;  %v5627_v14 = vpop.xlane.xlu0 %5626  ;;  %v5630_v32 = vpop.xlane.xlu1 %5629  ;;  %8501 = vmatpush3.msra.mxu1 %v6828_v27 }
0x1362   :  { %v6258_v40 = vmul.f32 %v6250_v11, %v10487_v34  ;;  %v5810_v30 = vsub.f32 2.0, %v5802_v38  ;;  %8650 = vrcp.f32 %v5627_v14 }
0x1363   :  { %v8639_v0 = vpop.eup %8638  ;;  %v6259_v28 = vmul.f32 %v10485_v46, %v6251_v4  ;;  %v5811_v57 = vsub.f32 2.0, %v5803_v42  ;;  %8652 = vrcp.f32 %v5630_v32 }
0x1364   :  { %v8641_v39 = vpop.eup %8640  ;;  %v5818_v17 = vmul.f32 %v8635_v61, %v5810_v30  ;;  %v6236_v2 = vmul.f32 %v8639_v0, %v6057_v26  ;;  %6740 = vrot.lane.b32.xlu1 %v6258_v40, %s8716_s16 }
0x1365   :  { %v5819_v9 = vmul.f32 %v8637_v54, %v5811_v57  ;;  %v6237_v22 = vmul.f32 %v8641_v39, %v6060_v44  ;;  %6742 = vrot.lane.b32.xlu0 %v6259_v28, %s8716_s16  ;;  %v6069_v15 = vpop.xlane.xlu0 %6068  ;;  %v6072_v8 = vpop.xlane.xlu1 %6071  ;;  %v6823_v28 = vld [vmem:[%s10785_s7 + $0x10] sm:$0xff] }
0x1366   :  { %v5826_v34 = vmul.f32 %v5818_v17, %v10345_v12  ;;  %v6244_v19 = vsub.f32 2.0, %v6236_v2  ;;  %8654 = vrcp.f32 %v6069_v15 }
0x1367   :  { %v8643_v49 = vpop.eup %8642  ;;  %v5827_v46 = vmul.f32 %v10343_v31, %v5819_v9  ;;  %v6245_v63 = vsub.f32 2.0, %v6237_v22  ;;  %8656 = vrcp.f32 %v6072_v8 }
0x1368   :  { %v8645_v52 = vpop.eup %8644  ;;  %v6252_v25 = vmul.f32 %v8639_v0, %v6244_v19  ;;  %v5804_v41 = vmul.f32 %v8643_v49, %v5621_v56  ;;  %6712 = vrot.lane.b32.xlu1 %v5826_v34, %s8722_s9  ;;  %v6822_v19 = vld [vmem:[%s10785_s7 + $0x8] sm:$0xff] }
0x1369   :  { %v6253_v51 = vmul.f32 %v8641_v39, %v6245_v63  ;;  %v5805_v26 = vmul.f32 %v8645_v52, %v5624_v55  ;;  %6714 = vrot.lane.b32.xlu0 %v5827_v46, %s8722_s9  ;;  %v6821_v63 = vld [vmem:[%s10785_s7] sm:$0xff] }
0x136a   :  { %v6260_v44 = vmul.f32 %v6252_v25, %v10491_v33  ;;  %v5812_v3 = vsub.f32 2.0, %v5804_v41 }
0x136b   :  { %v8647_v12 = vpop.eup %8646  ;;  %v6261_v29 = vmul.f32 %v10489_v23, %v6253_v51  ;;  %v5813_v5 = vsub.f32 2.0, %v5805_v26 }
0x136c   :  { %v8649_v53 = vpop.eup %8648  ;;  %v5820_v31 = vmul.f32 %v8643_v49, %v5812_v3  ;;  %v6238_v16 = vmul.f32 %v8647_v12, %v6063_v24  ;;  %6744 = vrot.lane.b32.xlu1 %v6260_v44, %s8716_s16  ;;  %v6827_v24 = vld [vmem:[%s10785_s7 + $0x30] sm:$0xff] }
0x136d   :  { %v5821_v58 = vmul.f32 %v8645_v52, %v5813_v5  ;;  %v6239_v56 = vmul.f32 %v8649_v53, %v6066_v37  ;;  %6746 = vrot.lane.b32.xlu0 %v6261_v29, %s8716_s16  ;;  %8502 = vmatprep.subr.mxu1 %v6827_v24 }
0x136e   :  { %v5828_v55 = vmul.f32 %v5820_v31, %v10349_v43  ;;  %v6246_v10 = vsub.f32 2.0, %v6238_v16  ;;  %8503 = vmatpush3.msra.mxu1 %v6827_v24 }
0x136f   :  { %v8651_v60 = vpop.eup %8650  ;;  %v5829_v33 = vmul.f32 %v10347_v48, %v5821_v58  ;;  %v6247_v21 = vsub.f32 2.0, %v6239_v56  ;;  %8504 = vmatprep.subr.mxu1 %v6826_v36 }
0x1370   :  { %v8653_v35 = vpop.eup %8652  ;;  %v6254_v62 = vmul.f32 %v8647_v12, %v6246_v10  ;;  %v5806_v23 = vmul.f32 %v8651_v60, %v5627_v14  ;;  %6716 = vrot.lane.b32.xlu1 %v5828_v55, %s8722_s9  ;;  %8505 = vmatpush3.msra.mxu1 %v6826_v36 }
0x1371   :  { %v6255_v37 = vmul.f32 %v8649_v53, %v6247_v21  ;;  %v5807_v43 = vmul.f32 %v8653_v35, %v5630_v32  ;;  %6718 = vrot.lane.b32.xlu0 %v5829_v33, %s8722_s9  ;;  %v6824_v32 = vld [vmem:[%s10785_s7 + $0x18] sm:$0xff] }
0x1372   :  { %v6262_v48 = vmul.f32 %v6254_v62, %v10495_v45  ;;  %v5814_v59 = vsub.f32 2.0, %v5806_v23  ;;  %v6825_v45 = vld [vmem:[%s10785_s7 + $0x20] sm:$0xff] }
0x1373   :  { %v8655_v61 = vpop.eup %8654  ;;  %v6263_v6 = vmul.f32 %v10493_v7, %v6255_v37  ;;  %v5815_v47 = vsub.f32 2.0, %v5807_v43  ;;  %8506 = vmatprep.subr.mxu1 %v6825_v45 }
0x1374   :  { %v8657_v54 = vpop.eup %8656  ;;  %v5822_v11 = vmul.f32 %v8651_v60, %v5814_v59  ;;  %v6240_v38 = vmul.f32 %v8655_v61, %v6069_v15  ;;  %6748 = vrot.lane.b32.xlu1 %v6262_v48, %s8716_s16  ;;  %8507 = vmatpush3.msra.mxu1 %v6825_v45 }
0x1375   :  { %v5823_v4 = vmul.f32 %v8653_v35, %v5815_v47  ;;  %v6241_v42 = vmul.f32 %v8657_v54, %v6072_v8  ;;  %6750 = vrot.lane.b32.xlu0 %v6263_v6, %s8716_s16  ;;  %8508 = vmatprep.subr.mxu1 %v6824_v32 }
0x1376   :  { %v5830_v14 = vmul.f32 %v5822_v11, %v10353_v1  ;;  %v6248_v7 = vsub.f32 2.0, %v6240_v38  ;;  %8509 = vmatpush3.msra.mxu1 %v6824_v32 }
0x1377   :  { %v5831_v40 = vmul.f32 %v10351_v18, %v5823_v4  ;;  %v6249_v30 = vsub.f32 2.0, %v6241_v42  ;;  %8510 = vmatprep.subr.mxu1 %v6823_v28 }
0x1378   :  { %v6256_v0 = vmul.f32 %v8655_v61, %v6248_v7  ;;  %6720 = vrot.lane.b32.xlu1 %v5830_v14, %s8722_s9  ;;  %8511 = vmatpush3.msra.mxu1 %v6823_v28 }
0x1379   :  { %v6257_v57 = vmul.f32 %v8657_v54, %v6249_v30  ;;  %6722 = vrot.lane.b32.xlu0 %v5831_v40, %s8722_s9  ;;  %8512 = vmatprep.subr.mxu1 %v6822_v19 }
0x137a   :  { %v6264_v1 = vmul.f32 %v6256_v0, %v10499_v50  ;;  %8513 = vmatpush3.msra.mxu1 %v6822_v19 }
0x137b   :  { %v6265_v39 = vmul.f32 %v10497_v13, %v6257_v57  ;;  %8514 = vmatprep.subr.mxu1 %v6821_v63 }
0x137c   :  { %6752 = vrot.lane.b32.xlu1 %v6264_v1, %s8716_s16  ;;  %8515 = vmatpush3.msra.mxu1 %v6821_v63 }
0x137d   :  { %6754 = vrot.lane.b32.xlu0 %v6265_v39, %s8716_s16 }
0x13a3   :  { %v6488_v18 = vpop.xlane.xlu1 %6487 }
0x13a4   :  { %8658 = vrcp.f32 %v6488_v18 }
0x13a5   :  { %v6485_v17 = vpop.xlane.xlu0 %6484 }
0x13a6   :  { %8660 = vrcp.f32 %v6485_v17 }
0x13a9   :  { %v6491_v9 = vpop.xlane.xlu0 %6490 }
0x13aa   :  { %v6494_v2 = vpop.xlane.xlu1 %6493 }
0x13ab   :  { %8662 = vrcp.f32 %v6494_v2 }
0x13ac   :  { %8664 = vrcp.f32 %v6491_v9 }
0x13ad   :  { %v6497_v15 = vpop.xlane.xlu0 %6496 }
0x13ae   :  { %v6500_v22 = vpop.xlane.xlu1 %6499 }
0x13af   :  { %8666 = vrcp.f32 %v6500_v22 }
0x13b0   :  { %8668 = vrcp.f32 %v6497_v15 }
0x13b1   :  { %v6503_v13 = vpop.xlane.xlu0 %6502  ;;  %v8659_v8 = vpop.eup %8658 }
0x13b2   :  { %v6506_v50 = vpop.xlane.xlu1 %6505  ;;  %v6669_v49 = vmul.f32 %v8659_v8, %v6488_v18 }
0x13b3   :  { %8670 = vrcp.f32 %v6506_v50  ;;  %v8661_v34 = vpop.eup %8660 }
0x13b4   :  { %8672 = vrcp.f32 %v6503_v13  ;;  %v6668_v52 = vmul.f32 %v8661_v34, %v6485_v17  ;;  %v6677_v41 = vsub.f32 2.0, %v6669_v49 }
0x13b5   :  { %v5199_v0 = vpop.xlane.xlu0 %5198 }
0x13b6   :  { %v6676_v44 = vsub.f32 2.0, %v6668_v52  ;;  %v6685_v53 = vmul.f32 %v8659_v8, %v6677_v41  ;;  %v5202_v28 = vpop.xlane.xlu1 %5201  ;;  %8674 = vrcp.f32 %v5199_v0 }
0x13b7   :  { %8676 = vrcp.f32 %v5202_v28 }
0x13b8   :  { %v8663_v46 = vpop.eup %8662  ;;  %v6684_v10 = vmul.f32 %v8661_v34, %v6676_v44 }
0x13b9   :  { %v8665_v25 = vpop.eup %8664  ;;  %v6671_v51 = vmul.f32 %v8663_v46, %v6494_v2  ;;  %v5205_v57 = vpop.xlane.xlu0 %5204 }
0x13ba   :  { %v6670_v3 = vmul.f32 %v8665_v25, %v6491_v9  ;;  %v5208_v1 = vpop.xlane.xlu1 %5207  ;;  %8678 = vrcp.f32 %v5205_v57 }
0x13bb   :  { %v6679_v29 = vsub.f32 2.0, %v6671_v51  ;;  %8680 = vrcp.f32 %v5208_v1 }
0x13bc   :  { %v8667_v26 = vpop.eup %8666  ;;  %v6678_v58 = vsub.f32 2.0, %v6670_v3 }
0x13bd   :  { %v8669_v12 = vpop.eup %8668  ;;  %v6673_v5 = vmul.f32 %v8667_v26, %v6500_v22  ;;  %v6687_v23 = vmul.f32 %v8663_v46, %v6679_v29  ;;  %v5211_v39 = vpop.xlane.xlu0 %5210 }
0x13be   :  { %v6672_v56 = vmul.f32 %v8669_v12, %v6497_v15  ;;  %v6686_v48 = vmul.f32 %v8665_v25, %v6678_v58  ;;  %v5214_v18 = vpop.xlane.xlu1 %5213  ;;  %8682 = vrcp.f32 %v5211_v39 }
0x13bf   :  { %v6681_v21 = vsub.f32 2.0, %v6673_v5  ;;  %8684 = vrcp.f32 %v5214_v18 }
0x13c0   :  { %v8671_v31 = vpop.eup %8670  ;;  %v6680_v24 = vsub.f32 2.0, %v6672_v56 }
0x13c1   :  { %v8673_v60 = vpop.eup %8672  ;;  %v6675_v35 = vmul.f32 %v8671_v31, %v6506_v50  ;;  %v6689_v6 = vmul.f32 %v8667_v26, %v6681_v21  ;;  %v5217_v17 = vpop.xlane.xlu0 %5216 }
0x13c2   :  { %v6674_v37 = vmul.f32 %v8673_v60, %v6503_v13  ;;  %v6688_v38 = vmul.f32 %v8669_v12, %v6680_v24  ;;  %v5220_v2 = vpop.xlane.xlu1 %5219  ;;  %8686 = vrcp.f32 %v5217_v17 }
0x13c3   :  { %v6683_v36 = vsub.f32 2.0, %v6675_v35  ;;  %v8675_v63 = vpop.eup %8674  ;;  %8688 = vrcp.f32 %v5220_v2 }
0x13c4   :  { %v6682_v54 = vsub.f32 2.0, %v6674_v37  ;;  %v8677_v25 = vpop.eup %8676  ;;  %v5358_v26 = vmul.f32 %v8675_v63, %v5199_v0 }
0x13c5   :  { %v6691_v42 = vmul.f32 %v8671_v31, %v6683_v36  ;;  %v5359_v44 = vmul.f32 %v8677_v25, %v5202_v28 }
0x13c6   :  { %v6690_v32 = vmul.f32 %v8673_v60, %v6682_v54  ;;  %v5366_v5 = vsub.f32 2.0, %v5358_v26 }
0x13c7   :  { %v8679_v51 = vpop.eup %8678  ;;  %v5367_v31 = vsub.f32 2.0, %v5359_v44  ;;  %v10800_v44 = vld [vmem:[#allocation9_spill] sm:$0xff] }
0x13c8   :  { %v8681_v3 = vpop.eup %8680  ;;  %v5360_v12 = vmul.f32 %v8679_v51, %v5205_v57  ;;  %v10798_v57 = vld [vmem:[#allocation7_spill] sm:$0xff] }
0x13c9   :  { %v5375_v21 = vmul.f32 %v8677_v25, %v5367_v31  ;;  %v10801_v31 = vld [vmem:[#allocation12_spill] sm:$0xff] }
0x13d2   :  { %v6711_v22 = vpop.permute.xlu1 %6710 }
0x13d3   :  { %v6709_v9 = vpop.permute.xlu0 %6708 }
0x13d6   :  { %v6741_v50 = vpop.permute.xlu1 %6740 }
0x13d7   :  { %v6743_v15 = vpop.permute.xlu0 %6742 }
0x13da   :  { %v10683_v8 = vpop.permute.xlu1 %6712 }
0x13db   :  { %v10681_v13 = vpop.permute.xlu0 %6714 }
0x13dd   :  { %v8490_v16 = vpop.f32.mrf.mxu1 }
0x13de   :  { %v6693_v55 = vmul.f32 %v8490_v16, %v6685_v53  ;;  %v10687_v19 = vpop.permute.xlu1 %6744  ;;  %v8683_v53 = vpop.eup %8682  ;;  %v5361_v16 = vmul.f32 %v8681_v3, %v5208_v1 }
0x13df   :  { %v6621_v33 = vpop.f32.mrf.mxu1  ;;  %v10685_v34 = vpop.permute.xlu0 %6746  ;;  %v5362_v60 = vmul.f32 %v8683_v53, %v5211_v39 }
0x13e0   :  { %v6692_v62 = vmul.f32 %v6684_v10, %v6621_v33  ;;  %6774 = vrot.lane.b32.xlu0 %v6693_v55, %s8720_s18  ;;  %v8685_v56 = vpop.eup %8684  ;;  %v5368_v55 = vsub.f32 2.0, %v5360_v12  ;;  %v5374_v10 = vmul.f32 %v8675_v63, %v5366_v5  ;;  %v5369_v35 = vsub.f32 2.0, %v5361_v16  ;;  %v10799_v63 = vld [vmem:[#allocation10_spill] sm:$0xff] }
0x13e1   :  { %v8493_v27 = vpop.f32.mrf.mxu1  ;;  %v8687_v33 = vpop.eup %8686 }
0x13e2   :  { %v6695_v43 = vmul.f32 %v8493_v27, %v6687_v23  ;;  %6772 = vrot.lane.b32.xlu1 %v6692_v62, %s8720_s18  ;;  %v10691_v46 = vpop.permute.xlu1 %6716  ;;  %v5363_v62 = vmul.f32 %v8685_v56, %v5214_v18  ;;  %v8689_v27 = vpop.eup %8688  ;;  %v5376_v24 = vmul.f32 %v8679_v51, %v5368_v55  ;;  %v5377_v36 = vmul.f32 %v8681_v3, %v5369_v35  ;;  %v10802_v55 = vld [vmem:[#allocation11_spill] sm:$0xff] }
0x13e3   :  { %v6631_v59 = vpop.f32.mrf.mxu1  ;;  %v10689_v49 = vpop.permute.xlu0 %6718 }
0x13e4   :  { %v6694_v61 = vmul.f32 %v6686_v48, %v6631_v59  ;;  %6778 = vrot.lane.b32.xlu0 %v6695_v43, %s8720_s18  ;;  %v5370_v43 = vsub.f32 2.0, %v5362_v60  ;;  %v5364_v48 = vmul.f32 %v8687_v33, %v5217_v17  ;;  %v5382_v59 = vmul.f32 %v5374_v10, %v10325_v20 }
0x13e5   :  { %v8496_v47 = vpop.f32.mrf.mxu1  ;;  %v5385_v1 = vmul.f32 %v10798_v57, %v5377_v36 }
0x13e6   :  { %v6697_v11 = vmul.f32 %v8496_v47, %v6689_v6  ;;  %6776 = vrot.lane.b32.xlu1 %v6694_v61, %s8720_s18  ;;  %v10695_v41 = vpop.permute.xlu1 %6748  ;;  %v5371_v61 = vsub.f32 2.0, %v5363_v62  ;;  %v5365_v6 = vmul.f32 %v8689_v27, %v5220_v2  ;;  %v10796_v47 = vld [vmem:[#allocation6_spill] sm:$0xff] }
0x13e7   :  { %v6641_v45 = vpop.f32.mrf.mxu1  ;;  %v10693_v52 = vpop.permute.xlu0 %6750  ;;  %v5383_v54 = vmul.f32 %v10796_v47, %v5375_v21  ;;  %v6799_v2 = vsel %vm69_vm2, %v5385_v1, %v10681_v13 }
0x13e8   :  { %v6696_v4 = vmul.f32 %v6688_v38, %v6641_v45  ;;  %6782 = vrot.lane.b32.xlu0 %v6697_v11, %s8720_s18  ;;  %v6796_v38 = vsel %vm69_vm2, %v5382_v59, %v6709_v9  ;;  %v5379_v0 = vmul.f32 %v8685_v56, %v5371_v61  ;;  %v5373_v28 = vsub.f32 2.0, %v5365_v6 }
0x13e9   :  { %v8499_v14 = vpop.f32.mrf.mxu1  ;;  %v6797_v45 = vsel %vm69_vm2, %v5383_v54, %v6711_v22 }
0x13ea   :  { %v6699_v7 = vmul.f32 %v8499_v14, %v6691_v42  ;;  %6780 = vrot.lane.b32.xlu1 %v6696_v4, %s8720_s18  ;;  %v10699_v58 = vpop.permute.xlu1 %6720  ;;  %v6804_v4 = vsel %vm49_vm0, %v6796_v38, %v6741_v50  ;;  %v10797_v42 = vld [vmem:[#allocation8_spill] sm:$0xff]  ;;  %v6805_v20 = vsel %vm49_vm0, %v6797_v45, %v6743_v15  ;;  %v6807_v50 = vsel %vm49_vm0, %v6799_v2, %v10685_v34 }
0x13eb   :  { %v6651_v40 = vpop.f32.mrf.mxu1  ;;  %v10697_v29 = vpop.permute.xlu0 %6722  ;;  %v5384_v14 = vmul.f32 %v5376_v24, %v10797_v42  ;;  %v5381_v26 = vmul.f32 %v8689_v27, %v5373_v28 }
0x13ec   :  { %v6698_v30 = vmul.f32 %v6690_v32, %v6651_v40  ;;  %6786 = vrot.lane.b32.xlu0 %v6699_v7, %s8720_s18  ;;  %v5378_v32 = vmul.f32 %v8683_v53, %v5370_v43  ;;  %v5372_v40 = vsub.f32 2.0, %v5364_v48 }
0x13ed   :  { %v6798_v17 = vsel %vm69_vm2, %v5384_v14, %v10683_v8  ;;  %v5387_v8 = vmul.f32 %v10800_v44, %v5379_v0  ;;  %v5389_v10 = vmul.f32 %v10802_v55, %v5381_v26 }
0x13ee   :  { %6784 = vrot.lane.b32.xlu1 %v6698_v30, %s8720_s18  ;;  %v6753_v37 = vpop.permute.xlu1 %6752  ;;  %v6806_v9 = vsel %vm49_vm0, %v6798_v17, %v10687_v19  ;;  %v5380_v15 = vmul.f32 %v8687_v33, %v5372_v40  ;;  %v5386_v25 = vmul.f32 %v5378_v32, %v10799_v63 }
0x13ef   :  { %v6755_v23 = vpop.permute.xlu0 %6754  ;;  %v6801_v34 = vsel %vm69_vm2, %v5387_v8, %v10689_v49 }
0x13f0   :  { %v6800_v13 = vsel %vm69_vm2, %v5386_v25, %v10691_v46  ;;  %v6809_v53 = vsel %vm49_vm0, %v6801_v34, %v10693_v52  ;;  %v5388_v16 = vmul.f32 %v5380_v15, %v10801_v31 }
0x13f1   :  { %v6808_v19 = vsel %vm49_vm0, %v6800_v13, %v10695_v41  ;;  %v6803_v41 = vsel %vm69_vm2, %v5389_v10, %v10697_v29 }
0x13f2   :  { %v6802_v49 = vsel %vm69_vm2, %v5388_v16, %v10699_v58  ;;  %v6811_v21 = vsel %vm49_vm0, %v6803_v41, %v6755_v23  ;;  %v7323_v58 = vld [vmem:[%s10786_s8] ss:$0 sm:$0xff] }
0x13f3   :  { %v6810_v52 = vsel %vm49_vm0, %v6802_v49, %v6753_v37 }
0x1452   :  { %v6775_v11 = vpop.permute.xlu0 %6774 }
0x1453   :  { %v6814_v39 = vsel %vm6812_vm4, %v6805_v20, %v6775_v11 }
0x1454   :  { %v6773_v7 = vpop.permute.xlu1 %6772 }
0x1455   :  { %v6813_v30 = vsel %vm6812_vm4, %v6804_v4, %v6773_v7 }
0x1456   :  { %v6779_v18 = vpop.permute.xlu0 %6778  ;;  %8516 = vmatprep.mubr.msk.f32.mxu1 %vm874_vm3, %v6813_v30 }
0x1457   :  { %8517 = vmatmul.mubr.msk.f32.vlgmr.msra.gmra.mxu1 %vm874_vm3, %v6814_v39  ;;  %v6816_v3 = vsel %vm6812_vm4, %v6807_v50, %v6779_v18 }
0x1458   :  { %v6777_v22 = vpop.permute.xlu1 %6776 }
0x1459   :  { %v6815_v51 = vsel %vm6812_vm4, %v6806_v9, %v6777_v22 }
0x145a   :  { %v6783_v12 = vpop.permute.xlu0 %6782  ;;  %8519 = vmatprep.mubr.msk.f32.mxu1 %vm874_vm3, %v6815_v51 }
0x145b   :  { %8520 = vmatmul.mubr.msk.f32.gmra.mxu1 %vm874_vm3, %v6816_v3  ;;  %v6818_v46 = vsel %vm6812_vm4, %v6809_v53, %v6783_v12 }
0x145c   :  { %v6781_v5 = vpop.permute.xlu1 %6780 }
0x145d   :  { %v6817_v56 = vsel %vm6812_vm4, %v6808_v19, %v6781_v5 }
0x145e   :  { %8522 = vmatprep.mubr.msk.f32.mxu1 %vm874_vm3, %v6817_v56  ;;  %v6787_v60 = vpop.permute.xlu0 %6786 }
0x145f   :  { %8523 = vmatmul.mubr.msk.f32.gmra.mxu1 %vm874_vm3, %v6818_v46  ;;  %v6820_v62 = vsel %vm6812_vm4, %v6811_v21, %v6787_v60 }
0x1460   :  { %v6785_v33 = vpop.permute.xlu1 %6784 }
0x1461   :  { %v6819_v35 = vsel %vm6812_vm4, %v6810_v52, %v6785_v33 }
0x1462   :  { %8525 = vmatprep.mubr.msk.f32.mxu1 %vm874_vm3, %v6819_v35 }
0x1463   :  { %8526 = vmatmul.mubr.msk.f32.gmra.mxu1 %vm874_vm3, %v6820_v62 }
0x1517   :  { %v8518_v27 = vpop.f32.mrf.mxu1 }
0x1518   :  { %v6932_v24 = vadd.f32 %v8518_v27, %v7323_v58 }
0x1519   :  { %v6926_v29 = vpop.f32.mrf.mxu1 }
0x151a   :  { %6966 = vst [vmem:[%s10788_s10 + $0x8] sm:$0xff] %v6932_v24  ;;  %v6927_v23 = vadd.f32 %v7323_v58, %v6926_v29 }
0x151b   :  { %v8521_v37 = vpop.f32.mrf.mxu1 }
0x151c   :  { %6965 = vst [vmem:[%s10788_s10] sm:$0xff] %v6927_v23  ;;  %v6942_v43 = vadd.f32 %v8521_v37, %v7323_v58 }
0x151d   :  { %v6936_v48 = vpop.f32.mrf.mxu1 }
0x151e   :  { %6968 = vst [vmem:[%s10788_s10 + $0x18] sm:$0xff] %v6942_v43  ;;  %v6937_v59 = vadd.f32 %v7323_v58, %v6936_v48 }
0x151f   :  { %v8524_v36 = vpop.f32.mrf.mxu1 }
0x1520   :  { %6967 = vst [vmem:[%s10788_s10 + $0x10] sm:$0xff] %v6937_v59  ;;  %v6952_v61 = vadd.f32 %v8524_v36, %v7323_v58 }
0x1521   :  { %v6946_v6 = vpop.f32.mrf.mxu1 }
0x1522   :  { %6970 = vst [vmem:[%s10788_s10 + $0x28] sm:$0xff] %v6952_v61  ;;  %v6947_v47 = vadd.f32 %v7323_v58, %v6946_v6 }
0x1523   :  { %v8527_v54 = vpop.f32.mrf.mxu1 }
0x1524   :  { %6969 = vst [vmem:[%s10788_s10 + $0x20] sm:$0xff] %v6947_v47  ;;  %v6962_v11 = vadd.f32 %v8527_v54, %v7323_v58 }
0x1525   :  { %v6956_v38 = vpop.f32.mrf.mxu1 }
0x1526   :  { %6972 = vst [vmem:[%s10788_s10 + $0x38] sm:$0xff] %v6962_v11  ;;  %v6957_v45 = vadd.f32 %v7323_v58, %v6956_v38 }
0x1528   :  { %6971 = vst [vmem:[%s10788_s10 + $0x30] sm:$0xff] %v6957_v45 }
0x1529   :  { %6977 = vsyncpa [#allocation4], 1 }

</bundles_post_ra>
